<compile_context>
chip_gen: v7x
topology: tpu7x:2x2x1
jax: 0.10.0
libtpu: 0.0.40
codegen_flags: <defaults>
</compile_context>

<pallas_src>
import functools

import numpy as np
import jax
import jax.numpy as jnp
from jax import lax
from jax.experimental import pallas as pl
from jax.experimental.pallas import tpu as pltpu


def gaussian_kernel(size, sigma):
    # identical to the PyTorch module's helper (2-D, normalized)
    x, y = np.mgrid[-size:size + 1, -size:size + 1]
    kernel = np.exp(-0.5 * (x * x + y * y) / (sigma * sigma))
    kernel /= kernel.sum()
    return kernel


def _band_matrix(n, taps):
    """Band (Toeplitz) matrix M with M[j, i] = g[j - i + P] (0 outside the band),
    so that (x @ M) equals the 'same'-size 1-D conv of x's rows with taps g and
    zero padding P = (K-1)//2.  The Gaussian taps are symmetric, so the same
    matrix also serves as the left-multiply (vertical) operator."""
    P = (len(taps) - 1) // 2
    M = np.zeros((n, n), dtype=np.float64)
    for k, t in enumerate(taps):
        d = k - P
        if abs(d) >= n:
            continue
        M += np.diag(np.full(n - abs(d), t, dtype=np.float64), -d)
    return M.astype(np.float32)


def _ssim_kernel(x_ref, y_ref, tv_ref, th_ref, out_ref, *, B, H, W):
    """One grid step: SSIM map for B independent (n, c) spatial slices.

    x_ref, y_ref : (B, H, W) native-dtype VMEM  -- input / target slices
    tv_ref       : (H, H) f32 VMEM              -- vertical band matrix
    th_ref       : (W, W) f32 VMEM              -- horizontal band matrix
    out_ref      : (B, H, W) native-dtype VMEM  -- 1 - ssim map
    """
    f32 = jnp.float32
    hi = lax.Precision.HIGHEST

    x = x_ref[...].astype(f32)
    y = y_ref[...].astype(f32)
    th = th_ref[...]
    # Hoisted once per grid step (cheap leading-dim broadcast, reused 5x).
    tv_b = jnp.broadcast_to(tv_ref[...], (B, H, H))

    def conv(p):
        # Horizontal pass: plain (B*H, W) @ (W, W) on the MXU (no lane shifts).
        h = jnp.dot(p.reshape(B * H, W), th,
                    preferred_element_type=f32, precision=hi).reshape(B, H, W)
        # Vertical pass: batched (H, H) @ (H, W) on the MXU.
        return jnp.einsum('bij,bjw->biw', tv_b, h,
                          preferred_element_type=f32, precision=hi)

    m1 = conv(x)
    m2 = conv(y)
    e11 = conv(x * x)
    e22 = conv(y * y)
    e12 = conv(x * y)

    p11 = m1 * m1
    p22 = m2 * m2
    p12 = m1 * m2
    s11 = e11 - p11
    s22 = e22 - p22
    s12 = e12 - p12
    C1 = 0.01 ** 2
    C2 = 0.03 ** 2
    ssim = ((2.0 * p12 + C1) * (2.0 * s12 + C2)) / (
        (p11 + p22 + C1) * (s11 + s22 + C2))
    out_ref[...] = (1.0 - ssim).astype(out_ref.dtype)


def _round_up(v, m):
    return ((v + m - 1) // m) * m


def _pick_batch(G, per_slice_bytes, fixed_bytes, budget_bytes):
    """Largest divisor of G whose VMEM footprint fits the budget, preferring an
    even number of grid steps >= 2 (so v7x's two TensorCores split evenly)."""
    divs = [b for b in range(1, G + 1) if G % b == 0]
    fits = [b for b in divs if fixed_bytes + b * per_slice_bytes <= budget_bytes]
    if not fits:
        # TODO(synk): add a lane-dim (W) spatial tile with a 2P halo for images
        # too large for even a single B=1 block.
        fits = [1]
    even = [b for b in fits if (G // b) >= 2 and (G // b) % 2 == 0]
    return max(even) if even else max(fits)


class SSIMLossPallas:
    """Pallas port of SSIM_Loss(in_channels, size, sigma)."""

    def __init__(self, in_channels, size=11, sigma=1.5):
        self.in_channels = in_channels
        self.size = int(size)
        self.sigma = sigma
        kernel2d = gaussian_kernel(self.size, self.sigma)
        self.kernel_size = kernel2d.shape
        # Same (non-trainable) parameter shape as the nn.Module: (C, 1, K, K).
        self.weight = jnp.asarray(
            np.tile(kernel2d, (in_channels, 1, 1, 1)), dtype=jnp.float32)
        # Exact separable factorization of the normalized 2-D Gaussian:
        # kernel2d == outer(g, g).
        g = np.exp(-0.5 * (np.arange(-self.size, self.size + 1,
                                     dtype=np.float64) ** 2)
                   / (self.sigma * self.sigma))
        g /= g.sum()
        # TODO(synk): baked separable taps are exact only while self.weight stays
        # the tiled identical-per-channel Gaussian produced in __init__.
        self.taps = tuple(float(v) for v in g)

    def __call__(self, inp, target, mask=None):
        del mask  # unused by the reference module's forward
        N, C, H, W = inp.shape
        assert C == self.in_channels
        assert target.shape == inp.shape
        G = N * C
        dt = inp.dtype
        in_bytes = np.dtype(dt).itemsize

        # Lane/sublane-dense padded spatial sizes.  Zero padding reproduces
        # F.conv2d's zero padding exactly inside the valid region.
        Hp = _round_up(H, 8)
        Wp = _round_up(W, 128)

        x = inp.reshape(G, H, W)
        y = target.reshape(G, H, W)
        if (Hp, Wp) != (H, W):
            pad = ((0, 0), (0, Hp - H), (0, Wp - W))
            x = jnp.pad(x, pad)
            y = jnp.pad(y, pad)

        tv = jnp.asarray(_band_matrix(Hp, self.taps))
        th = jnp.asarray(_band_matrix(Wp, self.taps))

        # --- VMEM-aware, generation-aware batch selection -------------------
        try:
            vmem_cap = int(pltpu.get_tpu_info().vmem_capacity_bytes)
        except Exception:
            vmem_cap = 64 * 1024 * 1024            # conservative (v7x-sized)
        budget = (48 if vmem_cap <= 64 * 1024 * 1024 else 96) * 1024 * 1024
        slice_f32 = Hp * Wp * 4
        per_slice = (2 * 2 * Hp * Wp * in_bytes    # x, y (double-buffered)
                     + 2 * Hp * Wp * in_bytes      # output (double-buffered)
                     + 12 * slice_f32              # live f32 temporaries
                     + Hp * Hp * 4)                # broadcast T_v per slice
        fixed = 2 * (Hp * Hp + Wp * Wp) * 4        # band matrices
        B = _pick_batch(G, per_slice, fixed, budget)
        vmem_limit = int(min(vmem_cap, max(budget, fixed + B * per_slice)))

        out = pl.pallas_call(
            functools.partial(_ssim_kernel, B=B, H=Hp, W=Wp),
            out_shape=jax.ShapeDtypeStruct((G, Hp, Wp), dt),
            grid=(G // B,),
            in_specs=[
                pl.BlockSpec((B, Hp, Wp), lambda i: (i, 0, 0)),   # input
                pl.BlockSpec((B, Hp, Wp), lambda i: (i, 0, 0)),   # target
                pl.BlockSpec((Hp, Hp), lambda i: (0, 0)),         # T_v (resident)
                pl.BlockSpec((Wp, Wp), lambda i: (0, 0)),         # T_h (resident)
            ],
            out_specs=pl.BlockSpec((B, Hp, Wp), lambda i: (i, 0, 0)),
            compiler_params=pltpu.CompilerParams(
                dimension_semantics=("parallel",),
                vmem_limit_bytes=vmem_limit),
        )(x, y, tv, th)

        if (Hp, Wp) != (H, W):
            out = out[:, :H, :W]
        return out.reshape(N, C, H, W)


def _reference_ssim_loss(inp, target, weight, size, C):
    """Pure-JAX reference replicating F.conv2d(..., padding=size, groups=C)."""
    dn = ("NCHW", "OIHW", "NCHW")
    conv = lambda a: lax.conv_general_dilated(
        a, weight, window_strides=(1, 1),
        padding=[(size, size), (size, size)],
        dimension_numbers=dn, feature_group_count=C,
        precision=lax.Precision.HIGHEST)
    mean1 = conv(inp)
    mean2 = conv(target)
    mean1_sq = mean1 * mean1
    mean2_sq = mean2 * mean2
    mean_12 = mean1 * mean2
    sigma1_sq = conv(inp * inp) - mean1_sq
    sigma2_sq = conv(target * target) - mean2_sq
    sigma_12 = conv(inp * target) - mean_12
    C1 = 0.01 ** 2
    C2 = 0.03 ** 2
    ssim = (2 * mean_12 + C1) * (2 * sigma_12 + C2) / (
        (mean1_sq + mean2_sq + C1) * (sigma1_sq + sigma2_sq + C2))
    return 1 - ssim


if __name__ == "__main__":
    # Small, module-consistent shapes: batch=2, channels=4, spatial=16.
    # size=3 -> 7x7 Gaussian window (module default 11 -> 23x23; the kernel is
    # parametric in `size`).
    N, C, H, W = 2, 4, 16, 16
    size, sigma = 3, 1.5

    key = jax.random.PRNGKey(0)
    k1, k2 = jax.random.split(key)
    x = jax.random.uniform(k1, (N, C, H, W), dtype=jnp.float32)
    t = jax.random.uniform(k2, (N, C, H, W), dtype=jnp.float32)

    loss_mod = SSIMLossPallas(in_channels=C, size=size, sigma=sigma)
    out = jax.block_until_ready(loss_mod(x, t))

    ref = _reference_ssim_loss(x, t, loss_mod.weight, size, C)
    assert out.shape == (N, C, H, W)
    assert out.dtype == x.dtype
    np.testing.assert_allclose(np.asarray(out), np.asarray(ref),
                               rtol=1e-3, atol=1e-3)
    print("KERNEL_OK")
</pallas_src>

<mosaic_0001>
module attributes {stable_mosaic.version = 11 : i64} {
  func.func @_ssim_kernel(%arg0: i32, %arg1: memref<4x16x128xf32, #tpu.memory_space<vmem>>, %arg2: memref<4x16x128xf32, #tpu.memory_space<vmem>>, %arg3: memref<16x16xf32, #tpu.memory_space<vmem>>, %arg4: memref<128x128xf32, #tpu.memory_space<vmem>>, %arg5: memref<4x16x128xf32, #tpu.memory_space<vmem>>) attributes {dimension_semantics = [#tpu.dimension_semantics<parallel>], iteration_bounds = array<i64: 2>, scalar_prefetch = 0 : i64, scratch_operands = 0 : i64, tpu.core_type = #tpu.core_type<tc>, window_params = [{transform_indices = @transform_0, window_bounds = array<i64: 4, 16, 128>}, {transform_indices = @transform_1, window_bounds = array<i64: 4, 16, 128>}, {pipeline_mode = #tpu.pipeline_mode<synchronous>, transform_indices = @transform_2, window_bounds = array<i64: 16, 16>}, {pipeline_mode = #tpu.pipeline_mode<synchronous>, transform_indices = @transform_3, window_bounds = array<i64: 128, 128>}, {transform_indices = @transform_4, window_bounds = array<i64: 4, 16, 128>}]} {
    %c0 = arith.constant 0 : index
    %c0_0 = arith.constant 0 : index
    %c0_1 = arith.constant 0 : index
    %0 = vector.load %arg1[%c0, %c0_0, %c0_1] : memref<4x16x128xf32, #tpu.memory_space<vmem>>, vector<4x16x128xf32>
    %c0_2 = arith.constant 0 : index
    %c0_3 = arith.constant 0 : index
    %c0_4 = arith.constant 0 : index
    %1 = vector.load %arg2[%c0_2, %c0_3, %c0_4] : memref<4x16x128xf32, #tpu.memory_space<vmem>>, vector<4x16x128xf32>
    %c0_5 = arith.constant 0 : index
    %c0_6 = arith.constant 0 : index
    %2 = vector.load %arg4[%c0_5, %c0_6] : memref<128x128xf32, #tpu.memory_space<vmem>>, vector<128x128xf32>
    %c0_7 = arith.constant 0 : index
    %c0_8 = arith.constant 0 : index
    %3 = vector.load %arg3[%c0_7, %c0_8] : memref<16x16xf32, #tpu.memory_space<vmem>>, vector<16x16xf32>
    %4 = vector.shape_cast %3 : vector<16x16xf32> to vector<1x16x16xf32>
    %5 = vector.broadcast %4 : vector<1x16x16xf32> to vector<4x16x16xf32>
    %6 = vector.shape_cast %0 : vector<4x16x128xf32> to vector<64x128xf32>
    %cst = arith.constant dense<0.000000e+00> : vector<64x128xf32>
    %7 = tpu.matmul %6, %2, %cst {dimension_numbers = #tpu.dot_dimension_numbers<[1], [0], [0], [1], [0, 0, 1, 1], [], []>, precision = #tpu.contract_precision<fp32>} : vector<64x128xf32>, vector<128x128xf32>, vector<64x128xf32> -> vector<64x128xf32>
    %8 = vector.shape_cast %7 : vector<64x128xf32> to vector<4x16x128xf32>
    "tpu.trace_start"() <{level = 10 : i32, message = "bij,bjw->biw"}> : () -> ()
    %cst_9 = arith.constant dense<0.000000e+00> : vector<4x16x128xf32>
    %9 = tpu.matmul %5, %8, %cst_9 {dimension_numbers = #tpu.dot_dimension_numbers<[2], [1], [1], [2], [0, 0, 0, 1, 1, 2], [0], [0]>, precision = #tpu.contract_precision<fp32>} : vector<4x16x16xf32>, vector<4x16x128xf32>, vector<4x16x128xf32> -> vector<4x16x128xf32>
    "tpu.trace_stop"() : () -> ()
    %10 = vector.shape_cast %1 : vector<4x16x128xf32> to vector<64x128xf32>
    %cst_10 = arith.constant dense<0.000000e+00> : vector<64x128xf32>
    %11 = tpu.matmul %10, %2, %cst_10 {dimension_numbers = #tpu.dot_dimension_numbers<[1], [0], [0], [1], [0, 0, 1, 1], [], []>, precision = #tpu.contract_precision<fp32>} : vector<64x128xf32>, vector<128x128xf32>, vector<64x128xf32> -> vector<64x128xf32>
    %12 = vector.shape_cast %11 : vector<64x128xf32> to vector<4x16x128xf32>
    "tpu.trace_start"() <{level = 10 : i32, message = "bij,bjw->biw"}> : () -> ()
    %cst_11 = arith.constant dense<0.000000e+00> : vector<4x16x128xf32>
    %13 = tpu.matmul %5, %12, %cst_11 {dimension_numbers = #tpu.dot_dimension_numbers<[2], [1], [1], [2], [0, 0, 0, 1, 1, 2], [0], [0]>, precision = #tpu.contract_precision<fp32>} : vector<4x16x16xf32>, vector<4x16x128xf32>, vector<4x16x128xf32> -> vector<4x16x128xf32>
    "tpu.trace_stop"() : () -> ()
    %14 = arith.mulf %0, %0 : vector<4x16x128xf32>
    %15 = vector.shape_cast %14 : vector<4x16x128xf32> to vector<64x128xf32>
    %cst_12 = arith.constant dense<0.000000e+00> : vector<64x128xf32>
    %16 = tpu.matmul %15, %2, %cst_12 {dimension_numbers = #tpu.dot_dimension_numbers<[1], [0], [0], [1], [0, 0, 1, 1], [], []>, precision = #tpu.contract_precision<fp32>} : vector<64x128xf32>, vector<128x128xf32>, vector<64x128xf32> -> vector<64x128xf32>
    %17 = vector.shape_cast %16 : vector<64x128xf32> to vector<4x16x128xf32>
    "tpu.trace_start"() <{level = 10 : i32, message = "bij,bjw->biw"}> : () -> ()
    %cst_13 = arith.constant dense<0.000000e+00> : vector<4x16x128xf32>
    %18 = tpu.matmul %5, %17, %cst_13 {dimension_numbers = #tpu.dot_dimension_numbers<[2], [1], [1], [2], [0, 0, 0, 1, 1, 2], [0], [0]>, precision = #tpu.contract_precision<fp32>} : vector<4x16x16xf32>, vector<4x16x128xf32>, vector<4x16x128xf32> -> vector<4x16x128xf32>
    "tpu.trace_stop"() : () -> ()
    %19 = arith.mulf %1, %1 : vector<4x16x128xf32>
    %20 = vector.shape_cast %19 : vector<4x16x128xf32> to vector<64x128xf32>
    %cst_14 = arith.constant dense<0.000000e+00> : vector<64x128xf32>
    %21 = tpu.matmul %20, %2, %cst_14 {dimension_numbers = #tpu.dot_dimension_numbers<[1], [0], [0], [1], [0, 0, 1, 1], [], []>, precision = #tpu.contract_precision<fp32>} : vector<64x128xf32>, vector<128x128xf32>, vector<64x128xf32> -> vector<64x128xf32>
    %22 = vector.shape_cast %21 : vector<64x128xf32> to vector<4x16x128xf32>
    "tpu.trace_start"() <{level = 10 : i32, message = "bij,bjw->biw"}> : () -> ()
    %cst_15 = arith.constant dense<0.000000e+00> : vector<4x16x128xf32>
    %23 = tpu.matmul %5, %22, %cst_15 {dimension_numbers = #tpu.dot_dimension_numbers<[2], [1], [1], [2], [0, 0, 0, 1, 1, 2], [0], [0]>, precision = #tpu.contract_precision<fp32>} : vector<4x16x16xf32>, vector<4x16x128xf32>, vector<4x16x128xf32> -> vector<4x16x128xf32>
    "tpu.trace_stop"() : () -> ()
    %24 = arith.mulf %0, %1 : vector<4x16x128xf32>
    %25 = vector.shape_cast %24 : vector<4x16x128xf32> to vector<64x128xf32>
    %cst_16 = arith.constant dense<0.000000e+00> : vector<64x128xf32>
    %26 = tpu.matmul %25, %2, %cst_16 {dimension_numbers = #tpu.dot_dimension_numbers<[1], [0], [0], [1], [0, 0, 1, 1], [], []>, precision = #tpu.contract_precision<fp32>} : vector<64x128xf32>, vector<128x128xf32>, vector<64x128xf32> -> vector<64x128xf32>
    %27 = vector.shape_cast %26 : vector<64x128xf32> to vector<4x16x128xf32>
    "tpu.trace_start"() <{level = 10 : i32, message = "bij,bjw->biw"}> : () -> ()
    %cst_17 = arith.constant dense<0.000000e+00> : vector<4x16x128xf32>
    %28 = tpu.matmul %5, %27, %cst_17 {dimension_numbers = #tpu.dot_dimension_numbers<[2], [1], [1], [2], [0, 0, 0, 1, 1, 2], [0], [0]>, precision = #tpu.contract_precision<fp32>} : vector<4x16x16xf32>, vector<4x16x128xf32>, vector<4x16x128xf32> -> vector<4x16x128xf32>
    "tpu.trace_stop"() : () -> ()
    %29 = arith.mulf %9, %9 : vector<4x16x128xf32>
    %30 = arith.mulf %13, %13 : vector<4x16x128xf32>
    %31 = arith.mulf %9, %13 : vector<4x16x128xf32>
    %32 = arith.subf %18, %29 : vector<4x16x128xf32>
    %33 = arith.subf %23, %30 : vector<4x16x128xf32>
    %34 = arith.subf %28, %31 : vector<4x16x128xf32>
    %cst_18 = arith.constant 2.000000e+00 : f32
    %35 = vector.broadcast %cst_18 : f32 to vector<4x16x128xf32>
    %36 = arith.mulf %35, %31 : vector<4x16x128xf32>
    %cst_19 = arith.constant 9.99999974E-5 : f32
    %37 = vector.broadcast %cst_19 : f32 to vector<4x16x128xf32>
    %38 = arith.addf %36, %37 : vector<4x16x128xf32>
    %cst_20 = arith.constant 2.000000e+00 : f32
    %39 = vector.broadcast %cst_20 : f32 to vector<4x16x128xf32>
    %40 = arith.mulf %39, %34 : vector<4x16x128xf32>
    %cst_21 = arith.constant 8.99999984E-4 : f32
    %41 = vector.broadcast %cst_21 : f32 to vector<4x16x128xf32>
    %42 = arith.addf %40, %41 : vector<4x16x128xf32>
    %43 = arith.mulf %38, %42 : vector<4x16x128xf32>
    %44 = arith.addf %29, %30 : vector<4x16x128xf32>
    %cst_22 = arith.constant 9.99999974E-5 : f32
    %45 = vector.broadcast %cst_22 : f32 to vector<4x16x128xf32>
    %46 = arith.addf %44, %45 : vector<4x16x128xf32>
    %47 = arith.addf %32, %33 : vector<4x16x128xf32>
    %cst_23 = arith.constant 8.99999984E-4 : f32
    %48 = vector.broadcast %cst_23 : f32 to vector<4x16x128xf32>
    %49 = arith.addf %47, %48 : vector<4x16x128xf32>
    %50 = arith.mulf %46, %49 : vector<4x16x128xf32>
    %51 = arith.divf %43, %50 : vector<4x16x128xf32>
    %cst_24 = arith.constant 1.000000e+00 : f32
    %52 = vector.broadcast %cst_24 : f32 to vector<4x16x128xf32>
    %53 = arith.subf %52, %51 : vector<4x16x128xf32>
    %c0_25 = arith.constant 0 : index
    %c0_26 = arith.constant 0 : index
    %c0_27 = arith.constant 0 : index
    %54 = vector.load %arg5[%c0_25, %c0_26, %c0_27] : memref<4x16x128xf32, #tpu.memory_space<vmem>>, vector<4x16x128xf32>
    tpu.vector_store %arg5[%c0_25, %c0_26, %c0_27], %53 {strides = array<i32>} : memref<4x16x128xf32, #tpu.memory_space<vmem>>, vector<4x16x128xf32>,
    return
  }
  func.func @transform_0(%arg0: i32) -> (i32, i32, i32) {
    %c0_i32 = arith.constant 0 : i32
    %c0_i32_0 = arith.constant 0 : i32
    %c0_i32_1 = arith.constant 0 : i32
    return %arg0, %c0_i32, %c0_i32_0 : i32, i32, i32
  }
  func.func @transform_1(%arg0: i32) -> (i32, i32, i32) {
    %c0_i32 = arith.constant 0 : i32
    %c0_i32_0 = arith.constant 0 : i32
    %c0_i32_1 = arith.constant 0 : i32
    return %arg0, %c0_i32, %c0_i32_0 : i32, i32, i32
  }
  func.func @transform_2(%arg0: i32) -> (i32, i32) {
    %c0_i32 = arith.constant 0 : i32
    %c0_i32_0 = arith.constant 0 : i32
    %c0_i32_1 = arith.constant 0 : i32
    return %c0_i32, %c0_i32_0 : i32, i32
  }
  func.func @transform_3(%arg0: i32) -> (i32, i32) {
    %c0_i32 = arith.constant 0 : i32
    %c0_i32_0 = arith.constant 0 : i32
    %c0_i32_1 = arith.constant 0 : i32
    return %c0_i32, %c0_i32_0 : i32, i32
  }
  func.func @transform_4(%arg0: i32) -> (i32, i32, i32) {
    %c0_i32 = arith.constant 0 : i32
    %c0_i32_0 = arith.constant 0 : i32
    %c0_i32_1 = arith.constant 0 : i32
    return %arg0, %c0_i32, %c0_i32_0 : i32, i32, i32
  }
}

</mosaic_0001>

<bundles_post_ra>
// kernel: tpu_custom_call.1
= control target key start
LH: loop header
LB: loop body
LE: loop exit
PB: predicated region body
PF: predicated region fallthrough
CT: control target
= control target key end

     0   :  { %s23470_s0 = inlined_call_operand.hbm [shape: f32[8,16,128], index: 0, kind: input, shape index: {}]   ;;  %s23471_s1 = inlined_call_operand.hbm [shape: f32[8,16,128], index: 1, kind: input, shape index: {}]   ;;  %s23472_s2 = inlined_call_operand.hbm [shape: f32[16,16], index: 2, kind: input, shape index: {}]   ;;  %s23473_s3 = inlined_call_operand.hbm [shape: f32[128,128], index: 3, kind: input, shape index: {}]   ;;  %s23474_s4 = inlined_call_operand.hbm [shape: f32[8,16,128], index: 4, kind: output, shape index: {}]  }
   0x1   :  { %23595 = sst [smem:[#allocation66_spill]] %s23470_s0 }
   0x2   :  { %9 = vsyncpa [#allocation3], 0 }
   0x3   :  { %11 = vsyncpa [#allocation3 + $0x1], 0 }
   0x4   :  { %12 = vsyncpa [#allocation6], 0 }
   0x5   :  { %14 = vsyncpa [#allocation6 + $0x1], 0 }
   0x6   :  { %15 = vsyncpa [#allocation9], 0 }
   0x7   :  { %16 = vsyncpa [#allocation4], 0 }
   0x8   :  { %18 = vsyncpa [#allocation4 + $0x1], 0  ;;  %s20988_s15 = smov 0   ;;  %s20990_s16 = smov 0  }
   0x9   :  { %s20992_s17 = smov 0   ;;  %s20994_s18 = smov 0  }
   0xa LB: > { %s21009_s19 = sadd.s32 4294967295, %s20952_s18   ;;  %s15395_s20 = sadd.s32 4294967294, %s20952_s18   ;;  %s20952_s18 = sphi %s20994_s18, %s23804_s18   ;;  %s20948_s17 = sphi %s20992_s17, %s23803_s17   ;;  %s20944_s16 = sphi %s20990_s16, %s23802_s16   ;;  %s20940_s15 = sphi %s20988_s15, %s23801_s15  }
   0xb   : > { %p44_p0 = scmp.ne.s32.totalorder %s20944_s16, %s20940_s15  ;;  %p23475_p1 = scmp.eq.s32.totalorder %s21009_s19, 0 }
   0xc   : > { %p142_p3 = scmp.eq.s32.totalorder %s15395_s20, 1  ;;  %p15396_p5 = scmp.ge.s32.totalorder %s20952_s18, 1 }
   0xd   : > { %p21018_p4 = por %p23475_p1, %p44_p0  ;;  %p149_p7 = scmp.lt.s32.totalorder %s20952_s18, 3 }
   0xe   : > { %p21023_p6 = por %p142_p3, %p44_p0  ;;  %s20954_s24 = smov [#allocation7]  }
   0xf   : > { %s23596_s21 = scalar_select %p21018_p4, 1, 0 }
  0x10   : > { %s23597_s22 = scalar_select %p21023_p6, 1, 0 }
  0x11   : > { %p21028_p8 = pnand %p15396_p5, %p149_p7  ;;  %s161_s25 = sshll.u32 %s20954_s24, 4  ;;  %s21032_s25 = int_to_ptr.vmem [resolvable:$true] %s161_s25 }
  0x12   : > { %s20955_s27 = smov [#allocation8]   ;;  %s20758_s5 = scalar_lea.hbm %s23472_s2, 256 }
  0x13   : > { %p20656_p9 = pneg %p21028_p8  ;;  %s174_s28 = sshll.u32 %s20955_s27, 4  ;;  %s21043_s28 = int_to_ptr.vmem [resolvable:$true] %s174_s28 }
  0x14   : > { %p20759_p12 = scmp.ne.s32.totalorder %s23472_s2, %s20758_s5  ;;  %p20765_p5 = scmp.lt.u32.totalorder %s20758_s5, %s23472_s2 }
  0x15   : > { %p21039_p11 = pnand %p20656_p9, %p23475_p1 }
  0x17   : > { %p20760_p13 = pneg %p21039_p11 }
  0x19   : > { %p20761_p0 = pnand %p20760_p13, %p20759_p12 }
  0x1b   : > { %p20762_p3 = pneg %p20761_p0 }
  0x1d   : > { %p20767_p7 = pnand %p20765_p5, %p20762_p3 }
  0x1f   : > { %20770 = shalt.err (!%p20767_p7)
}
  0x20   : > { %s20771_s10 = scalar_lea.vmem %s21032_s25, 256  ;;  %p20779_p2 = scmp.lt.s32.totalorder %s21032_s25, %s21032_s25 }
  0x21   : > { %p20772_p9 = scmp.ne.s32.totalorder %s21032_s25, %s20771_s10  ;;  %p20780_p12 = scmp.lt.s32.totalorder %s20771_s10, %s20771_s10 }
  0x23   : > { %p20774_p10 = pnand %p20772_p9, %p20760_p13  ;;  %p20781_p0 = por %p20780_p12, %p20779_p2 }
  0x25   : > { %p20775_p1 = pneg %p20774_p10 }
  0x27   : > { %p20782_p6 = pnand %p20781_p0, %p20775_p1 }
  0x29   : > { %20785 = shalt.err (!%p20782_p6)
}
  0x2a   : > { %s23476_s11 = smov 128   ;;  %s23478_s12 = smov 8  }
  0x2b   : > { %20659 = dma.hbm_to_vmem [thread:$0]  (!%p21039_p11), %s23472_s2, 256, %s21032_s25, [#allocation6], %s23476_s11, %s23476_s11, %s23478_s12  }
  0x2c   : > { %s20786_s27 = scalar_lea.hbm %s23473_s3, 2048 }
  0x2d   : > { %p20787_p1 = scmp.ne.s32.totalorder %s23473_s3, %s20786_s27  ;;  %p20793_p10 = scmp.lt.u32.totalorder %s20786_s27, %s23473_s3 }
  0x2f   : > { %p20789_p2 = pnand %p20787_p1, %p20760_p13 }
  0x31   : > { %p20790_p6 = pneg %p20789_p2 }
  0x33   : > { %p20795_p3 = pnand %p20793_p10, %p20790_p6 }
  0x35   : > { %20798 = shalt.err (!%p20795_p3)
}
  0x36   : > { %s20799_s25 = scalar_lea.vmem %s21043_s28, 2048  ;;  %p20807_p12 = scmp.lt.s32.totalorder %s21043_s28, %s21043_s28 }
  0x37   : > { %p20800_p5 = scmp.ne.s32.totalorder %s21043_s28, %s20799_s25  ;;  %p20808_p0 = scmp.lt.s32.totalorder %s20799_s25, %s20799_s25 }
  0x39   : > { %p20802_p7 = pnand %p20800_p5, %p20760_p13  ;;  %p20809_p1 = por %p20808_p0, %p20807_p12 }
  0x3b   : > { %p20803_p9 = pneg %p20802_p7 }
  0x3d   : > { %p20810_p2 = pnand %p20809_p1, %p20803_p9 }
  0x3f   : > { %20813 = shalt.err (!%p20810_p2)
}
  0x40   : > { %20662 = dma.hbm_to_vmem [thread:$0]  (!%p21039_p11), %s23473_s3, 2048, %s21043_s28, [#allocation9], %s23476_s11, %s23476_s11, %s23478_s12  }
  0x41   : > { %s21104_s26 = sadd.s32 1, %s20952_s18   ;;  %s31_s9 = sadd.s32 1, %s20948_s17 }
  0x42   : > { %s28_s10 = ssub.s32 %s20952_s18, %s21104_s26  ;;  %p38_p13 = scmp.ne.s32.totalorder %s20948_s17, %s20944_s16 }
  0x43   : > { %p29_p6 = scmp.eq.s32.totalorder %s28_s10, 0  ;;  %p39_p10 = scmp.eq.s32.totalorder %s20952_s18, 0 }
  0x44   : > { %p23600_p3 = scmp.eq.s32.totalorder %s21009_s19, 1  ;;  %p20676_p7 = scmp.lt.s32.totalorder %s20952_s18, 2 }
  0x45   : > { %s21120_s14 = scalar_select %p29_p6, %s20948_s17, %s31_s9  }
  0x46   : > { %p21114_p5 = por %p23600_p3, %p38_p13  ;;  %p40_p9 = por %p39_p10, %p38_p13 }
  0x47   : > { %s188_s20 = sand.u32 1, %s20948_s17   ;;  %s15421_s28 = sshll.u32 %s20952_s18, 10 }
  0x48   : > { %s23601_s13 = scalar_select %p21114_p5, 1, 0 }
  0x49   : > { %s15400_s24 = sshll.u32 %s188_s20, 6  ;;  %s23602_s0 = sld [smem:[#allocation66_spill]] }
  0x4a   : > { %s192_s5 = scalar_lea.vmem [#allocation2], %s15400_s24  ;;  %p21131_p11 = pnand %p20676_p7, %p40_p9 }
  0x4b   : > { %s200_s6 = sshll.u32 %s192_s5, 4  ;;  %s21138_s9 = scalar_lea.hbm %s23471_s1, %s15421_s28  ;;  %s21129_s6 = int_to_ptr.vmem [resolvable:$true] %s200_s6 }
  0x4c   : > { %s214_s10 = scalar_lea.vmem [#allocation5], %s15400_s24  ;;  %s21142_s29 = scalar_lea.sflag [#allocation3], %s188_s20 }
  0x4d   : > { %s21140_s27 = sshll.u32 %s214_s10, 4  ;;  %p20816_p0 = pneg %p21131_p11  ;;  %s21174_s27 = int_to_ptr.vmem [resolvable:$true] %s21140_s27 }
  0x4f   : > { %s21127_s30 = scalar_lea.hbm %s23602_s0, %s15421_s28  ;;  %s20819_s7 = scalar_lea.hbm %s23602_s0, 2048 }
  0x50   : > { %s20814_s5 = scalar_lea.hbm %s21127_s30, 1024  ;;  %p20820_p13 = scmp.lt.u32.totalorder %s21127_s30, %s23602_s0 }
  0x51   : > { %p20815_p12 = scmp.ne.s32.totalorder %s21127_s30, %s20814_s5  ;;  %p20821_p6 = scmp.lt.u32.totalorder %s20819_s7, %s20814_s5 }
  0x52   : > { %p20823_p3 = scmp.lt.u32.totalorder %s20814_s5, %s21127_s30 }
  0x53   : > { %p20817_p1 = pnand %p20816_p0, %p20815_p12  ;;  %p20822_p10 = por %p20821_p6, %p20820_p13 }
  0x55   : > { %p20818_p2 = pneg %p20817_p1  ;;  %p20824_p7 = por %p20823_p3, %p20822_p10 }
  0x57   : > { %p20825_p9 = pnand %p20824_p7, %p20818_p2 }
  0x59   : > { %20828 = shalt.err (!%p20825_p9)
}
  0x5a   : > { %s20829_s20 = scalar_lea.vmem %s21129_s6, 1024  ;;  %s20958_s11 = smov [#allocation2]  }
  0x5b   : > { %p20830_p12 = scmp.ne.s32.totalorder %s21129_s6, %s20829_s20  ;;  %s20834_s12 = sshll.u32 %s20958_s11, 4  ;;  %s20835_s12 = int_to_ptr.vmem [resolvable:$false] %s20834_s12 }
  0x5c   : > { %s20836_s24 = scalar_lea.vmem %s20835_s12, 2048  ;;  %p20837_p4 = scmp.lt.s32.totalorder %s21129_s6, %s20835_s12 }
  0x5d   : > { %p20832_p1 = pnand %p20830_p12, %p20816_p0  ;;  %p20838_p13 = scmp.lt.s32.totalorder %s20836_s24, %s20829_s20 }
  0x5f   : > { %p20833_p5 = pneg %p20832_p1  ;;  %p20839_p6 = por %p20838_p13, %p20837_p4 }
  0x61   : > { %p20840_p10 = pnand %p20839_p6, %p20833_p5 }
  0x63   : > { %20843 = shalt.err (!%p20840_p10)
}
  0x64   : > { %s23604_s10 = smov 8   ;;  %s23605_s5 = smov 128  }
  0x65   : > { %20666 = dma.hbm_to_vmem [thread:$0]  (!%p21131_p11), %s21127_s30, 1024, %s21129_s6, %s21142_s29, %s23605_s5, %s23605_s5, %s23604_s10  }
  0x66   : > { %s210_s7 = sand.u32 1, %s20952_s18   ;;  %s20844_s28 = scalar_lea.hbm %s21138_s9, 1024 }
  0x67   : > { %s21177_s8 = scalar_lea.sflag [#allocation6], %s210_s7  ;;  %p20845_p4 = scmp.ne.s32.totalorder %s21138_s9, %s20844_s28 }
  0x68   : > { %s20849_s12 = scalar_lea.hbm %s23471_s1, 2048  ;;  %p20850_p3 = scmp.lt.u32.totalorder %s21138_s9, %s23471_s1 }
  0x69   : > { %p20847_p5 = pnand %p20845_p4, %p20816_p0  ;;  %p20851_p7 = scmp.lt.u32.totalorder %s20849_s12, %s20844_s28 }
  0x6a   : > { %p20853_p12 = scmp.lt.u32.totalorder %s20844_s28, %s21138_s9 }
  0x6b   : > { %p20848_p2 = pneg %p20847_p5  ;;  %p20852_p9 = por %p20851_p7, %p20850_p3 }
  0x6d   : > { %p20854_p1 = por %p20853_p12, %p20852_p9 }
  0x6f   : > { %p20855_p13 = pnand %p20854_p1, %p20848_p2 }
  0x71   : > { %20858 = shalt.err (!%p20855_p13)
}
  0x72   : > { %s20859_s30 = scalar_lea.vmem %s21174_s27, 1024  ;;  %s20959_s6 = smov [#allocation5]  }
  0x73   : > { %p20860_p6 = scmp.ne.s32.totalorder %s21174_s27, %s20859_s30  ;;  %s20864_s29 = sshll.u32 %s20959_s6, 4  ;;  %s20865_s29 = int_to_ptr.vmem [resolvable:$false] %s20864_s29 }
  0x74   : > { %s20866_s0 = scalar_lea.vmem %s20865_s29, 2048  ;;  %p20867_p5 = scmp.lt.s32.totalorder %s21174_s27, %s20865_s29 }
  0x75   : > { %p20862_p10 = pnand %p20860_p6, %p20816_p0  ;;  %p20868_p3 = scmp.lt.s32.totalorder %s20866_s0, %s20859_s30 }
  0x77   : > { %p20863_p4 = pneg %p20862_p10  ;;  %p20869_p7 = por %p20868_p3, %p20867_p5 }
  0x79   : > { %p20870_p9 = pnand %p20869_p7, %p20863_p4 }
  0x7b   : > { %20873 = shalt.err (!%p20870_p9)
}
  0x7c   : > { %20669 = dma.hbm_to_vmem [thread:$0]  (!%p21131_p11), %s21138_s9, 1024, %s21174_s27, %s21177_s8, %s23605_s5, %s23605_s5, %s23604_s10  }
  0x7d   : > { %234 = sbr.rel (%p21028_p8) target bundleno = 2508 (0x9cc), region = 36 }
  0x84   : > { %s21209_s7 = sand.u32 1, %s20944_s16   ;;  %p23606_p0 = scmp.ne.s32.totalorder %s23596_s21, 0 }
  0x85   : > { %s21212_s28 = sshll.u32 %s21209_s7, 6  ;;  %s237_s25 = scalar_lea.sflag [#allocation3], %s21209_s7 }
  0x86   : > { %s21216_s20 = scalar_lea.vmem [#allocation2], %s21212_s28 }
  0x87   : > { %20919 = dma.done.wait (%p23606_p0), %s237_s25, 1024  }
  0x88   : > { %20921 = vsyncadd (%p23606_p0), %s237_s25, 4294966272  ;;  %s245_s23 = sand.u32 1, %s21009_s19   ;;  %s21224_s27 = scalar_lea.vmem [#allocation5], %s21212_s28 }
  0x89   : > { %s246_s9 = scalar_lea.sflag [#allocation6], %s245_s23 }
  0x8a   : > { %20923 = dma.done.wait (%p23606_p0), %s246_s9, 1024  }
  0x8b   : > { %20925 = vsyncadd (%p23606_p0), %s246_s9, 4294966272  ;;  %p23607_p8 = scmp.eq.s32.totalorder %s21009_s19, 0 }
  0x8d   : > { %20927 = dma.done.wait (%p23607_p8), [#allocation6], 256   ;;  %p23608_p11 = pmov %p23607_p8 }
  0x8e   : > { %p23609_p2 = pmov %p23607_p8 }
  0x8f   : > { %20929 = vsyncadd (%p23608_p11), [#allocation6], 4294967040 }
  0x90   : > { %20931 = dma.done.wait (%p23609_p2), [#allocation9], 2048   ;;  %p23610_p12 = pmov %p23609_p2 }
  0x91   : > { %v306_v0 = vld [vmem:[#allocation8] sm:$0xff]  ;;  %v307_v1 = vld [vmem:[#allocation8 + $0x8] sm:$0xff]  ;;  %v308_v2 = vld [vmem:[#allocation8 + $0x10] sm:$0xff]  ;;  %vm1266_vm0 = vcmask 130048   ;;  %s23391_s21 = scalar_lea.vmem [#allocation10], %s21212_s28  ;;  %s15425_s10 = sshll.u32 %s21009_s19, 10 }
  0x92   : > { %20933 = vsyncadd (%p23610_p12), [#allocation9], 4294965248  ;;  %v325_v3 = vand.u32 4294901760, %v306_v0  ;;  %v328_v4 = vand.u32 4294901760, %v307_v1  ;;  %v309_v5 = vld [vmem:[#allocation8 + $0x18] sm:$0xff]  ;;  %v331_v6 = vand.u32 4294901760, %v308_v2  ;;  %s23422_s12 = scalar_lea.hbm %s23474_s4, %s15425_s10 }
  0x93   : > { %v310_v7 = vld [vmem:[#allocation8 + $0x20] sm:$0xff]  ;;  %v311_v8 = vld [vmem:[#allocation8 + $0x28] sm:$0xff]  ;;  %v334_v9 = vand.u32 4294901760, %v309_v5  ;;  %v312_v16 = vld [vmem:[#allocation8 + $0x30] sm:$0xff]  ;;  %s15280_s5 = sshll.u32 %s23391_s21, 4  ;;  %s15266_s24 = scalar_lea.sflag [#allocation4], %s21209_s7  ;;  %s23424_s5 = int_to_ptr.vmem [resolvable:$true] %s15280_s5 }
  0x94   : > { %v337_v10 = vand.u32 4294901760, %v310_v7  ;;  %v340_v11 = vand.u32 4294901760, %v311_v8  ;;  %v21238_v12 = vpack.c.bf16 %v328_v4, %v325_v3  ;;  %v21240_v13 = vsub.f32 %v306_v0, %v325_v3  ;;  %v313_v17 = vld [vmem:[#allocation8 + $0x38] sm:$0xff]  ;;  %v314_v37 = vld [vmem:[#allocation8 + $0x40] sm:$0xff]  ;;  %v315_v38 = vld [vmem:[#allocation8 + $0x48] sm:$0xff]  ;;  %s20874_s19 = scalar_lea.vmem %s23424_s5, 1024 }
  0x95   : > { %v21242_v14 = vsub.f32 %v307_v1, %v328_v4  ;;  %v21244_v15 = vsub.f32 %v308_v2, %v331_v6  ;;  %v21246_v18 = vpack.c.bf16 %v334_v9, %v331_v6  ;;  %v21248_v19 = vsub.f32 %v309_v5, %v334_v9  ;;  %v21285_v43 = vld [vmem:[#allocation8 + $0x50] sm:$0xff]  ;;  %v317_v52 = vld [vmem:[#allocation8 + $0x58] sm:$0xff]  ;;  %v318_v57 = vld [vmem:[#allocation8 + $0x60] sm:$0xff]  ;;  %p20875_p1 = scmp.ne.s32.totalorder %s23424_s5, %s20874_s19  ;;  %p23798_p13 = scmp.ne.s32.totalorder %s23601_s13, 0 }
  0x96   : > { %v21250_v20 = vsub.f32 %v310_v7, %v337_v10  ;;  %v488_v21 = vand.u32 4294901760, %v21240_v13  ;;  %v21255_v24 = vsub.f32 %v311_v8, %v340_v11  ;;  %18787 = vmatprep.subr.bf16.mxu1 %v21238_v12  ;;  %v343_v27 = vand.u32 4294901760, %v312_v16  ;;  %v319_v58 = vld [vmem:[#allocation8 + $0x68] sm:$0xff]  ;;  %s20960_s30 = smov [#allocation10]  }
  0x97   : > { %v495_v22 = vand.u32 4294901760, %v21242_v14  ;;  %v502_v23 = vand.u32 4294901760, %v21244_v15  ;;  %v509_v25 = vand.u32 4294901760, %v21248_v19  ;;  %v346_v28 = vand.u32 4294901760, %v313_v17  ;;  %18789 = vmatpush3.bf16.msra.mxu1 %v21238_v12  ;;  %p20876_p6 = pnand %p20875_p1, %p23798_p13  ;;  %s20878_s6 = sshll.u32 %s20960_s30, 4  ;;  %s20879_s6 = int_to_ptr.vmem [resolvable:$false] %s20878_s6 }
  0x98   : > { %v516_v26 = vand.u32 4294901760, %v21250_v20  ;;  %v489_v29 = vsub.f32 %v21240_v13, %v488_v21  ;;  %v523_v32 = vand.u32 4294901760, %v21255_v24  ;;  %18791 = vmatprep.subr.bf16.mxu1 %v21246_v18  ;;  %v21275_v34 = vpack.c.bf16 %v340_v11, %v337_v10  ;;  %v320_v10 = vld [vmem:[#allocation8 + $0x70] sm:$0xff]  ;;  %s20880_s29 = scalar_lea.vmem %s20879_s6, 2048  ;;  %p20881_p4 = scmp.lt.s32.totalorder %s23424_s5, %s20879_s6 }
  0x99   : > { %v496_v30 = vsub.f32 %v21242_v14, %v495_v22  ;;  %v503_v31 = vsub.f32 %v21244_v15, %v502_v23  ;;  %v510_v33 = vsub.f32 %v21248_v19, %v509_v25  ;;  %v21280_v36 = vsub.f32 %v312_v16, %v343_v27  ;;  %p20877_p10 = pneg %p20876_p6  ;;  %p20882_p5 = scmp.lt.s32.totalorder %s20880_s29, %s20874_s19 }
  0x9a   : > { %v517_v35 = vsub.f32 %v21250_v20, %v516_v26  ;;  %v490_v39 = vand.u32 4294901760, %v489_v29  ;;  %v524_v42 = vsub.f32 %v21255_v24, %v523_v32  ;;  %v21288_v47 = vsub.f32 %v313_v17, %v346_v28 }
  0x9b   : > { %v497_v40 = vand.u32 4294901760, %v496_v30  ;;  %v504_v41 = vand.u32 4294901760, %v503_v31  ;;  %v511_v44 = vand.u32 4294901760, %v510_v33  ;;  %v530_v46 = vand.u32 4294901760, %v21280_v36  ;;  %18793 = vmatpush3.bf16.msra.mxu1 %v21246_v18  ;;  %p20883_p3 = por %p20882_p5, %p20881_p4 }
  0x9c   : > { %v518_v45 = vand.u32 4294901760, %v517_v35  ;;  %v525_v49 = vand.u32 4294901760, %v524_v42  ;;  %v349_v50 = vand.u32 4294901760, %v314_v37  ;;  %v352_v51 = vand.u32 4294901760, %v315_v38  ;;  %18795 = vmatprep.subr.bf16.mxu1 %v21275_v34  ;;  %v290_v35 = vld [vmem:[%s21216_s20] sm:$0xff] }
  0x9d   : > { %v21291_v48 = vpack.c.bf16 %v497_v40, %v490_v39  ;;  %v21294_v53 = vpack.c.bf16 %v511_v44, %v504_v41  ;;  %v531_v54 = vsub.f32 %v21280_v36, %v530_v46  ;;  %v537_v55 = vand.u32 4294901760, %v21288_v47  ;;  %p20884_p7 = pnand %p20883_p3, %p20877_p10 }
  0x9e   : > { %v355_v56 = vand.u32 4294901760, %v21285_v43  ;;  %v21302_v59 = vpack.c.bf16 %v525_v49, %v518_v45  ;;  %v21304_v60 = vpack.c.bf16 %v346_v28, %v343_v27  ;;  %v21306_v61 = vsub.f32 %v314_v37, %v349_v50  ;;  %v321_v28 = vld [vmem:[#allocation8 + $0x78] sm:$0xff] }
  0x9f   : > { %18819 = vmatprep.subr.bf16.mxu0 %v21291_v48  ;;  %v21308_v62 = vsub.f32 %v315_v38, %v352_v51  ;;  %v532_v63 = vand.u32 4294901760, %v531_v54  ;;  %v538_v0 = vsub.f32 %v21288_v47, %v537_v55  ;;  %v358_v1 = vand.u32 4294901760, %v317_v52  ;;  %18797 = vmatpush3.bf16.msra.mxu1 %v21275_v34 }
  0xa0   : > { %23611 = vst [vmem:[#allocation16_spill] sm:$0xff] %v21302_v59  ;;  %18821 = vmatpush3.bf16.msra.mxu0 %v21291_v48  ;;  %v21315_v2 = vsub.f32 %v21285_v43, %v355_v56  ;;  %v544_v3 = vand.u32 4294901760, %v21306_v61  ;;  %v361_v5 = vand.u32 4294901760, %v318_v57  ;;  %v364_v6 = vand.u32 4294901760, %v319_v58  ;;  %18799 = vmatprep.subr.bf16.mxu1 %v21304_v60 }
  0xa1   : > { %18823 = vmatprep.subr.bf16.mxu0 %v21294_v53  ;;  %v23488_v4 = vand.u32 4294901760, %v21308_v62  ;;  %v539_v7 = vand.u32 4294901760, %v538_v0  ;;  %v21323_v9 = vsub.f32 %v317_v52, %v358_v1  ;;  %v21325_v11 = vpack.c.bf16 %v352_v51, %v349_v50 }
  0xa2   : > { %v23487_v8 = vand.u32 4294901760, %v21315_v2  ;;  %v545_v16 = vsub.f32 %v21306_v61, %v544_v3  ;;  %v21333_v27 = vsub.f32 %v318_v57, %v361_v5  ;;  %v21342_v33 = vsub.f32 %v319_v58, %v364_v6 }
  0xa3   : > { %v552_v17 = vsub.f32 %v21308_v62, %v23488_v4  ;;  %v21336_v29 = vpack.c.bf16 %v539_v7, %v532_v63  ;;  %v23486_v31 = vand.u32 4294901760, %v21323_v9  ;;  %18801 = vmatpush3.bf16.msra.mxu1 %v21304_v60  ;;  %v367_v40 = vand.u32 4294901760, %v320_v10 }
  0xa4   : > { %18825 = vmatpush3.bf16.msra.mxu0 %v21294_v53  ;;  %v559_v30 = vsub.f32 %v21315_v2, %v23487_v8  ;;  %v546_v37 = vand.u32 4294901760, %v545_v16  ;;  %v23485_v39 = vand.u32 4294901760, %v21333_v27  ;;  %18803 = vmatprep.subr.bf16.mxu1 %v21325_v11  ;;  %v23484_v42 = vand.u32 4294901760, %v21342_v33 }
  0xa5   : > { %23612 = vst [vmem:[#allocation17_spill] sm:$0xff] %v21336_v29  ;;  %18827 = vmatprep.subr.bf16.mxu0 %v21302_v59  ;;  %v553_v38 = vand.u32 4294901760, %v552_v17  ;;  %v566_v41 = vsub.f32 %v21323_v9, %v23486_v31  ;;  %v370_v43 = vand.u32 4294901760, %v321_v28  ;;  %v21356_v45 = vsub.f32 %v320_v10, %v367_v40  ;;  %v291_v17 = vld [vmem:[%s21216_s20 + $0x8] sm:$0xff] }
  0xa6   : > { %v573_v44 = vsub.f32 %v21333_v27, %v23485_v39  ;;  %v21358_v49 = vand.u32 4294901760, %v290_v35  ;;  %v21361_v50 = vpack.c.bf16 %v358_v1, %v355_v56  ;;  %v580_v51 = vsub.f32 %v21342_v33, %v23484_v42 }
  0xa7   : > { %v21366_v52 = vsub.f32 %v321_v28, %v370_v43  ;;  %18805 = vmatpush3.bf16.msra.mxu1 %v21325_v11  ;;  %v21370_v54 = vpack.c.bf16 %v553_v38, %v546_v37  ;;  %v560_v57 = vand.u32 4294901760, %v559_v30  ;;  %v567_v58 = vand.u32 4294901760, %v566_v41  ;;  %v292_v28 = vld [vmem:[%s21216_s20 + $0x10] sm:$0xff]  ;;  %v293_v30 = vld [vmem:[%s21216_s20 + $0x18] sm:$0xff]  ;;  %v294_v37 = vld [vmem:[%s21216_s20 + $0x20] sm:$0xff] }
  0xa8   : > { %18829 = vmatpush3.bf16.msra.mxu0 %v21302_v59  ;;  %v23483_v56 = vand.u32 4294901760, %v21356_v45  ;;  %16702 = vmatprep.mubr.f32.mxu0 %v21358_v49  ;;  %v21376_v0 = vpack.c.bf16 %v364_v6, %v361_v5  ;;  %v574_v1 = vand.u32 4294901760, %v573_v44  ;;  %v581_v7 = vand.u32 4294901760, %v580_v51  ;;  %v295_v38 = vld [vmem:[%s21216_s20 + $0x28] sm:$0xff]  ;;  %v296_v41 = vld [vmem:[%s21216_s20 + $0x30] sm:$0xff] }
  0xa9   : > { %18831 = vmatprep.subr.bf16.mxu0 %v21336_v29  ;;  %23613 = vst [vmem:[#allocation18_spill] sm:$0xff] %v21370_v54  ;;  %v23482_v63 = vand.u32 4294901760, %v21366_v52  ;;  %18807 = vmatprep.subr.bf16.mxu1 %v21361_v50  ;;  %v21390_v5 = vpack.c.bf16 %v567_v58, %v560_v57  ;;  %v21396_v44 = vpack.c.bf16 %v370_v43, %v367_v40  ;;  %v21402_v42 = vand.u32 4294901760, %v292_v28 }
  0xaa   : > { %v587_v10 = vsub.f32 %v21356_v45, %v23483_v56  ;;  %v21400_v56 = vand.u32 4294901760, %v291_v17  ;;  %v21404_v39 = vand.u32 4294901760, %v293_v30  ;;  %v21407_v57 = vand.u32 4294901760, %v294_v37 }
  0xab   : > { %v594_v16 = vsub.f32 %v21366_v52, %v23482_v63  ;;  %18809 = vmatpush3.bf16.msra.mxu1 %v21361_v50  ;;  %23614 = vst [vmem:[#allocation19_spill] sm:$0xff] %v21390_v5  ;;  %v21398_v63 = vpack.c.bf16 %v581_v7, %v574_v1  ;;  %v21409_v58 = vand.u32 4294901760, %v295_v38  ;;  %v21414_v40 = vsub.f32 %v290_v35, %v21358_v49  ;;  %v297_v1 = vld [vmem:[%s21216_s20 + $0x38] sm:$0xff] }
  0xac   : > { %18833 = vmatpush3.bf16.msra.mxu0 %v21336_v29  ;;  %v588_v6 = vand.u32 4294901760, %v587_v10  ;;  %18811 = vmatprep.subr.bf16.mxu1 %v21376_v0  ;;  %v21411_v10 = vand.u32 4294901760, %v296_v41  ;;  %v21422_v7 = vsub.f32 %v291_v17, %v21400_v56  ;;  %v21428_v31 = vsub.f32 %v293_v30, %v21404_v39 }
  0xad   : > { %18835 = vmatprep.subr.bf16.mxu0 %v21370_v54  ;;  %v595_v51 = vand.u32 4294901760, %v594_v16  ;;  %v21425_v16 = vsub.f32 %v292_v28, %v21402_v42  ;;  %v21431_v8 = vsub.f32 %v294_v37, %v21407_v57  ;;  %v21434_v35 = vsub.f32 %v295_v38, %v21409_v58 }
  0xae   : > { %v23489_v4 = vand.u32 4294901760, %v21414_v40  ;;  %v21441_v17 = vpack.c.bf16 %v495_v22, %v488_v21  ;;  %v23494_v28 = vand.u32 4294901760, %v21422_v7  ;;  %v21449_v30 = vpack.c.bf16 %v509_v25, %v502_v23 }
  0xaf   : > { %18813 = vmatpush3.bf16.msra.mxu1 %v21376_v0  ;;  %v21418_v43 = vpack.c.bf16 %v595_v51, %v588_v6  ;;  %v21455_v6 = vpack.c.bf16 %v523_v32, %v516_v26  ;;  %v21461_v21 = vpack.c.bf16 %v537_v55, %v530_v46  ;;  %v21464_v22 = vand.u32 4294901760, %v297_v1 }
  0xb0   : > { %18837 = vmatpush3.bf16.msra.mxu0 %v21370_v54  ;;  %23615 = vst [vmem:[#allocation20_spill] sm:$0xff] %v21441_v17  ;;  %18815 = vmatprep.subr.bf16.mxu1 %v21396_v44  ;;  %23616 = vst [vmem:[#allocation21_spill] sm:$0xff] %v21449_v30  ;;  %v21467_v37 = vsub.f32 %v296_v41, %v21411_v10  ;;  %v408_v23 = vsub.f32 %v21414_v40, %v23489_v4  ;;  %v23619_v25 = vand.u32 4294901760, %v21308_v62 }
  0xb1   : > { %18839 = vmatprep.subr.bf16.mxu0 %v21390_v5  ;;  %23617 = vst [vmem:[#allocation22_spill] sm:$0xff] %v21455_v6  ;;  %23618 = vst [vmem:[#allocation23_spill] sm:$0xff] %v21461_v21  ;;  %v418_v32 = vsub.f32 %v21422_v7, %v23494_v28  ;;  %v23621_v38 = vand.u32 4294901760, %v21315_v2  ;;  %v23622_v41 = vand.u32 4294901760, %v21323_v9  ;;  %v23625_v54 = vand.u32 4294901760, %v21342_v33 }
  0xb2   : > { %v21477_v26 = vpack.c.bf16 %v23619_v25, %v544_v3  ;;  %v409_v3 = vand.u32 4294901760, %v408_v23  ;;  %v23499_v25 = vand.u32 4294901760, %v21431_v8  ;;  %v23627_v55 = vand.u32 4294901760, %v21356_v45 }
  0xb3   : > { %18817 = vmatpush3.bf16.msra.mxu1 %v21396_v44  ;;  %v21490_v51 = vpack.c.bf16 %v23622_v41, %v23621_v38  ;;  %v419_v46 = vand.u32 4294901760, %v418_v32  ;;  %v23628_v29 = vand.u32 4294901760, %v21366_v52  ;;  %v23630_v38 = vand.u32 4294901760, %v21425_v16 }
  0xb4   : > { %18841 = vmatpush3.bf16.msra.mxu0 %v21390_v5  ;;  %23620 = vst [vmem:[#allocation24_spill] sm:$0xff] %v21477_v26  ;;  %20226 = vmatprep.subr.bf16.mxu1 %v21238_v12  ;;  %v23624_v5 = vand.u32 4294901760, %v21333_v27  ;;  %v23631_v41 = vand.u32 4294901760, %v21428_v31  ;;  %v21523_v32 = vsub.f32 %v297_v1, %v21464_v22 }
  0xb5   : > { %18843 = vmatprep.subr.bf16.mxu0 %v21398_v63  ;;  %23623 = vst [vmem:[#allocation25_spill] sm:$0xff] %v21490_v51  ;;  %v21504_v59 = vpack.c.bf16 %v23628_v29, %v23627_v55  ;;  %v428_v23 = vsub.f32 %v21425_v16, %v23630_v38  ;;  %16658 = vmatprep.mubr.f32.mxu1 %v409_v3 }
  0xb6   : > { %v21498_v28 = vpack.c.bf16 %v23625_v54, %v23624_v5  ;;  %v438_v4 = vsub.f32 %v21428_v31, %v23631_v41  ;;  %v21515_v54 = vpack.c.bf16 %v21242_v14, %v21240_v13  ;;  %v467_v5 = vand.u32 4294901760, %v21467_v37  ;;  %16659 = vmatmul.mubr.f32.vlgmr.msra.gmra.mrb[0].mxu1 %v419_v46 }
  0xb7   : > { %23629 = vst [vmem:[#allocation27_spill] sm:$0xff] %v21504_v59  ;;  %v448_v29 = vsub.f32 %v21431_v8, %v23499_v25  ;;  %v429_v55 = vand.u32 4294901760, %v428_v23  ;;  %v23632_v41 = vand.u32 4294901760, %v21434_v35  ;;  %20234 = vmatpush3.bf16.msra.mxu1 %v21238_v12  ;;  %v477_v25 = vand.u32 4294901760, %v21523_v32 }
  0xb8   : > { %23626 = vst [vmem:[#allocation26_spill] sm:$0xff] %v21498_v28  ;;  %18845 = vmatpush3.bf16.msra.mxu0 %v21398_v63  ;;  %v439_v38 = vand.u32 4294901760, %v438_v4  ;;  %v468_v3 = vsub.f32 %v21467_v37, %v467_v5  ;;  %20227 = vmatprep.subr.bf16.mxu1 %v21246_v18  ;;  %v21538_v4 = vpack.c.bf16 %v21248_v19, %v21244_v15 }
  0xb9   : > { %18847 = vmatprep.subr.bf16.mxu0 %v21418_v43  ;;  %v458_v13 = vsub.f32 %v21434_v35, %v23632_v41  ;;  %v449_v14 = vand.u32 4294901760, %v448_v29  ;;  %16661 = vmatprep.mubr.f32.mxu1 %v429_v55  ;;  %v478_v46 = vsub.f32 %v21523_v32, %v477_v25  ;;  %v21551_v15 = vpack.c.bf16 %v21255_v24, %v21250_v20 }
  0xba   : > { %16662 = vmatmul.mubr.f32.gmra.mrb[2].mxu1 %v439_v38  ;;  %v469_v23 = vand.u32 4294901760, %v468_v3  ;;  %v21561_v29 = vpack.c.bf16 %v21288_v47, %v21280_v36  ;;  %v21572_v20 = vpack.c.bf16 %v21308_v62, %v21306_v61  ;;  %v21582_v24 = vpack.c.bf16 %v21323_v9, %v21315_v2 }
  0xbb   : > { %v459_v1 = vand.u32 4294901760, %v458_v13  ;;  %20235 = vmatpush3.bf16.msra.mxu1 %v21246_v18  ;;  %16664 = vmatprep.mubr.f32.mxu1 %v449_v14  ;;  %v479_v19 = vand.u32 4294901760, %v478_v46  ;;  %v21590_v36 = vpack.c.bf16 %v21342_v33, %v21333_v27  ;;  %v21598_v47 = vpack.c.bf16 %v21366_v52, %v21356_v45  ;;  %v322_v52 = vld [vmem:[#allocation7] sm:$0xff] }
  0xbc   : > { %18849 = vmatpush3.bf16.msra.mxu0 %v21418_v43  ;;  %20228 = vmatprep.subr.bf16.mxu1 %v21275_v34  ;;  %v23633_v61 = vand.u32 4294901760, %v21414_v40  ;;  %v23634_v62 = vand.u32 4294901760, %v21422_v7  ;;  %v23635_v2 = vand.u32 4294901760, %v21425_v16  ;;  %v23636_v9 = vand.u32 4294901760, %v21428_v31 }
  0xbd   : > { %18851 = vmatprep.subr.bf16.mxu0 %v21515_v54  ;;  %v23637_v27 = vand.u32 4294901760, %v21431_v8  ;;  %v23638_v33 = vmov %v23632_v41 }
  0xbe   : > { %16665 = vmatmul.mubr.f32.gmra.mrb[4].mxu1 %v459_v1 }
  0xbf   : > { %16703 = vmatmul.mubr.f32.vlgmr.msra.gmra.mrb[0].mxu0 %v21400_v56  ;;  %20236 = vmatpush3.bf16.msra.mxu1 %v21275_v34 }
  0xc0   : > { %18853 = vmatpush3.bf16.msra.mxu0 %v21515_v54  ;;  %16705 = vmatprep.mubr.f32.mxu0 %v21402_v42 }
  0xc1   : > { %18855 = vmatprep.subr.bf16.mxu0 %v21538_v4  ;;  %16667 = vmatprep.mubr.f32.mxu1 %v469_v23 }
  0xc2   : > { %20229 = vmatprep.subr.bf16.mxu1 %v21304_v60  ;;  %16668 = vmatmul.mubr.f32.gmra.mrb[6].mxu1 %v479_v19 }
  0xc3   : > { %16706 = vmatmul.mubr.f32.gmra.mrb[2].mxu0 %v21404_v39  ;;  %20237 = vmatpush3.bf16.msra.mxu1 %v21304_v60 }
  0xc4   : > { %18857 = vmatpush3.bf16.msra.mxu0 %v21538_v4  ;;  %16708 = vmatprep.mubr.f32.mxu0 %v21407_v57 }
  0xc5   : > { %18859 = vmatprep.subr.bf16.mxu0 %v21551_v15  ;;  %16884 = vmatprep.mubr.f32.mxu1 %v21407_v57 }
  0xc6   : > { %20230 = vmatprep.subr.bf16.mxu1 %v21325_v11 }
  0xc7   : > { %16709 = vmatmul.mubr.f32.gmra.mrb[4].mxu0 %v21409_v58  ;;  %20238 = vmatpush3.bf16.msra.mxu1 %v21325_v11 }
  0xc8   : > { %18861 = vmatpush3.bf16.msra.mxu0 %v21551_v15  ;;  %16711 = vmatprep.mubr.f32.mxu0 %v21411_v10 }
  0xc9   : > { %18863 = vmatprep.subr.bf16.mxu0 %v21561_v29  ;;  %20231 = vmatprep.subr.bf16.mxu1 %v21361_v50 }
  0xcb   : > { %16712 = vmatmul.mubr.f32.gmra.mrb[6].mxu0 %v21464_v22  ;;  %20239 = vmatpush3.bf16.msra.mxu1 %v21361_v50 }
  0xcc   : > { %18865 = vmatpush3.bf16.msra.mxu0 %v21561_v29  ;;  %16746 = vmatprep.mubr.f32.mxu0 %v21414_v40 }
  0xcd   : > { %18867 = vmatprep.subr.bf16.mxu0 %v21572_v20  ;;  %20232 = vmatprep.subr.bf16.mxu1 %v21376_v0 }
  0xcf   : > { %20240 = vmatpush3.bf16.msra.mxu1 %v21376_v0 }
  0xd0   : > { %18869 = vmatpush3.bf16.msra.mxu0 %v21572_v20  ;;  %20233 = vmatprep.subr.bf16.mxu1 %v21396_v44 }
  0xd1   : > { %18871 = vmatprep.subr.bf16.mxu0 %v21582_v24 }
  0xd3   : > { %20241 = vmatpush3.bf16.msra.mxu1 %v21396_v44 }
  0xd4   : > { %18873 = vmatpush3.bf16.msra.mxu0 %v21582_v24 }
  0xd5   : > { %18875 = vmatprep.subr.bf16.mxu0 %v21590_v36 }
  0xd6   : > { %16885 = vmatmul.mubr.f32.vlgmr.msra.gmra.mrb[8].mxu1 %v21409_v58 }
  0xd7   : > { %16887 = vmatprep.mubr.f32.mxu1 %v21411_v10 }
  0xd8   : > { %18877 = vmatpush3.bf16.msra.mxu0 %v21590_v36 }
  0xd9   : > { %18879 = vmatprep.subr.bf16.mxu0 %v21598_v47 }
  0xda   : > { %16888 = vmatmul.mubr.f32.gmra.mrb[10].mxu1 %v21464_v22 }
  0xdc   : > { %18881 = vmatpush3.bf16.msra.mxu0 %v21598_v47 }
  0xdd   : > { %18883 = vmatprep.subr.bf16.mxu0 %v21238_v12 }
  0xdf   : > { %16747 = vmatmul.mubr.f32.vlgmr.msra.gmra.mrb[0].mxu0 %v21422_v7 }
  0xe0   : > { %18885 = vmatpush3.bf16.msra.mxu0 %v21238_v12  ;;  %16749 = vmatprep.mubr.f32.mxu0 %v21425_v16 }
  0xe1   : > { %18887 = vmatprep.subr.bf16.mxu0 %v21246_v18 }
  0xe3   : > { %16750 = vmatmul.mubr.f32.gmra.mrb[2].mxu0 %v21428_v31 }
  0xe4   : > { %18889 = vmatpush3.bf16.msra.mxu0 %v21246_v18  ;;  %16752 = vmatprep.mubr.f32.mxu0 %v21431_v8 }
  0xe5   : > { %18891 = vmatprep.subr.bf16.mxu0 %v21275_v34 }
  0xe7   : > { %16753 = vmatmul.mubr.f32.gmra.mrb[4].mxu0 %v21434_v35 }
  0xe8   : > { %18893 = vmatpush3.bf16.msra.mxu0 %v21275_v34  ;;  %16755 = vmatprep.mubr.f32.mxu0 %v21467_v37 }
  0xe9   : > { %18895 = vmatprep.subr.bf16.mxu0 %v21304_v60 }
  0xeb   : > { %16756 = vmatmul.mubr.f32.gmra.mrb[6].mxu0 %v21523_v32 }
  0xec   : > { %18897 = vmatpush3.bf16.msra.mxu0 %v21304_v60  ;;  %16790 = vmatprep.mubr.f32.mxu0 %v23633_v61 }
  0xed   : > { %18899 = vmatprep.subr.bf16.mxu0 %v21325_v11 }
  0xf0   : > { %18901 = vmatpush3.bf16.msra.mxu0 %v21325_v11 }
  0xf1   : > { %18903 = vmatprep.subr.bf16.mxu0 %v21361_v50 }
  0xf4   : > { %18905 = vmatpush3.bf16.msra.mxu0 %v21361_v50 }
  0xf5   : > { %18907 = vmatprep.subr.bf16.mxu0 %v21376_v0 }
  0xf8   : > { %18909 = vmatpush3.bf16.msra.mxu0 %v21376_v0 }
  0xf9   : > { %18911 = vmatprep.subr.bf16.mxu0 %v21396_v44 }
  0xfc   : > { %18913 = vmatpush3.bf16.msra.mxu0 %v21396_v44 }
  0xfd   : > { %18915 = vmatprep.subr.bf16.mxu0 %v21441_v17 }
  0xff   : > { %16791 = vmatmul.mubr.f32.vlgmr.msra.gmra.mrb[0].mxu0 %v23634_v62 }
 0x100   : > { %18917 = vmatpush3.bf16.msra.mxu0 %v21441_v17  ;;  %16793 = vmatprep.mubr.f32.mxu0 %v23635_v2 }
 0x101   : > { %18919 = vmatprep.subr.bf16.mxu0 %v21449_v30 }
 0x103   : > { %16794 = vmatmul.mubr.f32.gmra.mrb[2].mxu0 %v23636_v9 }
 0x104   : > { %18921 = vmatpush3.bf16.msra.mxu0 %v21449_v30  ;;  %16796 = vmatprep.mubr.f32.mxu0 %v23637_v27 }
 0x105   : > { %18923 = vmatprep.subr.bf16.mxu0 %v21455_v6 }
 0x107   : > { %16797 = vmatmul.mubr.f32.gmra.mrb[4].mxu0 %v23638_v33 }
 0x108   : > { %18925 = vmatpush3.bf16.msra.mxu0 %v21455_v6  ;;  %16799 = vmatprep.mubr.f32.mxu0 %v467_v5 }
 0x109   : > { %18927 = vmatprep.subr.bf16.mxu0 %v21461_v21 }
 0x10b   : > { %16800 = vmatmul.mubr.f32.gmra.mrb[6].mxu0 %v477_v25 }
 0x10c   : > { %18929 = vmatpush3.bf16.msra.mxu0 %v21461_v21  ;;  %16834 = vmatprep.mubr.f32.mxu0 %v21358_v49 }
 0x10d   : > { %18931 = vmatprep.subr.bf16.mxu0 %v21477_v26 }
 0x110   : > { %18933 = vmatpush3.bf16.msra.mxu0 %v21477_v26 }
 0x111   : > { %18935 = vmatprep.subr.bf16.mxu0 %v21490_v51 }
 0x114   : > { %18937 = vmatpush3.bf16.msra.mxu0 %v21490_v51 }
 0x115   : > { %18939 = vmatprep.subr.bf16.mxu0 %v21498_v28 }
 0x118   : > { %18941 = vmatpush3.bf16.msra.mxu0 %v21498_v28 }
 0x119   : > { %18943 = vmatprep.subr.bf16.mxu0 %v21504_v59 }
 0x11c   : > { %18945 = vmatpush3.bf16.msra.mxu0 %v21504_v59 }
 0x11d   : > { %18947 = vmatprep.subr.bf16.mxu0 %v21238_v12 }
 0x11f   : > { %16835 = vmatmul.mubr.f32.vlgmr.msra.gmra.mrb[0].mxu0 %v21400_v56 }
 0x120   : > { %18949 = vmatpush3.bf16.msra.mxu0 %v21238_v12  ;;  %16837 = vmatprep.mubr.f32.mxu0 %v21402_v42 }
 0x121   : > { %18951 = vmatprep.subr.bf16.mxu0 %v21246_v18 }
 0x123   : > { %16838 = vmatmul.mubr.f32.gmra.mrb[2].mxu0 %v21404_v39 }
 0x124   : > { %18953 = vmatpush3.bf16.msra.mxu0 %v21246_v18  ;;  %16840 = vmatprep.mubr.f32.mxu0 %v21407_v57  ;;  %v1268_v57 = vsel %vm1266_vm0, %v322_v52, 0 }
 0x125   : > { %18955 = vmatprep.subr.bf16.mxu0 %v21275_v34 }
 0x127   : > { %16841 = vmatmul.mubr.f32.gmra.mrb[4].mxu0 %v21409_v58  ;;  %v21699_v58 = vand.u32 4294901760, %v1268_v57 }
 0x128   : > { %18957 = vmatpush3.bf16.msra.mxu0 %v21275_v34  ;;  %16843 = vmatprep.mubr.f32.mxu0 %v21411_v10 }
 0x129   : > { %18959 = vmatprep.subr.bf16.mxu0 %v21304_v60  ;;  %23639 = vst [vmem:[#allocation28_spill] sm:$0xff] %v21699_v58 }
 0x12b   : > { %16844 = vmatmul.mubr.f32.gmra.mrb[6].mxu0 %v21464_v22 }
 0x12c   : > { %18961 = vmatpush3.bf16.msra.mxu0 %v21304_v60  ;;  %16878 = vmatprep.mubr.f32.mxu0 %v21358_v49 }
 0x12d   : > { %18963 = vmatprep.subr.bf16.mxu0 %v21325_v11 }
 0x130   : > { %18965 = vmatpush3.bf16.msra.mxu0 %v21325_v11 }
 0x131   : > { %18967 = vmatprep.subr.bf16.mxu0 %v21361_v50 }
 0x134   : > { %18969 = vmatpush3.bf16.msra.mxu0 %v21361_v50 }
 0x135   : > { %18971 = vmatprep.subr.bf16.mxu0 %v21376_v0 }
 0x138   : > { %18973 = vmatpush3.bf16.msra.mxu0 %v21376_v0 }
 0x139   : > { %18975 = vmatprep.subr.bf16.mxu0 %v21396_v44 }
 0x13c   : > { %18977 = vmatpush3.bf16.msra.mxu0 %v21396_v44 }
 0x13f   : > { %16879 = vmatmul.mubr.f32.vlgmr.msra.gmra.mrb[0].mxu0 %v21400_v56 }
 0x140   : > { %16881 = vmatprep.mubr.f32.mxu0 %v21402_v42  ;;  %v21702_v42 = vsub.f32 %v1268_v57, %v21699_v58 }
 0x142   : > { %23640 = vst [vmem:[#allocation29_spill] sm:$0xff] %v21702_v42 }
 0x143   : > { %16882 = vmatmul.mubr.f32.gmra.mrb[2].mxu0 %v21404_v39  ;;  %v21705_v39 = vand.u32 4294901760, %v21702_v42 }
 0x145   : > { %23641 = vst [vmem:[#allocation30_spill] sm:$0xff] %v21705_v39  ;;  %v1343_v16 = vsub.f32 %v21702_v42, %v21705_v39 }
 0x147   : > { %v21709_v35 = vand.u32 4294901760, %v1343_v16 }
 0x149   : > { %23642 = vst [vmem:[#allocation31_spill] sm:$0xff] %v21709_v35  ;;  %16894 = vmatprep.mubr.f32.mxu1 %v21709_v35  ;;  %17326 = vmatprep.mubr.f32.mxu0 %v21709_v35 }
 0x189   : > { %v21690_v8 = vpop.f32.mrb[0].mxu1 }
 0x18a   : > { %v21692_v31 = vpop.f32.mrb[1].mxu1 }
 0x18d   : > { %v21694_v45 = vpop.f32.mrb[2].mxu1 }
 0x18e   : > { %v21696_v49 = vpop.f32.mrb[3].mxu1 }
 0x191   : > { %v16666_v10 = vpop.f32.mrb[4].mxu1 }
 0x192   : > { %v451_v56 = vpop.f32.mrb[5].mxu1 }
 0x195   : > { %v16669_v40 = vpop.f32.mrb[6].mxu1 }
 0x196   : > { %v471_v7 = vpop.f32.mrb[7].mxu1 }
 0x1a9   : > { %v16886_v22 = vpop.f32.mrb[8].mxu1 }
 0x1aa   : > { %v1244_v37 = vpop.f32.mrb[9].mxu1 }
 0x1ad   : > { %v16889_v25 = vpop.f32.mrb[10].mxu1 }
 0x1ae   : > { %v1256_v5 = vpop.f32.mrb[11].mxu1 }
 0x1fa   : > { %v16842_v32 = vpop.f32.mrb[4].mxu0 }
 0x1fb   : > { %v20246_v55 = vadd.f32 %v16842_v32, %v16666_v10  ;;  %v1115_v38 = vpop.f32.mrb[5].mxu0  ;;  %v323_v32 = vld [vmem:[#allocation7 + $0x8] sm:$0xff] }
 0x1fc   : > { %v20248_v41 = vadd.f32 %v1115_v38, %v451_v56 }
 0x1fd   : > { %v20247_v13 = vadd.f32 %v20246_v55, %v16886_v22 }
 0x1fe   : > { %v20249_v14 = vadd.f32 %v20248_v41, %v1244_v37  ;;  %v16845_v3 = vpop.f32.mrb[6].mxu0  ;;  %v1271_v41 = vsel %vm1266_vm0, %v323_v32, 0 }
 0x1ff   : > { %v2281_v1 = vand.u32 4294901760, %v20247_v13  ;;  %v20250_v46 = vadd.f32 %v16845_v3, %v16669_v40  ;;  %v1127_v23 = vpop.f32.mrb[7].mxu0 }
 0x200   : > { %v2278_v19 = vand.u32 4294901760, %v20249_v14  ;;  %v20252_v61 = vadd.f32 %v1127_v23, %v471_v7 }
 0x201   : > { %v2373_v62 = vsub.f32 %v20247_v13, %v2281_v1  ;;  %v20251_v2 = vadd.f32 %v20250_v46, %v16889_v25  ;;  %v21724_v46 = vand.u32 4294901760, %v1271_v41 }
 0x202   : > { %v21713_v9 = vpack.c.bf16 %v2281_v1, %v2278_v19  ;;  %v2366_v27 = vsub.f32 %v20249_v14, %v2278_v19  ;;  %v20253_v33 = vadd.f32 %v20252_v61, %v1256_v5 }
 0x203   : > { %v2374_v52 = vand.u32 4294901760, %v2373_v62  ;;  %v2783_v57 = vand.u32 4294901760, %v20251_v2  ;;  %23643 = vst [vmem:[#allocation32_spill] sm:$0xff] %v21724_v46 }
 0x204   : > { %v2367_v16 = vand.u32 4294901760, %v2366_v27  ;;  %v2780_v10 = vand.u32 4294901760, %v20253_v33  ;;  %v21715_v56 = vpack.c.bf16 %v2373_v62, %v2366_v27 }
 0x205   : > { %v2875_v22 = vsub.f32 %v20251_v2, %v2783_v57  ;;  %v2375_v37 = vsub.f32 %v2373_v62, %v2374_v52 }
 0x206   : > { %v21717_v55 = vpack.c.bf16 %v2783_v57, %v2780_v10  ;;  %v2868_v40 = vsub.f32 %v20253_v33, %v2780_v10  ;;  %v2368_v38 = vsub.f32 %v2366_v27, %v2367_v16  ;;  %v21719_v7 = vpack.c.bf16 %v2374_v52, %v2367_v16 }
 0x207   : > { %v2876_v25 = vand.u32 4294901760, %v2875_v22  ;;  %v2376_v13 = vand.u32 4294901760, %v2375_v37  ;;  %v21731_v27 = vsub.f32 %v1271_v41, %v21724_v46 }
 0x208   : > { %v2869_v5 = vand.u32 4294901760, %v2868_v40  ;;  %v2369_v14 = vand.u32 4294901760, %v2368_v38  ;;  %v21722_v3 = vpack.c.bf16 %v2875_v22, %v2868_v40 }
 0x209   : > { %v2877_v1 = vsub.f32 %v2875_v22, %v2876_v25  ;;  %23644 = vst [vmem:[#allocation33_spill] sm:$0xff] %v21731_v27  ;;  %v21736_v57 = vand.u32 4294901760, %v21731_v27 }
 0x20a   : > { %v21726_v23 = vpack.c.bf16 %v2376_v13, %v2369_v14  ;;  %v2870_v19 = vsub.f32 %v2868_v40, %v2869_v5  ;;  %v21728_v61 = vpack.c.bf16 %v2876_v25, %v2869_v5 }
 0x20b   : > { %v2878_v62 = vand.u32 4294901760, %v2877_v1  ;;  %23645 = vst [vmem:[#allocation34_spill] sm:$0xff] %v21736_v57  ;;  %v1353_v38 = vsub.f32 %v21731_v27, %v21736_v57 }
 0x20c   : > { %v2871_v2 = vand.u32 4294901760, %v2870_v19 }
 0x20e   : > { %v21733_v33 = vpack.c.bf16 %v2878_v62, %v2871_v2 }
 0x212   : > { %v16880_v52 = vpop.f32.mrb[0].mxu0 }
 0x213   : > { %v20242_v16 = vadd.f32 %v16880_v52, %v21690_v8  ;;  %v1220_v10 = vpop.f32.mrb[1].mxu0 }
 0x214   : > { %v20243_v32 = vadd.f32 %v1220_v10, %v21692_v31  ;;  %v21744_v31 = vand.u32 4294901760, %v1353_v38 }
 0x215   : > { %v1277_v22 = vand.u32 4294901760, %v20242_v16 }
 0x216   : > { %v1274_v37 = vand.u32 4294901760, %v20243_v32  ;;  %v16883_v40 = vpop.f32.mrb[2].mxu0  ;;  %23646 = vst [vmem:[#allocation35_spill] sm:$0xff] %v21744_v31 }
 0x217   : > { %v1369_v25 = vsub.f32 %v20242_v16, %v1277_v22  ;;  %v20244_v41 = vadd.f32 %v16883_v40, %v21694_v45  ;;  %v1232_v13 = vpop.f32.mrb[3].mxu0 }
 0x218   : > { %v18978_v5 = vpack.c.bf16 %v1277_v22, %v1274_v37  ;;  %v1362_v14 = vsub.f32 %v20243_v32, %v1274_v37  ;;  %v20245_v1 = vadd.f32 %v1232_v13, %v21696_v49 }
 0x219   : > { %v1370_v19 = vand.u32 4294901760, %v1369_v25  ;;  %v1779_v62 = vand.u32 4294901760, %v20244_v41 }
 0x21a   : > { %v1363_v8 = vand.u32 4294901760, %v1362_v14  ;;  %v1776_v2 = vand.u32 4294901760, %v20245_v1  ;;  %18979 = vmatprep.subr.bf16.mxu1 %v18978_v5  ;;  %v18986_v52 = vpack.c.bf16 %v1369_v25, %v1362_v14 }
 0x21b   : > { %v1871_v10 = vsub.f32 %v20244_v41, %v1779_v62  ;;  %18981 = vmatpush3.bf16.msra.mxu1 %v18978_v5  ;;  %v1371_v59 = vsub.f32 %v1369_v25, %v1370_v19 }
 0x21c   : > { %v19002_v28 = vpack.c.bf16 %v1779_v62, %v1776_v2  ;;  %v1864_v16 = vsub.f32 %v20245_v1, %v1776_v2  ;;  %v1364_v51 = vsub.f32 %v1362_v14, %v1363_v8  ;;  %v18994_v45 = vpack.c.bf16 %v1370_v19, %v1363_v8  ;;  %v303_v62 = vld [vmem:[%s21224_s27 + $0x28] sm:$0xff]  ;;  %v304_v8 = vld [vmem:[%s21224_s27 + $0x30] sm:$0xff] }
 0x21d   : > { %v1872_v40 = vand.u32 4294901760, %v1871_v10  ;;  %v1372_v22 = vand.u32 4294901760, %v1371_v59  ;;  %v298_v59 = vld [vmem:[%s21224_s27] sm:$0xff] }
 0x21e   : > { %v1865_v32 = vand.u32 4294901760, %v1864_v16  ;;  %16895 = vmatmul.mubr.f32.vlgmr.msra.gmra.mrb[12].mxu1 %v21744_v31  ;;  %v1365_v49 = vand.u32 4294901760, %v1364_v51  ;;  %v19010_v37 = vpack.c.bf16 %v1871_v10, %v1864_v16 }
 0x21f   : > { %16901 = vmatprep.mubr.f32.mxu1 %v21699_v58  ;;  %v1873_v13 = vsub.f32 %v1871_v10, %v1872_v40  ;;  %v21862_v10 = vand.u32 4294901760, %v303_v62 }
 0x220   : > { %v18982_v38 = vpack.c.bf16 %v1372_v22, %v1365_v49  ;;  %v1866_v26 = vsub.f32 %v1864_v16, %v1865_v32  ;;  %v19018_v21 = vpack.c.bf16 %v1872_v40, %v1865_v32  ;;  %v21869_v40 = vand.u32 4294901760, %v304_v8  ;;  %v305_v22 = vld [vmem:[%s21224_s27 + $0x38] sm:$0xff] }
 0x221   : > { %v1874_v41 = vand.u32 4294901760, %v1873_v13  ;;  %v21880_v13 = vand.u32 4294901760, %v305_v22 }
 0x222   : > { %18983 = vmatprep.subr.bf16.mxu1 %v18982_v38  ;;  %v1867_v25 = vand.u32 4294901760, %v1866_v26 }
 0x223   : > { %18985 = vmatpush3.bf16.msra.mxu1 %v18982_v38 }
 0x224   : > { %18987 = vmatprep.subr.bf16.mxu1 %v18986_v52  ;;  %v19006_v14 = vpack.c.bf16 %v1874_v41, %v1867_v25  ;;  %v21888_v25 = vsub.f32 %v304_v8, %v21869_v40 }
 0x226   : > { %16902 = vmatmul.mubr.f32.vlgmr.msra.gmra.mrb[12].mxu1 %v21724_v46 }
 0x227   : > { %18989 = vmatpush3.bf16.msra.mxu1 %v18986_v52  ;;  %16908 = vmatprep.mubr.f32.mxu1 %v21702_v42 }
 0x228   : > { %18991 = vmatprep.subr.bf16.mxu1 %v18978_v5 }
 0x22e   : > { %16909 = vmatmul.mubr.f32.vlgmr.msra.gmra.mrb[12].mxu1 %v21731_v27 }
 0x22f   : > { %18993 = vmatpush3.bf16.msra.mxu1 %v18978_v5  ;;  %16915 = vmatprep.mubr.f32.mxu1 %v21705_v39 }
 0x230   : > { %18995 = vmatprep.subr.bf16.mxu1 %v18994_v45 }
 0x236   : > { %16916 = vmatmul.mubr.f32.vlgmr.msra.gmra.mrb[12].mxu1 %v21736_v57 }
 0x237   : > { %18997 = vmatpush3.bf16.msra.mxu1 %v18994_v45  ;;  %16922 = vmatprep.mubr.f32.mxu1 %v21699_v58 }
 0x238   : > { %18999 = vmatprep.subr.bf16.mxu1 %v18978_v5 }
 0x23e   : > { %16923 = vmatmul.mubr.f32.vlgmr.msra.gmra.mrb[12].mxu1 %v21724_v46 }
 0x23f   : > { %19001 = vmatpush3.bf16.msra.mxu1 %v18978_v5  ;;  %16929 = vmatprep.mubr.f32.mxu1 %v21699_v58 }
 0x240   : > { %19003 = vmatprep.subr.bf16.mxu1 %v19002_v28 }
 0x246   : > { %16930 = vmatmul.mubr.f32.vlgmr.msra.gmra.mrb[12].mxu1 %v21724_v46 }
 0x247   : > { %19005 = vmatpush3.bf16.msra.mxu1 %v19002_v28  ;;  %16936 = vmatprep.mubr.f32.mxu1 %v21709_v35 }
 0x248   : > { %19007 = vmatprep.subr.bf16.mxu1 %v19006_v14 }
 0x24a   : > { %16937 = vmatmul.mubr.f32.vlgmr.msra.gmra.mrb[14].mxu1 %v21744_v31 }
 0x24b   : > { %19009 = vmatpush3.bf16.msra.mxu1 %v19006_v14  ;;  %16943 = vmatprep.mubr.f32.mxu1 %v21699_v58 }
 0x24c   : > { %19011 = vmatprep.subr.bf16.mxu1 %v19010_v37 }
 0x252   : > { %16944 = vmatmul.mubr.f32.vlgmr.msra.gmra.mrb[14].mxu1 %v21724_v46 }
 0x253   : > { %19013 = vmatpush3.bf16.msra.mxu1 %v19010_v37  ;;  %16950 = vmatprep.mubr.f32.mxu1 %v21702_v42  ;;  %v21878_v37 = vsub.f32 %v303_v62, %v21862_v10 }
 0x254   : > { %19015 = vmatprep.subr.bf16.mxu1 %v19002_v28 }
 0x25a   : > { %16951 = vmatmul.mubr.f32.vlgmr.msra.gmra.mrb[14].mxu1 %v21731_v27 }
 0x25b   : > { %19017 = vmatpush3.bf16.msra.mxu1 %v19002_v28  ;;  %16957 = vmatprep.mubr.f32.mxu1 %v21705_v39 }
 0x25c   : > { %19019 = vmatprep.subr.bf16.mxu1 %v19018_v21 }
 0x262   : > { %16958 = vmatmul.mubr.f32.vlgmr.msra.gmra.mrb[14].mxu1 %v21736_v57 }
 0x263   : > { %19021 = vmatpush3.bf16.msra.mxu1 %v19018_v21  ;;  %16964 = vmatprep.mubr.f32.mxu1 %v21699_v58 }
 0x264   : > { %19023 = vmatprep.subr.bf16.mxu1 %v19002_v28 }
 0x26a   : > { %16965 = vmatmul.mubr.f32.vlgmr.msra.gmra.mrb[14].mxu1 %v21724_v46 }
 0x26b   : > { %19025 = vmatpush3.bf16.msra.mxu1 %v19002_v28  ;;  %16971 = vmatprep.mubr.f32.mxu1 %v21699_v58  ;;  %v21810_v28 = vand.u32 4294901760, %v298_v59 }
 0x26c   : > { %19027 = vmatprep.subr.bf16.mxu1 %v21713_v9 }
 0x26d   : > { %v21816_v21 = vsub.f32 %v298_v59, %v21810_v28 }
 0x26f   : > { %v3364_v26 = vand.u32 4294901760, %v21816_v21 }
 0x271   : > { %v3365_v51 = vsub.f32 %v21816_v21, %v3364_v26 }
 0x272   : > { %16972 = vmatmul.mubr.f32.vlgmr.msra.gmra.mrb[14].mxu1 %v21724_v46 }
 0x273   : > { %19029 = vmatpush3.bf16.msra.mxu1 %v21713_v9  ;;  %16978 = vmatprep.mubr.f32.mxu1 %v21709_v35 }
 0x274   : > { %19031 = vmatprep.subr.bf16.mxu1 %v21726_v23 }
 0x276   : > { %16979 = vmatmul.mubr.f32.vlgmr.msra.gmra.mrb[16].mxu1 %v21744_v31 }
 0x277   : > { %19033 = vmatpush3.bf16.msra.mxu1 %v21726_v23  ;;  %16985 = vmatprep.mubr.f32.mxu1 %v21699_v58  ;;  %v301_v23 = vld [vmem:[%s21224_s27 + $0x18] sm:$0xff] }
 0x278   : > { %19035 = vmatprep.subr.bf16.mxu1 %v21715_v56  ;;  %v21847_v5 = vand.u32 4294901760, %v301_v23 }
 0x27a   : > { %v21860_v52 = vsub.f32 %v301_v23, %v21847_v5  ;;  %v3424_v23 = vand.u32 4294901760, %v21888_v25 }
 0x27c   : > { %v3394_v49 = vand.u32 4294901760, %v21860_v52 }
 0x27e   : > { %16986 = vmatmul.mubr.f32.vlgmr.msra.gmra.mrb[16].mxu1 %v21724_v46  ;;  %v3395_v59 = vsub.f32 %v21860_v52, %v3394_v49 }
 0x27f   : > { %19037 = vmatpush3.bf16.msra.mxu1 %v21715_v56  ;;  %16992 = vmatprep.mubr.f32.mxu1 %v21702_v42  ;;  %v299_v56 = vld [vmem:[%s21224_s27 + $0x8] sm:$0xff] }
 0x280   : > { %19039 = vmatprep.subr.bf16.mxu1 %v21713_v9 }
 0x286   : > { %16993 = vmatmul.mubr.f32.vlgmr.msra.gmra.mrb[16].mxu1 %v21731_v27 }
 0x287   : > { %19041 = vmatpush3.bf16.msra.mxu1 %v21713_v9  ;;  %16999 = vmatprep.mubr.f32.mxu1 %v21705_v39 }
 0x288   : > { %19043 = vmatprep.subr.bf16.mxu1 %v21719_v7 }
 0x28e   : > { %17000 = vmatmul.mubr.f32.vlgmr.msra.gmra.mrb[16].mxu1 %v21736_v57 }
 0x28f   : > { %19045 = vmatpush3.bf16.msra.mxu1 %v21719_v7  ;;  %17006 = vmatprep.mubr.f32.mxu1 %v21699_v58  ;;  %v21836_v7 = vand.u32 4294901760, %v299_v56 }
 0x290   : > { %19047 = vmatprep.subr.bf16.mxu1 %v21713_v9 }
 0x296   : > { %17007 = vmatmul.mubr.f32.vlgmr.msra.gmra.mrb[16].mxu1 %v21724_v46 }
 0x297   : > { %19049 = vmatpush3.bf16.msra.mxu1 %v21713_v9  ;;  %17013 = vmatprep.mubr.f32.mxu1 %v21699_v58  ;;  %v3366_v9 = vand.u32 4294901760, %v3365_v51  ;;  %v23510_v51 = vand.u32 4294901760, %v21878_v37 }
 0x298   : > { %19051 = vmatprep.subr.bf16.mxu1 %v21717_v55 }
 0x299   : > { %v3415_v62 = vsub.f32 %v21878_v37, %v23510_v51  ;;  %v23647_v51 = vld [vmem:[#allocation16_spill] sm:$0xff] }
 0x29e   : > { %17014 = vmatmul.mubr.f32.vlgmr.msra.gmra.mrb[16].mxu1 %v21724_v46 }
 0x29f   : > { %19053 = vmatpush3.bf16.msra.mxu1 %v21717_v55  ;;  %17020 = vmatprep.mubr.f32.mxu1 %v21709_v35 }
 0x2a0   : > { %19055 = vmatprep.subr.bf16.mxu1 %v21733_v33 }
 0x2a2   : > { %17021 = vmatmul.mubr.f32.vlgmr.msra.gmra.mrb[18].mxu1 %v21744_v31 }
 0x2a3   : > { %19057 = vmatpush3.bf16.msra.mxu1 %v21733_v33  ;;  %17027 = vmatprep.mubr.f32.mxu1 %v21699_v58  ;;  %v21845_v33 = vsub.f32 %v299_v56, %v21836_v7 }
 0x2a4   : > { %19059 = vmatprep.subr.bf16.mxu1 %v21722_v3 }
 0x2a5   : > { %v3374_v2 = vand.u32 4294901760, %v21845_v33 }
 0x2a7   : > { %v3375_v32 = vsub.f32 %v21845_v33, %v3374_v2 }
 0x2a9   : > { %v3376_v14 = vand.u32 4294901760, %v3375_v32  ;;  %v3425_v32 = vsub.f32 %v21888_v25, %v3424_v23 }
 0x2aa   : > { %17028 = vmatmul.mubr.f32.vlgmr.msra.gmra.mrb[18].mxu1 %v21724_v46 }
 0x2ab   : > { %19061 = vmatpush3.bf16.msra.mxu1 %v21722_v3  ;;  %17034 = vmatprep.mubr.f32.mxu1 %v21702_v42 }
 0x2ac   : > { %19063 = vmatprep.subr.bf16.mxu1 %v21717_v55 }
 0x2b2   : > { %17035 = vmatmul.mubr.f32.vlgmr.msra.gmra.mrb[18].mxu1 %v21731_v27 }
 0x2b3   : > { %19065 = vmatpush3.bf16.msra.mxu1 %v21717_v55  ;;  %17041 = vmatprep.mubr.f32.mxu1 %v21705_v39 }
 0x2b4   : > { %19067 = vmatprep.subr.bf16.mxu1 %v21728_v61 }
 0x2ba   : > { %17042 = vmatmul.mubr.f32.vlgmr.msra.gmra.mrb[18].mxu1 %v21736_v57 }
 0x2bb   : > { %19069 = vmatpush3.bf16.msra.mxu1 %v21728_v61  ;;  %17048 = vmatprep.mubr.f32.mxu1 %v21699_v58  ;;  %v302_v61 = vld [vmem:[%s21224_s27 + $0x20] sm:$0xff] }
 0x2bc   : > { %19071 = vmatprep.subr.bf16.mxu1 %v21717_v55  ;;  %v21853_v19 = vand.u32 4294901760, %v302_v61 }
 0x2be   : > { %v21867_v45 = vsub.f32 %v302_v61, %v21853_v19  ;;  %v3396_v61 = vand.u32 4294901760, %v3395_v59  ;;  %v3426_v59 = vand.u32 4294901760, %v3425_v32 }
 0x2c0   : > { %v3404_v41 = vand.u32 4294901760, %v21867_v45 }
 0x2c2   : > { %17049 = vmatmul.mubr.f32.vlgmr.msra.gmra.mrb[18].mxu1 %v21724_v46 }
 0x2c3   : > { %19073 = vmatpush3.bf16.msra.mxu1 %v21717_v55  ;;  %17055 = vmatprep.mubr.f32.mxu1 %v21699_v58  ;;  %v300_v55 = vld [vmem:[%s21224_s27 + $0x10] sm:$0xff] }
 0x2c4   : > { %19075 = vmatprep.subr.bf16.mxu1 %v21238_v12  ;;  %v21839_v3 = vand.u32 4294901760, %v300_v55 }
 0x2c6   : > { %v21851_v1 = vsub.f32 %v300_v55, %v21839_v3  ;;  %v3405_v55 = vsub.f32 %v21867_v45, %v3404_v41 }
 0x2c8   : > { %v3384_v16 = vand.u32 4294901760, %v21851_v1 }
 0x2ca   : > { %17056 = vmatmul.mubr.f32.vlgmr.msra.gmra.mrb[18].mxu1 %v21724_v46  ;;  %v3385_v38 = vsub.f32 %v21851_v1, %v3384_v16 }
 0x2cb   : > { %19077 = vmatpush3.bf16.msra.mxu1 %v21238_v12  ;;  %17090 = vmatprep.mubr.f32.mxu1 %v3366_v9  ;;  %v21896_v9 = vsub.f32 %v305_v22, %v21880_v13  ;;  %v3406_v22 = vand.u32 4294901760, %v3405_v55  ;;  %v23648_v55 = vld [vmem:[#allocation17_spill] sm:$0xff] }
 0x2cc   : > { %19079 = vmatprep.subr.bf16.mxu1 %v21246_v18  ;;  %v3386_v56 = vand.u32 4294901760, %v3385_v38  ;;  %v3416_v38 = vand.u32 4294901760, %v3415_v62  ;;  %v23650_v62 = vld [vmem:[#allocation19_spill] sm:$0xff] }
 0x2cd   : > { %v3434_v8 = vand.u32 4294901760, %v21896_v9 }
 0x2cf   : > { %19081 = vmatpush3.bf16.msra.mxu1 %v21246_v18 }
 0x2d0   : > { %19083 = vmatprep.subr.bf16.mxu1 %v21275_v34 }
 0x2d3   : > { %19085 = vmatpush3.bf16.msra.mxu1 %v21275_v34 }
 0x2d4   : > { %19087 = vmatprep.subr.bf16.mxu1 %v21304_v60 }
 0x2d7   : > { %19089 = vmatpush3.bf16.msra.mxu1 %v21304_v60 }
 0x2d8   : > { %19091 = vmatprep.subr.bf16.mxu1 %v21325_v11 }
 0x2db   : > { %19093 = vmatpush3.bf16.msra.mxu1 %v21325_v11 }
 0x2dc   : > { %19095 = vmatprep.subr.bf16.mxu1 %v21361_v50 }
 0x2df   : > { %19097 = vmatpush3.bf16.msra.mxu1 %v21361_v50 }
 0x2e0   : > { %19099 = vmatprep.subr.bf16.mxu1 %v21376_v0 }
 0x2e3   : > { %19101 = vmatpush3.bf16.msra.mxu1 %v21376_v0 }
 0x2e4   : > { %19103 = vmatprep.subr.bf16.mxu1 %v21396_v44 }
 0x2e7   : > { %19105 = vmatpush3.bf16.msra.mxu1 %v21396_v44 }
 0x2e8   : > { %19107 = vmatprep.subr.bf16.mxu1 %v21291_v48 }
 0x2ea   : > { %17091 = vmatmul.mubr.f32.vlgmr.msra.gmra.mrb[20].mxu1 %v3376_v14  ;;  %v3435_v14 = vsub.f32 %v21896_v9, %v3434_v8 }
 0x2eb   : > { %19109 = vmatpush3.bf16.msra.mxu1 %v21291_v48  ;;  %17093 = vmatprep.mubr.f32.mxu1 %v3386_v56 }
 0x2ec   : > { %19111 = vmatprep.subr.bf16.mxu1 %v21294_v53  ;;  %v3436_v56 = vand.u32 4294901760, %v3435_v14 }
 0x2ee   : > { %17094 = vmatmul.mubr.f32.gmra.mrb[22].mxu1 %v3396_v61  ;;  %v23649_v61 = vld [vmem:[#allocation18_spill] sm:$0xff] }
 0x2ef   : > { %19113 = vmatpush3.bf16.msra.mxu1 %v21294_v53  ;;  %17096 = vmatprep.mubr.f32.mxu1 %v3406_v22 }
 0x2f0   : > { %19115 = vmatprep.subr.bf16.mxu1 %v23647_v51 }
 0x2f2   : > { %17097 = vmatmul.mubr.f32.gmra.mrb[24].mxu1 %v3416_v38 }
 0x2f3   : > { %19117 = vmatpush3.bf16.msra.mxu1 %v23647_v51  ;;  %17099 = vmatprep.mubr.f32.mxu1 %v3426_v59  ;;  %v20737_v59 = vld [vmem:[%s21216_s20 + $0x18] sm:$0xff] }
 0x2f4   : > { %19119 = vmatprep.subr.bf16.mxu1 %v23648_v55 }
 0x2f6   : > { %17100 = vmatmul.mubr.f32.gmra.mrb[26].mxu1 %v3436_v56  ;;  %v6234_v56 = vmul.f32 %v20737_v59, %v20737_v59 }
 0x2f7   : > { %19121 = vmatpush3.bf16.msra.mxu1 %v23648_v55  ;;  %17134 = vmatprep.mubr.f32.mxu1 %v21810_v28 }
 0x2f8   : > { %19123 = vmatprep.subr.bf16.mxu1 %v23649_v61 }
 0x2fb   : > { %19125 = vmatpush3.bf16.msra.mxu1 %v23649_v61 }
 0x2fc   : > { %19127 = vmatprep.subr.bf16.mxu1 %v23650_v62 }
 0x2ff   : > { %19129 = vmatpush3.bf16.msra.mxu1 %v23650_v62 }
 0x300   : > { %19131 = vmatprep.subr.bf16.mxu1 %v21398_v63 }
 0x303   : > { %19133 = vmatpush3.bf16.msra.mxu1 %v21398_v63 }
 0x304   : > { %19135 = vmatprep.subr.bf16.mxu1 %v21418_v43 }
 0x307   : > { %19137 = vmatpush3.bf16.msra.mxu1 %v21418_v43 }
 0x308   : > { %19139 = vmatprep.subr.bf16.mxu1 %v21515_v54 }
 0x30a   : > { %17135 = vmatmul.mubr.f32.vlgmr.msra.gmra.mrb[20].mxu1 %v21836_v7 }
 0x30b   : > { %19141 = vmatpush3.bf16.msra.mxu1 %v21515_v54  ;;  %17137 = vmatprep.mubr.f32.mxu1 %v21839_v3 }
 0x30c   : > { %19143 = vmatprep.subr.bf16.mxu1 %v21538_v4 }
 0x30e   : > { %17138 = vmatmul.mubr.f32.gmra.mrb[22].mxu1 %v21847_v5 }
 0x30f   : > { %19145 = vmatpush3.bf16.msra.mxu1 %v21538_v4  ;;  %17140 = vmatprep.mubr.f32.mxu1 %v21853_v19 }
 0x310   : > { %19147 = vmatprep.subr.bf16.mxu1 %v21551_v15 }
 0x312   : > { %17141 = vmatmul.mubr.f32.gmra.mrb[24].mxu1 %v21862_v10 }
 0x313   : > { %19149 = vmatpush3.bf16.msra.mxu1 %v21551_v15  ;;  %17143 = vmatprep.mubr.f32.mxu1 %v21869_v40 }
 0x314   : > { %19151 = vmatprep.subr.bf16.mxu1 %v21561_v29 }
 0x316   : > { %17144 = vmatmul.mubr.f32.gmra.mrb[26].mxu1 %v21880_v13 }
 0x317   : > { %19153 = vmatpush3.bf16.msra.mxu1 %v21561_v29  ;;  %17178 = vmatprep.mubr.f32.mxu1 %v21816_v21  ;;  %v23655_v21 = vand.u32 4294901760, %v21878_v37 }
 0x318   : > { %19155 = vmatprep.subr.bf16.mxu1 %v21572_v20 }
 0x319   : > { %v21947_v22 = vpop.f32.mrb[12].mxu1 }
 0x31a   : > { %23651 = vst [vmem:[#allocation16_spill] sm:$0xff] %v21947_v22  ;;  %v21949_v32 = vpop.f32.mrb[13].mxu1 }
 0x31b   : > { %23652 = vst [vmem:[#allocation17_spill] sm:$0xff] %v21949_v32  ;;  %19157 = vmatpush3.bf16.msra.mxu1 %v21572_v20 }
 0x31c   : > { %19159 = vmatprep.subr.bf16.mxu1 %v21582_v24 }
 0x31f   : > { %19161 = vmatpush3.bf16.msra.mxu1 %v21582_v24 }
 0x320   : > { %19163 = vmatprep.subr.bf16.mxu1 %v21590_v36 }
 0x323   : > { %19165 = vmatpush3.bf16.msra.mxu1 %v21590_v36 }
 0x324   : > { %19167 = vmatprep.subr.bf16.mxu1 %v21598_v47 }
 0x327   : > { %19169 = vmatpush3.bf16.msra.mxu1 %v21598_v47 }
 0x328   : > { %19171 = vmatprep.subr.bf16.mxu1 %v21238_v12 }
 0x32a   : > { %17179 = vmatmul.mubr.f32.vlgmr.msra.gmra.mrb[20].mxu1 %v21845_v33  ;;  %v23657_v33 = vld [vmem:[#allocation24_spill] sm:$0xff] }
 0x32b   : > { %19173 = vmatpush3.bf16.msra.mxu1 %v21238_v12  ;;  %17181 = vmatprep.mubr.f32.mxu1 %v21851_v1  ;;  %v23658_v1 = vld [vmem:[#allocation25_spill] sm:$0xff] }
 0x32c   : > { %19175 = vmatprep.subr.bf16.mxu1 %v21246_v18 }
 0x32e   : > { %17182 = vmatmul.mubr.f32.gmra.mrb[22].mxu1 %v21860_v52  ;;  %v23660_v52 = vld [vmem:[#allocation27_spill] sm:$0xff] }
 0x32f   : > { %19177 = vmatpush3.bf16.msra.mxu1 %v21246_v18  ;;  %17184 = vmatprep.mubr.f32.mxu1 %v21867_v45 }
 0x330   : > { %19179 = vmatprep.subr.bf16.mxu1 %v21275_v34 }
 0x332   : > { %17185 = vmatmul.mubr.f32.gmra.mrb[24].mxu1 %v21878_v37 }
 0x333   : > { %19181 = vmatpush3.bf16.msra.mxu1 %v21275_v34  ;;  %17187 = vmatprep.mubr.f32.mxu1 %v21888_v25 }
 0x334   : > { %19183 = vmatprep.subr.bf16.mxu1 %v21304_v60 }
 0x336   : > { %17188 = vmatmul.mubr.f32.gmra.mrb[26].mxu1 %v21896_v9  ;;  %v20735_v9 = vld [vmem:[%s21216_s20 + $0x8] sm:$0xff] }
 0x337   : > { %19185 = vmatpush3.bf16.msra.mxu1 %v21304_v60  ;;  %17222 = vmatprep.mubr.f32.mxu1 %v3364_v26  ;;  %v23656_v26 = vld [vmem:[#allocation23_spill] sm:$0xff] }
 0x338   : > { %19187 = vmatprep.subr.bf16.mxu1 %v21325_v11 }
 0x33b   : > { %19189 = vmatpush3.bf16.msra.mxu1 %v21325_v11 }
 0x33c   : > { %19191 = vmatprep.subr.bf16.mxu1 %v21361_v50 }
 0x33f   : > { %19193 = vmatpush3.bf16.msra.mxu1 %v21361_v50 }
 0x340   : > { %19195 = vmatprep.subr.bf16.mxu1 %v21376_v0 }
 0x343   : > { %19197 = vmatpush3.bf16.msra.mxu1 %v21376_v0 }
 0x344   : > { %19199 = vmatprep.subr.bf16.mxu1 %v21396_v44 }
 0x345   : > { %v21982_v38 = vpop.f32.mrb[14].mxu1 }
 0x346   : > { %23653 = vst [vmem:[#allocation18_spill] sm:$0xff] %v21982_v38  ;;  %v21984_v14 = vpop.f32.mrb[15].mxu1 }
 0x347   : > { %23654 = vst [vmem:[#allocation19_spill] sm:$0xff] %v21984_v14  ;;  %19201 = vmatpush3.bf16.msra.mxu1 %v21396_v44 }
 0x348   : > { %19203 = vmatprep.subr.bf16.mxu1 %v21441_v17 }
 0x34a   : > { %17223 = vmatmul.mubr.f32.vlgmr.msra.gmra.mrb[20].mxu1 %v3374_v2  ;;  %v23659_v2 = vld [vmem:[#allocation26_spill] sm:$0xff] }
 0x34b   : > { %19205 = vmatpush3.bf16.msra.mxu1 %v21441_v17  ;;  %17225 = vmatprep.mubr.f32.mxu1 %v3384_v16 }
 0x34c   : > { %19207 = vmatprep.subr.bf16.mxu1 %v21449_v30 }
 0x34e   : > { %17226 = vmatmul.mubr.f32.gmra.mrb[22].mxu1 %v3394_v49  ;;  %v20734_v49 = vld [vmem:[%s21216_s20] sm:$0xff] }
 0x34f   : > { %19209 = vmatpush3.bf16.msra.mxu1 %v21449_v30  ;;  %17228 = vmatprep.mubr.f32.mxu1 %v3404_v41  ;;  %v6231_v37 = vmul.f32 %v20734_v49, %v20734_v49 }
 0x350   : > { %19211 = vmatprep.subr.bf16.mxu1 %v21455_v6 }
 0x351   : > { %v22045_v41 = vand.u32 4294901760, %v6231_v37 }
 0x352   : > { %17229 = vmatmul.mubr.f32.gmra.mrb[24].mxu1 %v23655_v21  ;;  %v20738_v21 = vld [vmem:[%s21216_s20 + $0x20] sm:$0xff] }
 0x353   : > { %19213 = vmatpush3.bf16.msra.mxu1 %v21455_v6  ;;  %17231 = vmatprep.mubr.f32.mxu1 %v3424_v23  ;;  %v20736_v23 = vld [vmem:[%s21216_s20 + $0x10] sm:$0xff] }
 0x354   : > { %19215 = vmatprep.subr.bf16.mxu1 %v23656_v26 }
 0x356   : > { %17232 = vmatmul.mubr.f32.gmra.mrb[26].mxu1 %v3434_v8  ;;  %v6233_v8 = vmul.f32 %v20736_v23, %v20736_v23  ;;  %v20740_v23 = vld [vmem:[%s21216_s20 + $0x30] sm:$0xff] }
 0x357   : > { %19217 = vmatpush3.bf16.msra.mxu1 %v23656_v26  ;;  %17266 = vmatprep.mubr.f32.mxu1 %v21810_v28  ;;  %v6237_v59 = vmul.f32 %v20740_v23, %v20740_v23 }
 0x358   : > { %19219 = vmatprep.subr.bf16.mxu1 %v23657_v33 }
 0x359   : > { %v22110_v38 = vand.u32 4294901760, %v6237_v59 }
 0x35b   : > { %19221 = vmatpush3.bf16.msra.mxu1 %v23657_v33  ;;  %v22128_v22 = vsub.f32 %v6237_v59, %v22110_v38 }
 0x35c   : > { %19223 = vmatprep.subr.bf16.mxu1 %v23658_v1 }
 0x35d   : > { %v6382_v27 = vand.u32 4294901760, %v22128_v22 }
 0x35f   : > { %19225 = vmatpush3.bf16.msra.mxu1 %v23658_v1 }
 0x360   : > { %19227 = vmatprep.subr.bf16.mxu1 %v23659_v2 }
 0x363   : > { %19229 = vmatpush3.bf16.msra.mxu1 %v23659_v2 }
 0x364   : > { %19231 = vmatprep.subr.bf16.mxu1 %v23660_v52 }
 0x367   : > { %19233 = vmatpush3.bf16.msra.mxu1 %v23660_v52 }
 0x368   : > { %19235 = vmatprep.subr.bf16.mxu1 %v21238_v12 }
 0x36a   : > { %17267 = vmatmul.mubr.f32.vlgmr.msra.gmra.mrb[20].mxu1 %v21836_v7 }
 0x36b   : > { %19237 = vmatpush3.bf16.msra.mxu1 %v21238_v12  ;;  %17269 = vmatprep.mubr.f32.mxu1 %v21839_v3 }
 0x36c   : > { %19239 = vmatprep.subr.bf16.mxu1 %v21246_v18 }
 0x36e   : > { %17270 = vmatmul.mubr.f32.gmra.mrb[22].mxu1 %v21847_v5 }
 0x36f   : > { %19241 = vmatpush3.bf16.msra.mxu1 %v21246_v18  ;;  %17272 = vmatprep.mubr.f32.mxu1 %v21853_v19 }
 0x370   : > { %19243 = vmatprep.subr.bf16.mxu1 %v21275_v34 }
 0x371   : > { %v22027_v16 = vpop.f32.mrb[16].mxu1 }
 0x372   : > { %23661 = vst [vmem:[#allocation36_spill] sm:$0xff] %v22027_v16  ;;  %v22029_v45 = vpop.f32.mrb[17].mxu1  ;;  %17273 = vmatmul.mubr.f32.gmra.mrb[24].mxu1 %v21862_v10  ;;  %v20741_v16 = vld [vmem:[%s21216_s20 + $0x38] sm:$0xff] }
 0x373   : > { %23662 = vst [vmem:[#allocation37_spill] sm:$0xff] %v22029_v45  ;;  %19245 = vmatpush3.bf16.msra.mxu1 %v21275_v34  ;;  %17275 = vmatprep.mubr.f32.mxu1 %v21869_v40 }
 0x374   : > { %19247 = vmatprep.subr.bf16.mxu1 %v21304_v60 }
 0x376   : > { %17276 = vmatmul.mubr.f32.gmra.mrb[26].mxu1 %v21880_v13 }
 0x377   : > { %19249 = vmatpush3.bf16.msra.mxu1 %v21304_v60  ;;  %17310 = vmatprep.mubr.f32.mxu1 %v21810_v28  ;;  %v22050_v28 = vsub.f32 %v6231_v37, %v22045_v41  ;;  %v22083_v37 = vand.u32 4294901760, %v6234_v56 }
 0x378   : > { %19251 = vmatprep.subr.bf16.mxu1 %v21325_v11 }
 0x379   : > { %v23511_v25 = vand.u32 4294901760, %v22050_v28  ;;  %v22100_v45 = vsub.f32 %v6234_v56, %v22083_v37 }
 0x37b   : > { %19253 = vmatpush3.bf16.msra.mxu1 %v21325_v11 }
 0x37c   : > { %19255 = vmatprep.subr.bf16.mxu1 %v21361_v50 }
 0x37f   : > { %19257 = vmatpush3.bf16.msra.mxu1 %v21361_v50 }
 0x380   : > { %19259 = vmatprep.subr.bf16.mxu1 %v21376_v0 }
 0x383   : > { %19261 = vmatpush3.bf16.msra.mxu1 %v21376_v0 }
 0x384   : > { %19263 = vmatprep.subr.bf16.mxu1 %v21396_v44 }
 0x387   : > { %19265 = vmatpush3.bf16.msra.mxu1 %v21396_v44 }
 0x388   : > { %19363 = vmatprep.subr.bf16.mxu1 %v21238_v12 }
 0x38a   : > { %17311 = vmatmul.mubr.f32.vlgmr.msra.gmra.mrb[20].mxu1 %v21836_v7  ;;  %v6323_v7 = vsub.f32 %v22050_v28, %v23511_v25 }
 0x38b   : > { %19365 = vmatpush3.bf16.msra.mxu1 %v21238_v12  ;;  %17313 = vmatprep.mubr.f32.mxu1 %v21839_v3  ;;  %v6232_v3 = vmul.f32 %v20735_v9, %v20735_v9 }
 0x38c   : > { %19367 = vmatprep.subr.bf16.mxu1 %v21246_v18 }
 0x38e   : > { %17314 = vmatmul.mubr.f32.gmra.mrb[22].mxu1 %v21847_v5  ;;  %v6324_v5 = vand.u32 4294901760, %v6323_v7  ;;  %v20739_v7 = vld [vmem:[%s21216_s20 + $0x28] sm:$0xff] }
 0x38f   : > { %19369 = vmatpush3.bf16.msra.mxu1 %v21246_v18  ;;  %17316 = vmatprep.mubr.f32.mxu1 %v21853_v19  ;;  %v22071_v19 = vand.u32 4294901760, %v6232_v3 }
 0x390   : > { %19371 = vmatprep.subr.bf16.mxu1 %v21275_v34 }
 0x391   : > { %v22081_v49 = vsub.f32 %v6232_v3, %v22071_v19 }
 0x392   : > { %17317 = vmatmul.mubr.f32.gmra.mrb[24].mxu1 %v21862_v10  ;;  %v22076_v10 = vand.u32 4294901760, %v6233_v8 }
 0x393   : > { %19373 = vmatpush3.bf16.msra.mxu1 %v21275_v34  ;;  %17319 = vmatprep.mubr.f32.mxu1 %v21869_v40  ;;  %v6235_v40 = vmul.f32 %v20738_v21, %v20738_v21  ;;  %v23520_v3 = vand.u32 4294901760, %v22081_v49 }
 0x394   : > { %19375 = vmatprep.subr.bf16.mxu1 %v21304_v60  ;;  %v22088_v9 = vsub.f32 %v6233_v8, %v22076_v10  ;;  %v6238_v8 = vmul.f32 %v20741_v16, %v20741_v16 }
 0x395   : > { %v6333_v56 = vsub.f32 %v22081_v49, %v23520_v3 }
 0x396   : > { %17320 = vmatmul.mubr.f32.gmra.mrb[26].mxu1 %v21880_v13  ;;  %v6236_v13 = vmul.f32 %v20739_v7, %v20739_v7  ;;  %v23525_v14 = vand.u32 4294901760, %v22088_v9  ;;  %v22120_v16 = vand.u32 4294901760, %v6238_v8 }
 0x397   : > { %19377 = vmatpush3.bf16.msra.mxu1 %v21304_v60  ;;  %17522 = vmatprep.mubr.f32.mxu1 %v6324_v5  ;;  %v22090_v5 = vand.u32 4294901760, %v6235_v40  ;;  %v6334_v3 = vand.u32 4294901760, %v6333_v56 }
 0x398   : > { %19379 = vmatprep.subr.bf16.mxu1 %v21325_v11  ;;  %v22102_v7 = vand.u32 4294901760, %v6236_v13  ;;  %v22136_v39 = vsub.f32 %v6238_v8, %v22120_v16 }
 0x399   : > { %v22108_v23 = vsub.f32 %v6235_v40, %v22090_v5  ;;  %v6343_v40 = vsub.f32 %v22088_v9, %v23525_v14 }
 0x39a   : > { %v6392_v8 = vand.u32 4294901760, %v22136_v39 }
 0x39b   : > { %19381 = vmatpush3.bf16.msra.mxu1 %v21325_v11  ;;  %v23529_v32 = vand.u32 4294901760, %v22108_v23  ;;  %v6344_v14 = vand.u32 4294901760, %v6343_v40 }
 0x39c   : > { %19383 = vmatprep.subr.bf16.mxu1 %v21361_v50 }
 0x39d   : > { %v22094_v21 = vpop.f32.mrb[18].mxu1  ;;  %v6363_v59 = vsub.f32 %v22108_v23, %v23529_v32  ;;  %v6383_v32 = vsub.f32 %v22128_v22, %v6382_v27 }
 0x39e   : > { %23663 = vst [vmem:[#allocation38_spill] sm:$0xff] %v22094_v21  ;;  %v22096_v25 = vpop.f32.mrb[19].mxu1  ;;  %v22118_v21 = vsub.f32 %v6236_v13, %v22102_v7 }
 0x39f   : > { %23664 = vst [vmem:[#allocation39_spill] sm:$0xff] %v22096_v25  ;;  %19385 = vmatpush3.bf16.msra.mxu1 %v21361_v50  ;;  %v23528_v25 = vand.u32 4294901760, %v22100_v45  ;;  %v6364_v40 = vand.u32 4294901760, %v6363_v59  ;;  %v23669_v59 = vand.u32 4294901760, %v22108_v23 }
 0x3a0   : > { %19387 = vmatprep.subr.bf16.mxu1 %v21376_v0  ;;  %v6372_v57 = vand.u32 4294901760, %v22118_v21 }
 0x3a1   : > { %v6353_v13 = vsub.f32 %v22100_v45, %v23528_v25 }
 0x3a2   : > { %v6373_v25 = vsub.f32 %v22118_v21, %v6372_v57 }
 0x3a3   : > { %19389 = vmatpush3.bf16.msra.mxu1 %v21376_v0  ;;  %v6354_v56 = vand.u32 4294901760, %v6353_v13  ;;  %v6384_v13 = vand.u32 4294901760, %v6383_v32  ;;  %v23666_v32 = vand.u32 4294901760, %v22081_v49 }
 0x3a4   : > { %19391 = vmatprep.subr.bf16.mxu1 %v21396_v44  ;;  %v6374_v42 = vand.u32 4294901760, %v6373_v25  ;;  %v23668_v25 = vand.u32 4294901760, %v22100_v45 }
 0x3a7   : > { %19393 = vmatpush3.bf16.msra.mxu1 %v21396_v44 }
 0x3a8   : > { %19395 = vmatprep.subr.bf16.mxu1 %v21291_v48 }
 0x3aa   : > { %17523 = vmatmul.mubr.f32.vlgmr.msra.gmra.mrb[28].mxu1 %v6334_v3  ;;  %v6393_v3 = vsub.f32 %v22136_v39, %v6392_v8 }
 0x3ab   : > { %19397 = vmatpush3.bf16.msra.mxu1 %v21291_v48  ;;  %17525 = vmatprep.mubr.f32.mxu1 %v6344_v14 }
 0x3ac   : > { %19399 = vmatprep.subr.bf16.mxu1 %v21294_v53  ;;  %v6394_v14 = vand.u32 4294901760, %v6393_v3 }
 0x3ae   : > { %17526 = vmatmul.mubr.f32.gmra.mrb[30].mxu1 %v6354_v56 }
 0x3af   : > { %19401 = vmatpush3.bf16.msra.mxu1 %v21294_v53  ;;  %17528 = vmatprep.mubr.f32.mxu1 %v6364_v40 }
 0x3b0   : > { %19403 = vmatprep.subr.bf16.mxu1 %v23647_v51 }
 0x3b2   : > { %17529 = vmatmul.mubr.f32.gmra.mrb[32].mxu1 %v6374_v42  ;;  %v23665_v42 = vand.u32 4294901760, %v22050_v28 }
 0x3b3   : > { %19405 = vmatpush3.bf16.msra.mxu1 %v23647_v51  ;;  %17531 = vmatprep.mubr.f32.mxu1 %v6384_v13 }
 0x3b4   : > { %19407 = vmatprep.subr.bf16.mxu1 %v23648_v55 }
 0x3b6   : > { %17532 = vmatmul.mubr.f32.gmra.mrb[34].mxu1 %v6394_v14 }
 0x3b7   : > { %19409 = vmatpush3.bf16.msra.mxu1 %v23648_v55  ;;  %17566 = vmatprep.mubr.f32.mxu1 %v22045_v41 }
 0x3b8   : > { %19411 = vmatprep.subr.bf16.mxu1 %v23649_v61 }
 0x3bb   : > { %19413 = vmatpush3.bf16.msra.mxu1 %v23649_v61 }
 0x3bc   : > { %19415 = vmatprep.subr.bf16.mxu1 %v23650_v62 }
 0x3bf   : > { %19417 = vmatpush3.bf16.msra.mxu1 %v23650_v62 }
 0x3c0   : > { %19419 = vmatprep.subr.bf16.mxu1 %v21398_v63 }
 0x3c3   : > { %19421 = vmatpush3.bf16.msra.mxu1 %v21398_v63 }
 0x3c4   : > { %19423 = vmatprep.subr.bf16.mxu1 %v21418_v43 }
 0x3c7   : > { %19425 = vmatpush3.bf16.msra.mxu1 %v21418_v43 }
 0x3c8   : > { %19427 = vmatprep.subr.bf16.mxu1 %v21515_v54 }
 0x3ca   : > { %17567 = vmatmul.mubr.f32.vlgmr.msra.gmra.mrb[28].mxu1 %v22071_v19 }
 0x3cb   : > { %19429 = vmatpush3.bf16.msra.mxu1 %v21515_v54  ;;  %17569 = vmatprep.mubr.f32.mxu1 %v22076_v10 }
 0x3cc   : > { %19431 = vmatprep.subr.bf16.mxu1 %v21538_v4 }
 0x3ce   : > { %17570 = vmatmul.mubr.f32.gmra.mrb[30].mxu1 %v22083_v37 }
 0x3cf   : > { %19433 = vmatpush3.bf16.msra.mxu1 %v21538_v4  ;;  %17572 = vmatprep.mubr.f32.mxu1 %v22090_v5 }
 0x3d0   : > { %19435 = vmatprep.subr.bf16.mxu1 %v21551_v15 }
 0x3d2   : > { %17573 = vmatmul.mubr.f32.gmra.mrb[32].mxu1 %v22102_v7 }
 0x3d3   : > { %19437 = vmatpush3.bf16.msra.mxu1 %v21551_v15  ;;  %17575 = vmatprep.mubr.f32.mxu1 %v22110_v38 }
 0x3d4   : > { %19439 = vmatprep.subr.bf16.mxu1 %v21561_v29 }
 0x3d6   : > { %17576 = vmatmul.mubr.f32.gmra.mrb[34].mxu1 %v22120_v16 }
 0x3d7   : > { %19441 = vmatpush3.bf16.msra.mxu1 %v21561_v29  ;;  %17610 = vmatprep.mubr.f32.mxu1 %v22050_v28  ;;  %v23667_v28 = vand.u32 4294901760, %v22088_v9 }
 0x3d8   : > { %19443 = vmatprep.subr.bf16.mxu1 %v21572_v20 }
 0x3db   : > { %19445 = vmatpush3.bf16.msra.mxu1 %v21572_v20 }
 0x3dc   : > { %19447 = vmatprep.subr.bf16.mxu1 %v21582_v24 }
 0x3df   : > { %19449 = vmatpush3.bf16.msra.mxu1 %v21582_v24 }
 0x3e0   : > { %19451 = vmatprep.subr.bf16.mxu1 %v21590_v36 }
 0x3e3   : > { %19453 = vmatpush3.bf16.msra.mxu1 %v21590_v36 }
 0x3e4   : > { %19455 = vmatprep.subr.bf16.mxu1 %v21598_v47 }
 0x3e7   : > { %19457 = vmatpush3.bf16.msra.mxu1 %v21598_v47 }
 0x3e8   : > { %19459 = vmatprep.subr.bf16.mxu1 %v21238_v12 }
 0x3ea   : > { %17611 = vmatmul.mubr.f32.vlgmr.msra.gmra.mrb[28].mxu1 %v22081_v49 }
 0x3eb   : > { %19461 = vmatpush3.bf16.msra.mxu1 %v21238_v12  ;;  %17613 = vmatprep.mubr.f32.mxu1 %v22088_v9 }
 0x3ec   : > { %19463 = vmatprep.subr.bf16.mxu1 %v21246_v18 }
 0x3ee   : > { %17614 = vmatmul.mubr.f32.gmra.mrb[30].mxu1 %v22100_v45 }
 0x3ef   : > { %19465 = vmatpush3.bf16.msra.mxu1 %v21246_v18  ;;  %17616 = vmatprep.mubr.f32.mxu1 %v22108_v23 }
 0x3f0   : > { %19467 = vmatprep.subr.bf16.mxu1 %v21275_v34 }
 0x3f2   : > { %17617 = vmatmul.mubr.f32.gmra.mrb[32].mxu1 %v22118_v21 }
 0x3f3   : > { %19469 = vmatpush3.bf16.msra.mxu1 %v21275_v34  ;;  %17619 = vmatprep.mubr.f32.mxu1 %v22128_v22 }
 0x3f4   : > { %19471 = vmatprep.subr.bf16.mxu1 %v21304_v60 }
 0x3f6   : > { %17620 = vmatmul.mubr.f32.gmra.mrb[34].mxu1 %v22136_v39 }
 0x3f7   : > { %19473 = vmatpush3.bf16.msra.mxu1 %v21304_v60  ;;  %17654 = vmatprep.mubr.f32.mxu1 %v23665_v42 }
 0x3f8   : > { %19475 = vmatprep.subr.bf16.mxu1 %v21325_v11 }
 0x3fb   : > { %19477 = vmatpush3.bf16.msra.mxu1 %v21325_v11 }
 0x3fc   : > { %19479 = vmatprep.subr.bf16.mxu1 %v21361_v50 }
 0x3ff   : > { %19481 = vmatpush3.bf16.msra.mxu1 %v21361_v50 }
 0x400   : > { %19483 = vmatprep.subr.bf16.mxu1 %v21376_v0 }
 0x403   : > { %19485 = vmatpush3.bf16.msra.mxu1 %v21376_v0 }
 0x404   : > { %19487 = vmatprep.subr.bf16.mxu1 %v21396_v44 }
 0x407   : > { %19489 = vmatpush3.bf16.msra.mxu1 %v21396_v44 }
 0x408   : > { %19491 = vmatprep.subr.bf16.mxu1 %v21441_v17 }
 0x40a   : > { %17655 = vmatmul.mubr.f32.vlgmr.msra.gmra.mrb[28].mxu1 %v23666_v32 }
 0x40b   : > { %19493 = vmatpush3.bf16.msra.mxu1 %v21441_v17  ;;  %17657 = vmatprep.mubr.f32.mxu1 %v23667_v28 }
 0x40c   : > { %19495 = vmatprep.subr.bf16.mxu1 %v21449_v30 }
 0x40e   : > { %17658 = vmatmul.mubr.f32.gmra.mrb[30].mxu1 %v23668_v25 }
 0x40f   : > { %19497 = vmatpush3.bf16.msra.mxu1 %v21449_v30  ;;  %17660 = vmatprep.mubr.f32.mxu1 %v23669_v59 }
 0x410   : > { %19499 = vmatprep.subr.bf16.mxu1 %v21455_v6 }
 0x412   : > { %17661 = vmatmul.mubr.f32.gmra.mrb[32].mxu1 %v6372_v57 }
 0x413   : > { %19501 = vmatpush3.bf16.msra.mxu1 %v21455_v6  ;;  %17663 = vmatprep.mubr.f32.mxu1 %v6382_v27 }
 0x414   : > { %19503 = vmatprep.subr.bf16.mxu1 %v23656_v26 }
 0x416   : > { %17664 = vmatmul.mubr.f32.gmra.mrb[34].mxu1 %v6392_v8 }
 0x417   : > { %19505 = vmatpush3.bf16.msra.mxu1 %v23656_v26  ;;  %17698 = vmatprep.mubr.f32.mxu1 %v22045_v41 }
 0x418   : > { %19507 = vmatprep.subr.bf16.mxu1 %v23657_v33 }
 0x41b   : > { %19509 = vmatpush3.bf16.msra.mxu1 %v23657_v33 }
 0x41c   : > { %19511 = vmatprep.subr.bf16.mxu1 %v23658_v1 }
 0x41f   : > { %19513 = vmatpush3.bf16.msra.mxu1 %v23658_v1 }
 0x420   : > { %19515 = vmatprep.subr.bf16.mxu1 %v23659_v2 }
 0x423   : > { %19517 = vmatpush3.bf16.msra.mxu1 %v23659_v2 }
 0x424   : > { %19519 = vmatprep.subr.bf16.mxu1 %v23660_v52 }
 0x427   : > { %19521 = vmatpush3.bf16.msra.mxu1 %v23660_v52 }
 0x428   : > { %19523 = vmatprep.subr.bf16.mxu1 %v21238_v12 }
 0x42a   : > { %17699 = vmatmul.mubr.f32.vlgmr.msra.gmra.mrb[28].mxu1 %v22071_v19 }
 0x42b   : > { %19525 = vmatpush3.bf16.msra.mxu1 %v21238_v12  ;;  %17701 = vmatprep.mubr.f32.mxu1 %v22076_v10 }
 0x42c   : > { %19527 = vmatprep.subr.bf16.mxu1 %v21246_v18 }
 0x42e   : > { %17702 = vmatmul.mubr.f32.gmra.mrb[30].mxu1 %v22083_v37 }
 0x42f   : > { %19529 = vmatpush3.bf16.msra.mxu1 %v21246_v18  ;;  %17704 = vmatprep.mubr.f32.mxu1 %v22090_v5 }
 0x430   : > { %19531 = vmatprep.subr.bf16.mxu1 %v21275_v34 }
 0x432   : > { %17705 = vmatmul.mubr.f32.gmra.mrb[32].mxu1 %v22102_v7 }
 0x433   : > { %19533 = vmatpush3.bf16.msra.mxu1 %v21275_v34  ;;  %17707 = vmatprep.mubr.f32.mxu1 %v22110_v38 }
 0x434   : > { %19535 = vmatprep.subr.bf16.mxu1 %v21304_v60 }
 0x436   : > { %17708 = vmatmul.mubr.f32.gmra.mrb[34].mxu1 %v22120_v16 }
 0x437   : > { %19537 = vmatpush3.bf16.msra.mxu1 %v21304_v60  ;;  %17742 = vmatprep.mubr.f32.mxu1 %v22045_v41 }
 0x438   : > { %19539 = vmatprep.subr.bf16.mxu1 %v21325_v11 }
 0x43b   : > { %19541 = vmatpush3.bf16.msra.mxu1 %v21325_v11 }
 0x43c   : > { %19543 = vmatprep.subr.bf16.mxu1 %v21361_v50 }
 0x43f   : > { %19545 = vmatpush3.bf16.msra.mxu1 %v21361_v50 }
 0x440   : > { %19547 = vmatprep.subr.bf16.mxu1 %v21376_v0 }
 0x443   : > { %19549 = vmatpush3.bf16.msra.mxu1 %v21376_v0 }
 0x444   : > { %19551 = vmatprep.subr.bf16.mxu1 %v21396_v44 }
 0x447   : > { %19553 = vmatpush3.bf16.msra.mxu1 %v21396_v44 }
 0x44a   : > { %17743 = vmatmul.mubr.f32.vlgmr.msra.gmra.mrb[28].mxu1 %v22071_v19 }
 0x44b   : > { %17745 = vmatprep.mubr.f32.mxu1 %v22076_v10 }
 0x44e   : > { %17746 = vmatmul.mubr.f32.gmra.mrb[30].mxu1 %v22083_v37 }
 0x44f   : > { %17748 = vmatprep.mubr.f32.mxu1 %v22090_v5 }
 0x452   : > { %17749 = vmatmul.mubr.f32.gmra.mrb[32].mxu1 %v22102_v7 }
 0x453   : > { %17751 = vmatprep.mubr.f32.mxu1 %v22110_v38 }
 0x456   : > { %17752 = vmatmul.mubr.f32.gmra.mrb[34].mxu1 %v22120_v16 }
 0x457   : > { %18190 = vmatprep.mubr.f32.mxu1 %v21709_v35 }
 0x45d   : > { %v17312_v39 = vpop.f32.mrb[20].mxu1 }
 0x45e   : > { %v4227_v27 = vand.u32 4294901760, %v17312_v39  ;;  %v4177_v57 = vpop.f32.mrb[21].mxu1 }
 0x45f   : > { %v4224_v22 = vand.u32 4294901760, %v4177_v57 }
 0x460   : > { %v4319_v45 = vsub.f32 %v17312_v39, %v4227_v27 }
 0x461   : > { %v22282_v41 = vpack.c.bf16 %v4227_v27, %v4224_v22  ;;  %v4312_v19 = vsub.f32 %v4177_v57, %v4224_v22  ;;  %v17315_v10 = vpop.f32.mrb[22].mxu1 }
 0x462   : > { %v4320_v49 = vand.u32 4294901760, %v4319_v45  ;;  %v4729_v37 = vand.u32 4294901760, %v17315_v10  ;;  %v4189_v9 = vpop.f32.mrb[23].mxu1 }
 0x463   : > { %v4313_v5 = vand.u32 4294901760, %v4312_v19  ;;  %v4726_v21 = vand.u32 4294901760, %v4189_v9  ;;  %19267 = vmatprep.subr.bf16.mxu0 %v22282_v41  ;;  %v19274_v38 = vpack.c.bf16 %v4319_v45, %v4312_v19 }
 0x464   : > { %v4321_v7 = vsub.f32 %v4319_v45, %v4320_v49  ;;  %v4821_v23 = vsub.f32 %v17315_v10, %v4729_v37  ;;  %19269 = vmatpush3.bf16.msra.mxu0 %v22282_v41 }
 0x465   : > { %v4314_v16 = vsub.f32 %v4312_v19, %v4313_v5  ;;  %v22286_v56 = vpack.c.bf16 %v4729_v37, %v4726_v21  ;;  %v4814_v8 = vsub.f32 %v4189_v9, %v4726_v21  ;;  %v17318_v40 = vpop.f32.mrb[24].mxu1  ;;  %v19282_v3 = vpack.c.bf16 %v4320_v49, %v4313_v5 }
 0x466   : > { %v4822_v13 = vand.u32 4294901760, %v4821_v23  ;;  %v5231_v14 = vand.u32 4294901760, %v17318_v40  ;;  %v4201_v42 = vpop.f32.mrb[25].mxu1  ;;  %v4322_v32 = vand.u32 4294901760, %v4321_v7 }
 0x467   : > { %v4815_v28 = vand.u32 4294901760, %v4814_v8  ;;  %v5228_v25 = vand.u32 4294901760, %v4201_v42  ;;  %17327 = vmatmul.mubr.f32.vlgmr.msra.gmra.mrb[8].mxu0 %v21744_v31  ;;  %v4315_v59 = vand.u32 4294901760, %v4314_v16  ;;  %v22289_v39 = vpack.c.bf16 %v4821_v23, %v4814_v8 }
 0x468   : > { %v4823_v27 = vsub.f32 %v4821_v23, %v4822_v13  ;;  %v5323_v57 = vsub.f32 %v17318_v40, %v5231_v14  ;;  %17333 = vmatprep.mubr.f32.mxu0 %v21699_v58 }
 0x469   : > { %v4816_v22 = vsub.f32 %v4814_v8, %v4815_v28  ;;  %v22292_v45 = vpack.c.bf16 %v5231_v14, %v5228_v25  ;;  %v5316_v19 = vsub.f32 %v4201_v42, %v5228_v25  ;;  %v17321_v10 = vpop.f32.mrb[26].mxu1  ;;  %v19270_v49 = vpack.c.bf16 %v4322_v32, %v4315_v59 }
 0x46a   : > { %v5324_v37 = vand.u32 4294901760, %v5323_v57  ;;  %v5733_v9 = vand.u32 4294901760, %v17321_v10  ;;  %v4213_v5 = vpop.f32.mrb[27].mxu1  ;;  %v4824_v21 = vand.u32 4294901760, %v4823_v27  ;;  %v19306_v7 = vpack.c.bf16 %v4822_v13, %v4815_v28 }
 0x46b   : > { %v5317_v52 = vand.u32 4294901760, %v5316_v19  ;;  %v5730_v2 = vand.u32 4294901760, %v4213_v5  ;;  %19271 = vmatprep.subr.bf16.mxu0 %v19270_v49  ;;  %v4817_v16 = vand.u32 4294901760, %v4816_v22  ;;  %v22294_v1 = vpack.c.bf16 %v5323_v57, %v5316_v19 }
 0x46c   : > { %v5325_v23 = vsub.f32 %v5323_v57, %v5324_v37  ;;  %v5825_v40 = vsub.f32 %v17321_v10, %v5733_v9  ;;  %19273 = vmatpush3.bf16.msra.mxu0 %v19270_v49  ;;  %v23670_v57 = vld [vmem:[#allocation29_spill] sm:$0xff] }
 0x46d   : > { %v5318_v8 = vsub.f32 %v5316_v19, %v5317_v52  ;;  %v22296_v14 = vpack.c.bf16 %v5733_v9, %v5730_v2  ;;  %v5818_v42 = vsub.f32 %v4213_v5, %v5730_v2  ;;  %19275 = vmatprep.subr.bf16.mxu0 %v19274_v38  ;;  %v19294_v32 = vpack.c.bf16 %v4824_v21, %v4817_v16  ;;  %v23672_v5 = vld [vmem:[#allocation30_spill] sm:$0xff] }
 0x46e   : > { %v5826_v25 = vand.u32 4294901760, %v5825_v40  ;;  %v5326_v59 = vand.u32 4294901760, %v5325_v23  ;;  %v22298_v33 = vpack.c.bf16 %v5324_v37, %v5317_v52  ;;  %v23671_v37 = vld [vmem:[#allocation33_spill] sm:$0xff] }
 0x46f   : > { %v5819_v13 = vand.u32 4294901760, %v5818_v42  ;;  %17334 = vmatmul.mubr.f32.vlgmr.msra.gmra.mrb[8].mxu0 %v21724_v46  ;;  %v5319_v28 = vand.u32 4294901760, %v5318_v8  ;;  %v22301_v27 = vpack.c.bf16 %v5825_v40, %v5818_v42 }
 0x470   : > { %v5827_v22 = vsub.f32 %v5825_v40, %v5826_v25  ;;  %19277 = vmatpush3.bf16.msra.mxu0 %v19274_v38  ;;  %17340 = vmatprep.mubr.f32.mxu0 %v23670_v57  ;;  %v23673_v38 = vld [vmem:[#allocation34_spill] sm:$0xff] }
 0x471   : > { %v5820_v19 = vsub.f32 %v5818_v42, %v5819_v13  ;;  %19279 = vmatprep.subr.bf16.mxu0 %v22282_v41  ;;  %v19318_v2 = vpack.c.bf16 %v5326_v59, %v5319_v28  ;;  %v22305_v10 = vpack.c.bf16 %v5826_v25, %v5819_v13 }
 0x472   : > { %v5828_v49 = vand.u32 4294901760, %v5827_v22 }
 0x473   : > { %v5821_v9 = vand.u32 4294901760, %v5820_v19 }
 0x475   : > { %v22307_v52 = vpack.c.bf16 %v5828_v49, %v5821_v9 }
 0x477   : > { %17341 = vmatmul.mubr.f32.vlgmr.msra.gmra.mrb[8].mxu0 %v23671_v37 }
 0x478   : > { %19281 = vmatpush3.bf16.msra.mxu0 %v22282_v41  ;;  %17347 = vmatprep.mubr.f32.mxu0 %v23672_v5 }
 0x479   : > { %19283 = vmatprep.subr.bf16.mxu0 %v19282_v3 }
 0x47f   : > { %17348 = vmatmul.mubr.f32.vlgmr.msra.gmra.mrb[8].mxu0 %v23673_v38 }
 0x480   : > { %19285 = vmatpush3.bf16.msra.mxu0 %v19282_v3  ;;  %17354 = vmatprep.mubr.f32.mxu0 %v21699_v58 }
 0x481   : > { %19287 = vmatprep.subr.bf16.mxu0 %v22282_v41 }
 0x487   : > { %17355 = vmatmul.mubr.f32.vlgmr.msra.gmra.mrb[8].mxu0 %v21724_v46 }
 0x488   : > { %19289 = vmatpush3.bf16.msra.mxu0 %v22282_v41  ;;  %17361 = vmatprep.mubr.f32.mxu0 %v21699_v58 }
 0x489   : > { %19291 = vmatprep.subr.bf16.mxu0 %v22286_v56 }
 0x48f   : > { %17362 = vmatmul.mubr.f32.vlgmr.msra.gmra.mrb[8].mxu0 %v21724_v46 }
 0x490   : > { %19293 = vmatpush3.bf16.msra.mxu0 %v22286_v56  ;;  %17368 = vmatprep.mubr.f32.mxu0 %v21709_v35 }
 0x491   : > { %19295 = vmatprep.subr.bf16.mxu0 %v19294_v32 }
 0x493   : > { %17369 = vmatmul.mubr.f32.vlgmr.msra.gmra.mrb[10].mxu0 %v21744_v31 }
 0x494   : > { %19297 = vmatpush3.bf16.msra.mxu0 %v19294_v32  ;;  %17375 = vmatprep.mubr.f32.mxu0 %v21699_v58 }
 0x495   : > { %19299 = vmatprep.subr.bf16.mxu0 %v22289_v39 }
 0x49b   : > { %17376 = vmatmul.mubr.f32.vlgmr.msra.gmra.mrb[10].mxu0 %v21724_v46 }
 0x49c   : > { %19301 = vmatpush3.bf16.msra.mxu0 %v22289_v39  ;;  %17382 = vmatprep.mubr.f32.mxu0 %v23670_v57 }
 0x49d   : > { %19303 = vmatprep.subr.bf16.mxu0 %v22286_v56 }
 0x4a3   : > { %17383 = vmatmul.mubr.f32.vlgmr.msra.gmra.mrb[10].mxu0 %v23671_v37 }
 0x4a4   : > { %19305 = vmatpush3.bf16.msra.mxu0 %v22286_v56  ;;  %17389 = vmatprep.mubr.f32.mxu0 %v23672_v5 }
 0x4a5   : > { %19307 = vmatprep.subr.bf16.mxu0 %v19306_v7 }
 0x4ab   : > { %17390 = vmatmul.mubr.f32.vlgmr.msra.gmra.mrb[10].mxu0 %v23673_v38 }
 0x4ac   : > { %19309 = vmatpush3.bf16.msra.mxu0 %v19306_v7  ;;  %17396 = vmatprep.mubr.f32.mxu0 %v21699_v58 }
 0x4ad   : > { %19311 = vmatprep.subr.bf16.mxu0 %v22286_v56 }
 0x4b3   : > { %17397 = vmatmul.mubr.f32.vlgmr.msra.gmra.mrb[10].mxu0 %v21724_v46 }
 0x4b4   : > { %19313 = vmatpush3.bf16.msra.mxu0 %v22286_v56  ;;  %17403 = vmatprep.mubr.f32.mxu0 %v21699_v58 }
 0x4b5   : > { %19315 = vmatprep.subr.bf16.mxu0 %v22292_v45 }
 0x4bb   : > { %17404 = vmatmul.mubr.f32.vlgmr.msra.gmra.mrb[10].mxu0 %v21724_v46 }
 0x4bc   : > { %19317 = vmatpush3.bf16.msra.mxu0 %v22292_v45  ;;  %17410 = vmatprep.mubr.f32.mxu0 %v21709_v35 }
 0x4bd   : > { %19319 = vmatprep.subr.bf16.mxu0 %v19318_v2 }
 0x4bf   : > { %17411 = vmatmul.mubr.f32.vlgmr.msra.gmra.mrb[12].mxu0 %v21744_v31 }
 0x4c0   : > { %19321 = vmatpush3.bf16.msra.mxu0 %v19318_v2  ;;  %17417 = vmatprep.mubr.f32.mxu0 %v21699_v58 }
 0x4c1   : > { %19323 = vmatprep.subr.bf16.mxu0 %v22294_v1 }
 0x4c7   : > { %17418 = vmatmul.mubr.f32.vlgmr.msra.gmra.mrb[12].mxu0 %v21724_v46 }
 0x4c8   : > { %19325 = vmatpush3.bf16.msra.mxu0 %v22294_v1  ;;  %17424 = vmatprep.mubr.f32.mxu0 %v23670_v57 }
 0x4c9   : > { %19327 = vmatprep.subr.bf16.mxu0 %v22292_v45 }
 0x4cf   : > { %17425 = vmatmul.mubr.f32.vlgmr.msra.gmra.mrb[12].mxu0 %v23671_v37 }
 0x4d0   : > { %19329 = vmatpush3.bf16.msra.mxu0 %v22292_v45  ;;  %17431 = vmatprep.mubr.f32.mxu0 %v23672_v5 }
 0x4d1   : > { %19331 = vmatprep.subr.bf16.mxu0 %v22298_v33 }
 0x4d7   : > { %17432 = vmatmul.mubr.f32.vlgmr.msra.gmra.mrb[12].mxu0 %v23673_v38 }
 0x4d8   : > { %19333 = vmatpush3.bf16.msra.mxu0 %v22298_v33  ;;  %17438 = vmatprep.mubr.f32.mxu0 %v21699_v58 }
 0x4d9   : > { %19335 = vmatprep.subr.bf16.mxu0 %v22292_v45 }
 0x4df   : > { %17439 = vmatmul.mubr.f32.vlgmr.msra.gmra.mrb[12].mxu0 %v21724_v46 }
 0x4e0   : > { %19337 = vmatpush3.bf16.msra.mxu0 %v22292_v45  ;;  %17445 = vmatprep.mubr.f32.mxu0 %v21699_v58 }
 0x4e1   : > { %19339 = vmatprep.subr.bf16.mxu0 %v22296_v14 }
 0x4e7   : > { %17446 = vmatmul.mubr.f32.vlgmr.msra.gmra.mrb[12].mxu0 %v21724_v46 }
 0x4e8   : > { %19341 = vmatpush3.bf16.msra.mxu0 %v22296_v14  ;;  %17452 = vmatprep.mubr.f32.mxu0 %v21709_v35 }
 0x4e9   : > { %19343 = vmatprep.subr.bf16.mxu0 %v22307_v52 }
 0x4eb   : > { %17453 = vmatmul.mubr.f32.vlgmr.msra.gmra.mrb[14].mxu0 %v21744_v31 }
 0x4ec   : > { %19345 = vmatpush3.bf16.msra.mxu0 %v22307_v52  ;;  %17459 = vmatprep.mubr.f32.mxu0 %v21699_v58 }
 0x4ed   : > { %19347 = vmatprep.subr.bf16.mxu0 %v22301_v27 }
 0x4f3   : > { %17460 = vmatmul.mubr.f32.vlgmr.msra.gmra.mrb[14].mxu0 %v21724_v46 }
 0x4f4   : > { %19349 = vmatpush3.bf16.msra.mxu0 %v22301_v27  ;;  %17466 = vmatprep.mubr.f32.mxu0 %v23670_v57 }
 0x4f5   : > { %19351 = vmatprep.subr.bf16.mxu0 %v22296_v14 }
 0x4fb   : > { %17467 = vmatmul.mubr.f32.vlgmr.msra.gmra.mrb[14].mxu0 %v23671_v37 }
 0x4fc   : > { %19353 = vmatpush3.bf16.msra.mxu0 %v22296_v14  ;;  %17473 = vmatprep.mubr.f32.mxu0 %v23672_v5 }
 0x4fd   : > { %19355 = vmatprep.subr.bf16.mxu0 %v22305_v10 }
 0x503   : > { %17474 = vmatmul.mubr.f32.vlgmr.msra.gmra.mrb[14].mxu0 %v23673_v38 }
 0x504   : > { %19357 = vmatpush3.bf16.msra.mxu0 %v22305_v10  ;;  %17480 = vmatprep.mubr.f32.mxu0 %v21699_v58 }
 0x505   : > { %19359 = vmatprep.subr.bf16.mxu0 %v22296_v14 }
 0x50b   : > { %17481 = vmatmul.mubr.f32.vlgmr.msra.gmra.mrb[14].mxu0 %v21724_v46 }
 0x50c   : > { %19361 = vmatpush3.bf16.msra.mxu0 %v22296_v14  ;;  %17487 = vmatprep.mubr.f32.mxu0 %v21699_v58 }
 0x513   : > { %17488 = vmatmul.mubr.f32.vlgmr.msra.gmra.mrb[14].mxu0 %v21724_v46 }
 0x514   : > { %17758 = vmatprep.mubr.f32.mxu0 %v21709_v35 }
 0x51d   : > { %v17744_v33 = vpop.f32.mrb[28].mxu1 }
 0x51e   : > { %v7185_v1 = vand.u32 4294901760, %v17744_v33  ;;  %v7135_v41 = vpop.f32.mrb[29].mxu1 }
 0x51f   : > { %v7182_v56 = vand.u32 4294901760, %v7135_v41 }
 0x520   : > { %v7277_v3 = vsub.f32 %v17744_v33, %v7185_v1 }
 0x521   : > { %v22386_v39 = vpack.c.bf16 %v7185_v1, %v7182_v56  ;;  %v7270_v45 = vsub.f32 %v7135_v41, %v7182_v56  ;;  %v17747_v21 = vpop.f32.mrb[30].mxu1 }
 0x522   : > { %v7278_v7 = vand.u32 4294901760, %v7277_v3  ;;  %v7687_v16 = vand.u32 4294901760, %v17747_v21  ;;  %v7147_v23 = vpop.f32.mrb[31].mxu1 }
 0x523   : > { %v7271_v40 = vand.u32 4294901760, %v7270_v45  ;;  %v7684_v8 = vand.u32 4294901760, %v7147_v23  ;;  %19555 = vmatprep.subr.bf16.mxu0 %v22386_v39  ;;  %v19562_v14 = vpack.c.bf16 %v7277_v3, %v7270_v45 }
 0x524   : > { %v7279_v42 = vsub.f32 %v7277_v3, %v7278_v7  ;;  %v7779_v32 = vsub.f32 %v17747_v21, %v7687_v16  ;;  %19557 = vmatpush3.bf16.msra.mxu0 %v22386_v39 }
 0x525   : > { %v7272_v25 = vsub.f32 %v7270_v45, %v7271_v40  ;;  %v22390_v59 = vpack.c.bf16 %v7687_v16, %v7684_v8  ;;  %v7772_v13 = vsub.f32 %v7147_v23, %v7684_v8  ;;  %v17750_v28 = vpop.f32.mrb[32].mxu1  ;;  %v19570_v27 = vpack.c.bf16 %v7278_v7, %v7271_v40 }
 0x526   : > { %v7780_v22 = vand.u32 4294901760, %v7779_v32  ;;  %v8189_v19 = vand.u32 4294901760, %v17750_v28  ;;  %v7159_v2 = vpop.f32.mrb[33].mxu1  ;;  %v7280_v10 = vand.u32 4294901760, %v7279_v42 }
 0x527   : > { %v7773_v49 = vand.u32 4294901760, %v7772_v13  ;;  %v8186_v9 = vand.u32 4294901760, %v7159_v2  ;;  %17759 = vmatmul.mubr.f32.vlgmr.msra.gmra.mrb[16].mxu0 %v21744_v31  ;;  %v7273_v52 = vand.u32 4294901760, %v7272_v25  ;;  %v22393_v33 = vpack.c.bf16 %v7779_v32, %v7772_v13 }
 0x528   : > { %v7781_v1 = vsub.f32 %v7779_v32, %v7780_v22  ;;  %v8281_v41 = vsub.f32 %v17750_v28, %v8189_v19  ;;  %17765 = vmatprep.mubr.f32.mxu0 %v21699_v58 }
 0x529   : > { %v7774_v56 = vsub.f32 %v7772_v13, %v7773_v49  ;;  %v22396_v3 = vpack.c.bf16 %v8189_v19, %v8186_v9  ;;  %v8274_v45 = vsub.f32 %v7159_v2, %v8186_v9  ;;  %v17753_v21 = vpop.f32.mrb[34].mxu1  ;;  %v19558_v7 = vpack.c.bf16 %v7280_v10, %v7273_v52 }
 0x52a   : > { %v8282_v16 = vand.u32 4294901760, %v8281_v41  ;;  %v8691_v23 = vand.u32 4294901760, %v17753_v21  ;;  %v7171_v40 = vpop.f32.mrb[35].mxu1  ;;  %v7782_v8 = vand.u32 4294901760, %v7781_v1  ;;  %v22398_v42 = vpack.c.bf16 %v7780_v22, %v7773_v49 }
 0x52b   : > { %v8275_v26 = vand.u32 4294901760, %v8274_v45  ;;  %v8688_v25 = vand.u32 4294901760, %v7171_v40  ;;  %19559 = vmatprep.subr.bf16.mxu0 %v19558_v7  ;;  %v7775_v6 = vand.u32 4294901760, %v7774_v56  ;;  %v22400_v32 = vpack.c.bf16 %v8281_v41, %v8274_v45 }
 0x52c   : > { %v8283_v28 = vsub.f32 %v8281_v41, %v8282_v16  ;;  %v8783_v30 = vsub.f32 %v17753_v21, %v8691_v23  ;;  %19561 = vmatpush3.bf16.msra.mxu0 %v19558_v7 }
 0x52d   : > { %v8276_v13 = vsub.f32 %v8274_v45, %v8275_v26  ;;  %v22402_v19 = vpack.c.bf16 %v8691_v23, %v8688_v25  ;;  %v8776_v2 = vsub.f32 %v7171_v40, %v8688_v25  ;;  %19563 = vmatprep.subr.bf16.mxu0 %v19562_v14  ;;  %v19582_v10 = vpack.c.bf16 %v7782_v8, %v7775_v6  ;;  %v23677_v23 = vld [vmem:[#allocation17_spill] sm:$0xff] }
 0x52e   : > { %v8784_v9 = vand.u32 4294901760, %v8783_v30  ;;  %v8284_v52 = vand.u32 4294901760, %v8283_v28  ;;  %v22404_v1 = vpack.c.bf16 %v8282_v16, %v8275_v26 }
 0x52f   : > { %v8777_v22 = vand.u32 4294901760, %v8776_v2  ;;  %17766 = vmatmul.mubr.f32.vlgmr.msra.gmra.mrb[16].mxu0 %v21724_v46  ;;  %v8277_v49 = vand.u32 4294901760, %v8276_v13  ;;  %v22407_v56 = vpack.c.bf16 %v8783_v30, %v8776_v2 }
 0x530   : > { %v8785_v17 = vsub.f32 %v8783_v30, %v8784_v9  ;;  %19565 = vmatpush3.bf16.msra.mxu0 %v19562_v14  ;;  %17772 = vmatprep.mubr.f32.mxu0 %v23670_v57  ;;  %v23674_v30 = vld [vmem:[#allocation16_spill] sm:$0xff] }
 0x531   : > { %v8778_v41 = vsub.f32 %v8776_v2, %v8777_v22  ;;  %19567 = vmatprep.subr.bf16.mxu0 %v22386_v39  ;;  %v19606_v45 = vpack.c.bf16 %v8284_v52, %v8277_v49  ;;  %v22411_v21 = vpack.c.bf16 %v8784_v9, %v8777_v22  ;;  %v23686_v52 = vld [vmem:[#allocation19_spill] sm:$0xff] }
 0x532   : > { %v8786_v6 = vand.u32 4294901760, %v8785_v17 }
 0x533   : > { %v8779_v7 = vand.u32 4294901760, %v8778_v41 }
 0x535   : > { %v22413_v26 = vpack.c.bf16 %v8786_v6, %v8779_v7  ;;  %v23694_v7 = vld [vmem:[#allocation37_spill] sm:$0xff] }
 0x537   : > { %17773 = vmatmul.mubr.f32.vlgmr.msra.gmra.mrb[16].mxu0 %v23671_v37 }
 0x538   : > { %19569 = vmatpush3.bf16.msra.mxu0 %v22386_v39  ;;  %17779 = vmatprep.mubr.f32.mxu0 %v23672_v5 }
 0x539   : > { %19571 = vmatprep.subr.bf16.mxu0 %v19570_v27 }
 0x53f   : > { %17780 = vmatmul.mubr.f32.vlgmr.msra.gmra.mrb[16].mxu0 %v23673_v38 }
 0x540   : > { %19573 = vmatpush3.bf16.msra.mxu0 %v19570_v27  ;;  %17786 = vmatprep.mubr.f32.mxu0 %v21699_v58 }
 0x541   : > { %19575 = vmatprep.subr.bf16.mxu0 %v22386_v39 }
 0x547   : > { %17787 = vmatmul.mubr.f32.vlgmr.msra.gmra.mrb[16].mxu0 %v21724_v46 }
 0x548   : > { %19577 = vmatpush3.bf16.msra.mxu0 %v22386_v39  ;;  %17793 = vmatprep.mubr.f32.mxu0 %v21699_v58  ;;  %v22437_v39 = vmul.f32 %v23674_v30, %v23674_v30 }
 0x549   : > { %19579 = vmatprep.subr.bf16.mxu0 %v22390_v59 }
 0x54f   : > { %17794 = vmatmul.mubr.f32.vlgmr.msra.gmra.mrb[16].mxu0 %v21724_v46 }
 0x550   : > { %19581 = vmatpush3.bf16.msra.mxu0 %v22390_v59  ;;  %17800 = vmatprep.mubr.f32.mxu0 %v21709_v35 }
 0x551   : > { %19583 = vmatprep.subr.bf16.mxu0 %v19582_v10 }
 0x553   : > { %17801 = vmatmul.mubr.f32.vlgmr.msra.gmra.mrb[18].mxu0 %v21744_v31 }
 0x554   : > { %19585 = vmatpush3.bf16.msra.mxu0 %v19582_v10  ;;  %17807 = vmatprep.mubr.f32.mxu0 %v21699_v58 }
 0x555   : > { %19587 = vmatprep.subr.bf16.mxu0 %v22393_v33 }
 0x55b   : > { %17808 = vmatmul.mubr.f32.vlgmr.msra.gmra.mrb[18].mxu0 %v21724_v46 }
 0x55c   : > { %19589 = vmatpush3.bf16.msra.mxu0 %v22393_v33  ;;  %17814 = vmatprep.mubr.f32.mxu0 %v23670_v57  ;;  %v22447_v33 = vmul.f32 %v23677_v23, %v23677_v23 }
 0x55d   : > { %19591 = vmatprep.subr.bf16.mxu0 %v22390_v59 }
 0x562   : > { %v17363_v17 = vpop.f32.mrb[8].mxu0 }
 0x563   : > { %v22439_v14 = vmul.f32 %v17363_v17, %v17363_v17  ;;  %v22442_v27 = vmul.f32 %v17363_v17, %v23674_v30  ;;  %v4715_v16 = vpop.f32.mrb[9].mxu0  ;;  %17815 = vmatmul.mubr.f32.vlgmr.msra.gmra.mrb[18].mxu0 %v23671_v37 }
 0x564   : > { %v22449_v40 = vmul.f32 %v4715_v16, %v4715_v16  ;;  %v22452_v8 = vmul.f32 %v4715_v16, %v23677_v23  ;;  %19593 = vmatpush3.bf16.msra.mxu0 %v22390_v59  ;;  %17821 = vmatprep.mubr.f32.mxu0 %v23672_v5 }
 0x565   : > { %23675 = vst [vmem:[#allocation16_spill] sm:$0xff] %v22439_v14  ;;  %23676 = vst [vmem:[#allocation40_spill] sm:$0xff] %v22442_v27  ;;  %v22458_v25 = vadd.f32 %v22439_v14, %v22437_v39  ;;  %19595 = vmatprep.subr.bf16.mxu0 %v22398_v42 }
 0x566   : > { %23678 = vst [vmem:[#allocation17_spill] sm:$0xff] %v22449_v40  ;;  %23679 = vst [vmem:[#allocation41_spill] sm:$0xff] %v22452_v8  ;;  %v22463_v28 = vadd.f32 %v22449_v40, %v22447_v33 }
 0x567   : > { %23680 = vst [vmem:[#allocation42_spill] sm:$0xff] %v22458_v25 }
 0x568   : > { %23681 = vst [vmem:[#allocation43_spill] sm:$0xff] %v22463_v28 }
 0x56b   : > { %17822 = vmatmul.mubr.f32.vlgmr.msra.gmra.mrb[18].mxu0 %v23673_v38 }
 0x56c   : > { %19597 = vmatpush3.bf16.msra.mxu0 %v22398_v42  ;;  %17828 = vmatprep.mubr.f32.mxu0 %v21699_v58  ;;  %v23682_v42 = vld [vmem:[#allocation18_spill] sm:$0xff] }
 0x56d   : > { %19599 = vmatprep.subr.bf16.mxu0 %v22390_v59  ;;  %v22485_v13 = vmul.f32 %v23682_v42, %v23682_v42 }
 0x56f   : > { %23683 = vst [vmem:[#allocation18_spill] sm:$0xff] %v22485_v13 }
 0x573   : > { %17829 = vmatmul.mubr.f32.vlgmr.msra.gmra.mrb[18].mxu0 %v21724_v46 }
 0x574   : > { %19601 = vmatpush3.bf16.msra.mxu0 %v22390_v59  ;;  %17835 = vmatprep.mubr.f32.mxu0 %v21699_v58 }
 0x575   : > { %19603 = vmatprep.subr.bf16.mxu0 %v22396_v3 }
 0x57b   : > { %17836 = vmatmul.mubr.f32.vlgmr.msra.gmra.mrb[18].mxu0 %v21724_v46 }
 0x57c   : > { %19605 = vmatpush3.bf16.msra.mxu0 %v22396_v3  ;;  %17842 = vmatprep.mubr.f32.mxu0 %v21709_v35 }
 0x57d   : > { %19607 = vmatprep.subr.bf16.mxu0 %v19606_v45 }
 0x57f   : > { %17843 = vmatmul.mubr.f32.vlgmr.msra.gmra.mrb[20].mxu0 %v21744_v31 }
 0x580   : > { %19609 = vmatpush3.bf16.msra.mxu0 %v19606_v45  ;;  %17849 = vmatprep.mubr.f32.mxu0 %v21699_v58 }
 0x581   : > { %19611 = vmatprep.subr.bf16.mxu0 %v22400_v32 }
 0x587   : > { %17850 = vmatmul.mubr.f32.vlgmr.msra.gmra.mrb[20].mxu0 %v21724_v46 }
 0x588   : > { %19613 = vmatpush3.bf16.msra.mxu0 %v22400_v32  ;;  %17856 = vmatprep.mubr.f32.mxu0 %v23670_v57  ;;  %v22495_v32 = vmul.f32 %v23686_v52, %v23686_v52 }
 0x589   : > { %19615 = vmatprep.subr.bf16.mxu0 %v22396_v3 }
 0x58a   : > { %23687 = vst [vmem:[#allocation19_spill] sm:$0xff] %v22495_v32 }
 0x58e   : > { %v17405_v59 = vpop.f32.mrb[10].mxu0 }
 0x58f   : > { %v22487_v2 = vmul.f32 %v17405_v59, %v17405_v59  ;;  %v22490_v10 = vmul.f32 %v17405_v59, %v23682_v42  ;;  %v5217_v9 = vpop.f32.mrb[11].mxu0  ;;  %17857 = vmatmul.mubr.f32.vlgmr.msra.gmra.mrb[20].mxu0 %v23671_v37  ;;  %v22555_v59 = vld [vmem:[%s21224_s27] sm:$0xff] }
 0x590   : > { %v22497_v22 = vmul.f32 %v5217_v9, %v5217_v9  ;;  %v22500_v49 = vmul.f32 %v5217_v9, %v23686_v52  ;;  %19617 = vmatpush3.bf16.msra.mxu0 %v22396_v3  ;;  %17863 = vmatprep.mubr.f32.mxu0 %v23672_v5  ;;  %v9189_v42 = vmul.f32 %v22555_v59, %v22555_v59 }
 0x591   : > { %23684 = vst [vmem:[#allocation44_spill] sm:$0xff] %v22487_v2  ;;  %23685 = vst [vmem:[#allocation45_spill] sm:$0xff] %v22490_v10  ;;  %v22506_v41 = vadd.f32 %v22487_v2, %v22485_v13  ;;  %19619 = vmatprep.subr.bf16.mxu0 %v22404_v1  ;;  %v22613_v10 = vld [vmem:[%s21224_s27 + $0x20] sm:$0xff]  ;;  %v23705_v2 = vld [vmem:[#allocation39_spill] sm:$0xff] }
 0x592   : > { %23688 = vst [vmem:[#allocation46_spill] sm:$0xff] %v22497_v22  ;;  %23689 = vst [vmem:[#allocation47_spill] sm:$0xff] %v22500_v49  ;;  %v22511_v45 = vadd.f32 %v22497_v22, %v22495_v32  ;;  %v9193_v8 = vmul.f32 %v22613_v10, %v22613_v10  ;;  %v23703_v22 = vld [vmem:[#allocation38_spill] sm:$0xff]  ;;  %v22646_v28 = vmul.f32 %v23705_v2, %v23705_v2 }
 0x593   : > { %23690 = vst [vmem:[#allocation48_spill] sm:$0xff] %v22506_v41  ;;  %v22635_v41 = vld [vmem:[%s21224_s27 + $0x30] sm:$0xff] }
 0x594   : > { %23691 = vst [vmem:[#allocation49_spill] sm:$0xff] %v22511_v45  ;;  %v22632_v45 = vand.u32 4294901760, %v9193_v8  ;;  %23702 = vst [vmem:[#allocation56_spill] sm:$0xff] %v22635_v41 }
 0x595   : > { %23706 = vst [vmem:[#allocation39_spill] sm:$0xff] %v22646_v28 }
 0x597   : > { %17864 = vmatmul.mubr.f32.vlgmr.msra.gmra.mrb[20].mxu0 %v23673_v38 }
 0x598   : > { %19621 = vmatpush3.bf16.msra.mxu0 %v22404_v1  ;;  %17870 = vmatprep.mubr.f32.mxu0 %v21699_v58  ;;  %v23692_v1 = vld [vmem:[#allocation36_spill] sm:$0xff] }
 0x599   : > { %19623 = vmatprep.subr.bf16.mxu0 %v22396_v3  ;;  %v22535_v6 = vmul.f32 %v23692_v1, %v23692_v1 }
 0x59b   : > { %23693 = vst [vmem:[#allocation36_spill] sm:$0xff] %v22535_v6 }
 0x59f   : > { %17871 = vmatmul.mubr.f32.vlgmr.msra.gmra.mrb[20].mxu0 %v21724_v46 }
 0x5a0   : > { %19625 = vmatpush3.bf16.msra.mxu0 %v22396_v3  ;;  %17877 = vmatprep.mubr.f32.mxu0 %v21699_v58 }
 0x5a1   : > { %19627 = vmatprep.subr.bf16.mxu0 %v22402_v19 }
 0x5a7   : > { %17878 = vmatmul.mubr.f32.vlgmr.msra.gmra.mrb[20].mxu0 %v21724_v46 }
 0x5a8   : > { %19629 = vmatpush3.bf16.msra.mxu0 %v22402_v19  ;;  %17884 = vmatprep.mubr.f32.mxu0 %v21709_v35 }
 0x5a9   : > { %19631 = vmatprep.subr.bf16.mxu0 %v22413_v26 }
 0x5ab   : > { %17885 = vmatmul.mubr.f32.vlgmr.msra.gmra.mrb[22].mxu0 %v21744_v31 }
 0x5ac   : > { %19633 = vmatpush3.bf16.msra.mxu0 %v22413_v26  ;;  %17891 = vmatprep.mubr.f32.mxu0 %v21699_v58  ;;  %v22539_v26 = vmul.f32 %v23694_v7, %v23694_v7 }
 0x5ad   : > { %19635 = vmatprep.subr.bf16.mxu0 %v22407_v56 }
 0x5ae   : > { %23695 = vst [vmem:[#allocation37_spill] sm:$0xff] %v22539_v26 }
 0x5b3   : > { %17892 = vmatmul.mubr.f32.vlgmr.msra.gmra.mrb[22].mxu0 %v21724_v46 }
 0x5b4   : > { %19637 = vmatpush3.bf16.msra.mxu0 %v22407_v56  ;;  %17898 = vmatprep.mubr.f32.mxu0 %v23670_v57 }
 0x5b5   : > { %19639 = vmatprep.subr.bf16.mxu0 %v22402_v19 }
 0x5ba   : > { %v17447_v3 = vpop.f32.mrb[12].mxu0 }
 0x5bb   : > { %v22541_v17 = vmul.f32 %v17447_v3, %v17447_v3  ;;  %v22544_v30 = vmul.f32 %v17447_v3, %v23692_v1  ;;  %v5719_v16 = vpop.f32.mrb[13].mxu0  ;;  %17899 = vmatmul.mubr.f32.vlgmr.msra.gmra.mrb[22].mxu0 %v23671_v37  ;;  %v22568_v3 = vand.u32 4294901760, %v9189_v42 }
 0x5bc   : > { %v22547_v56 = vmul.f32 %v5719_v16, %v5719_v16  ;;  %v22550_v23 = vmul.f32 %v5719_v16, %v23694_v7  ;;  %19641 = vmatpush3.bf16.msra.mxu0 %v22402_v19  ;;  %17905 = vmatprep.mubr.f32.mxu0 %v23672_v5 }
 0x5bd   : > { %23696 = vst [vmem:[#allocation50_spill] sm:$0xff] %v22541_v17  ;;  %23697 = vst [vmem:[#allocation51_spill] sm:$0xff] %v22544_v30  ;;  %v22561_v9 = vadd.f32 %v22541_v17, %v22535_v6  ;;  %19643 = vmatprep.subr.bf16.mxu0 %v22411_v21  ;;  %v22574_v1 = vsub.f32 %v9189_v42, %v22568_v3  ;;  %v22607_v30 = vld [vmem:[%s21224_s27 + $0x18] sm:$0xff] }
 0x5be   : > { %23698 = vst [vmem:[#allocation52_spill] sm:$0xff] %v22547_v56  ;;  %23699 = vst [vmem:[#allocation53_spill] sm:$0xff] %v22550_v23  ;;  %v22566_v52 = vadd.f32 %v22547_v56, %v22539_v26  ;;  %v9192_v49 = vmul.f32 %v22607_v30, %v22607_v30  ;;  %v22627_v56 = vld [vmem:[%s21224_s27 + $0x28] sm:$0xff] }
 0x5bf   : > { %23700 = vst [vmem:[#allocation54_spill] sm:$0xff] %v22561_v9  ;;  %v23543_v7 = vand.u32 4294901760, %v22574_v1  ;;  %v9194_v17 = vmul.f32 %v22627_v56, %v22627_v56 }
 0x5c0   : > { %23701 = vst [vmem:[#allocation55_spill] sm:$0xff] %v22566_v52  ;;  %v22624_v9 = vand.u32 4294901760, %v9192_v49 }
 0x5c1   : > { %v22658_v57 = vand.u32 4294901760, %v9194_v17 }
 0x5c2   : > { %v22651_v35 = vsub.f32 %v9192_v49, %v22624_v9  ;;  %v22672_v49 = vsub.f32 %v9193_v8, %v22632_v45 }
 0x5c3   : > { %17906 = vmatmul.mubr.f32.vlgmr.msra.gmra.mrb[22].mxu0 %v23673_v38  ;;  %v22690_v8 = vsub.f32 %v9194_v17, %v22658_v57 }
 0x5c4   : > { %19645 = vmatpush3.bf16.msra.mxu0 %v22411_v21  ;;  %17912 = vmatprep.mubr.f32.mxu0 %v21699_v58  ;;  %v9281_v21 = vsub.f32 %v22574_v1, %v23543_v7  ;;  %v22596_v7 = vld [vmem:[%s21224_s27 + $0x10] sm:$0xff] }
 0x5c5   : > { %19647 = vmatprep.subr.bf16.mxu0 %v22402_v19 }
 0x5c6   : > { %v9282_v16 = vand.u32 4294901760, %v9281_v21  ;;  %v9191_v21 = vmul.f32 %v22596_v7, %v22596_v7 }
 0x5c8   : > { %v22604_v23 = vand.u32 4294901760, %v9191_v21 }
 0x5ca   : > { %v22622_v52 = vsub.f32 %v9191_v21, %v22604_v23  ;;  %v22641_v21 = vmul.f32 %v23703_v22, %v23703_v22 }
 0x5cb   : > { %17913 = vmatmul.mubr.f32.vlgmr.msra.gmra.mrb[22].mxu0 %v21724_v46 }
 0x5cc   : > { %19649 = vmatpush3.bf16.msra.mxu0 %v22402_v19  ;;  %17919 = vmatprep.mubr.f32.mxu0 %v21699_v58  ;;  %v22591_v19 = vld [vmem:[%s21224_s27 + $0x8] sm:$0xff]  ;;  %23704 = vst [vmem:[#allocation38_spill] sm:$0xff] %v22641_v21 }
 0x5cd   : > { %19651 = vmatprep.subr.bf16.mxu0 %v21238_v12  ;;  %v9190_v42 = vmul.f32 %v22591_v19, %v22591_v19 }
 0x5d3   : > { %17920 = vmatmul.mubr.f32.vlgmr.msra.gmra.mrb[22].mxu0 %v21724_v46  ;;  %v22661_v46 = vld [vmem:[%s21224_s27 + $0x38] sm:$0xff] }
 0x5d4   : > { %19653 = vmatpush3.bf16.msra.mxu0 %v21238_v12  ;;  %17954 = vmatprep.mubr.f32.mxu0 %v9282_v16  ;;  %v22602_v16 = vand.u32 4294901760, %v9190_v42  ;;  %23709 = vst [vmem:[#allocation59_spill] sm:$0xff] %v22661_v46  ;;  %v9196_v58 = vmul.f32 %v22661_v46, %v22661_v46 }
 0x5d5   : > { %19655 = vmatprep.subr.bf16.mxu0 %v21246_v18 }
 0x5d6   : > { %v22619_v27 = vsub.f32 %v9190_v42, %v22602_v16  ;;  %v9195_v42 = vmul.f32 %v22635_v41, %v22635_v41 }
 0x5d8   : > { %19657 = vmatpush3.bf16.msra.mxu0 %v21246_v18 }
 0x5d9   : > { %19659 = vmatprep.subr.bf16.mxu0 %v21275_v34 }
 0x5db   : > { %v23738_v6 = vld [vmem:[#allocation59_spill] sm:$0xff] }
 0x5dc   : > { %19661 = vmatpush3.bf16.msra.mxu0 %v21275_v34 }
 0x5dd   : > { %19663 = vmatprep.subr.bf16.mxu0 %v21304_v60 }
 0x5e0   : > { %19665 = vmatpush3.bf16.msra.mxu0 %v21304_v60 }
 0x5e1   : > { %19667 = vmatprep.subr.bf16.mxu0 %v21325_v11 }
 0x5e4   : > { %19669 = vmatpush3.bf16.msra.mxu0 %v21325_v11 }
 0x5e5   : > { %19671 = vmatprep.subr.bf16.mxu0 %v21361_v50 }
 0x5e6   : > { %v17489_v25 = vpop.f32.mrb[14].mxu0 }
 0x5e7   : > { %v22653_v38 = vmul.f32 %v17489_v25, %v17489_v25  ;;  %v22656_v5 = vmul.f32 %v17489_v25, %v23703_v22  ;;  %v6221_v37 = vpop.f32.mrb[15].mxu0  ;;  %v22674_v25 = vand.u32 4294901760, %v9195_v42 }
 0x5e8   : > { %v22665_v31 = vmul.f32 %v6221_v37, %v6221_v37  ;;  %v22668_v14 = vmul.f32 %v6221_v37, %v23705_v2  ;;  %19673 = vmatpush3.bf16.msra.mxu0 %v21361_v50  ;;  %v23714_v37 = vand.u32 4294901760, %v22619_v27 }
 0x5e9   : > { %23707 = vst [vmem:[#allocation57_spill] sm:$0xff] %v22653_v38  ;;  %23708 = vst [vmem:[#allocation58_spill] sm:$0xff] %v22656_v5  ;;  %v22678_v22 = vadd.f32 %v22653_v38, %v22641_v21  ;;  %19675 = vmatprep.subr.bf16.mxu0 %v21376_v0  ;;  %v22692_v5 = vand.u32 4294901760, %v9196_v58 }
 0x5ea   : > { %23710 = vst [vmem:[#allocation60_spill] sm:$0xff] %v22665_v31  ;;  %23711 = vst [vmem:[#allocation61_spill] sm:$0xff] %v22668_v14  ;;  %v22683_v40 = vadd.f32 %v22665_v31, %v22646_v28  ;;  %v9291_v2 = vsub.f32 %v22619_v27, %v23714_v37  ;;  %v23577_v14 = vand.u32 4294901760, %v22651_v35  ;;  %v23578_v31 = vand.u32 4294901760, %v22672_v49 }
 0x5eb   : > { %23712 = vst [vmem:[#allocation62_spill] sm:$0xff] %v22678_v22  ;;  %v23715_v22 = vand.u32 4294901760, %v22622_v52  ;;  %v9330_v28 = vand.u32 4294901760, %v22690_v8  ;;  %v22708_v46 = vsub.f32 %v9196_v58, %v22692_v5 }
 0x5ec   : > { %23713 = vst [vmem:[#allocation63_spill] sm:$0xff] %v22683_v40  ;;  %19677 = vmatpush3.bf16.msra.mxu0 %v21376_v0  ;;  %v22700_v40 = vsub.f32 %v9195_v42, %v22674_v25  ;;  %v9292_v37 = vand.u32 4294901760, %v9291_v2  ;;  %v9311_v17 = vsub.f32 %v22651_v35, %v23577_v14  ;;  %v9321_v42 = vsub.f32 %v22672_v49, %v23578_v31 }
 0x5ed   : > { %v9301_v38 = vsub.f32 %v22622_v52, %v23715_v22  ;;  %19679 = vmatprep.subr.bf16.mxu0 %v21396_v44  ;;  %v9331_v14 = vsub.f32 %v22690_v8, %v9330_v28  ;;  %v23580_v58 = vand.u32 4294901760, %v22708_v46 }
 0x5ee   : > { %v9340_v21 = vand.u32 4294901760, %v22700_v40  ;;  %v9312_v2 = vand.u32 4294901760, %v9311_v17 }
 0x5ef   : > { %v9302_v22 = vand.u32 4294901760, %v9301_v38  ;;  %v9322_v38 = vand.u32 4294901760, %v9321_v42  ;;  %v9332_v41 = vand.u32 4294901760, %v9331_v14  ;;  %v23721_v42 = vand.u32 4294901760, %v22622_v52  ;;  %v23722_v14 = vld [vmem:[#allocation21_spill] sm:$0xff] }
 0x5f0   : > { %19681 = vmatpush3.bf16.msra.mxu0 %v21396_v44  ;;  %v9341_v31 = vsub.f32 %v22700_v40, %v9340_v21 }
 0x5f1   : > { %19683 = vmatprep.subr.bf16.mxu0 %v21291_v48 }
 0x5f2   : > { %v9342_v17 = vand.u32 4294901760, %v9341_v31 }
 0x5f3   : > { %17955 = vmatmul.mubr.f32.vlgmr.msra.gmra.mrb[24].mxu0 %v9292_v37  ;;  %v9351_v37 = vsub.f32 %v22708_v46, %v23580_v58  ;;  %v23725_v58 = vld [vmem:[#allocation22_spill] sm:$0xff] }
 0x5f4   : > { %19685 = vmatpush3.bf16.msra.mxu0 %v21291_v48  ;;  %17957 = vmatprep.mubr.f32.mxu0 %v9302_v22 }
 0x5f5   : > { %19687 = vmatprep.subr.bf16.mxu0 %v21294_v53  ;;  %v9352_v22 = vand.u32 4294901760, %v9351_v37 }
 0x5f7   : > { %17958 = vmatmul.mubr.f32.gmra.mrb[26].mxu0 %v9312_v2  ;;  %v23716_v2 = vand.u32 4294901760, %v22574_v1 }
 0x5f8   : > { %19689 = vmatpush3.bf16.msra.mxu0 %v21294_v53  ;;  %17960 = vmatprep.mubr.f32.mxu0 %v9322_v38 }
 0x5f9   : > { %19691 = vmatprep.subr.bf16.mxu0 %v23647_v51 }
 0x5fb   : > { %17961 = vmatmul.mubr.f32.gmra.mrb[28].mxu0 %v9332_v41 }
 0x5fc   : > { %19693 = vmatpush3.bf16.msra.mxu0 %v23647_v51  ;;  %17963 = vmatprep.mubr.f32.mxu0 %v9342_v17  ;;  %v23724_v17 = vand.u32 4294901760, %v22672_v49 }
 0x5fd   : > { %19695 = vmatprep.subr.bf16.mxu0 %v23648_v55 }
 0x5ff   : > { %17964 = vmatmul.mubr.f32.gmra.mrb[30].mxu0 %v9352_v22  ;;  %v23719_v22 = vld [vmem:[#allocation20_spill] sm:$0xff] }
 0x600   : > { %19697 = vmatpush3.bf16.msra.mxu0 %v23648_v55  ;;  %17998 = vmatprep.mubr.f32.mxu0 %v22568_v3 }
 0x601   : > { %19699 = vmatprep.subr.bf16.mxu0 %v23649_v61 }
 0x604   : > { %19701 = vmatpush3.bf16.msra.mxu0 %v23649_v61 }
 0x605   : > { %19703 = vmatprep.subr.bf16.mxu0 %v23650_v62 }
 0x608   : > { %19705 = vmatpush3.bf16.msra.mxu0 %v23650_v62 }
 0x609   : > { %19707 = vmatprep.subr.bf16.mxu0 %v21398_v63 }
 0x60c   : > { %19709 = vmatpush3.bf16.msra.mxu0 %v21398_v63 }
 0x60d   : > { %19711 = vmatprep.subr.bf16.mxu0 %v21418_v43 }
 0x610   : > { %19713 = vmatpush3.bf16.msra.mxu0 %v21418_v43 }
 0x611   : > { %19715 = vmatprep.subr.bf16.mxu0 %v21515_v54 }
 0x613   : > { %17999 = vmatmul.mubr.f32.vlgmr.msra.gmra.mrb[24].mxu0 %v22602_v16 }
 0x614   : > { %19717 = vmatpush3.bf16.msra.mxu0 %v21515_v54  ;;  %18001 = vmatprep.mubr.f32.mxu0 %v22604_v23 }
 0x615   : > { %19719 = vmatprep.subr.bf16.mxu0 %v21538_v4 }
 0x617   : > { %18002 = vmatmul.mubr.f32.gmra.mrb[26].mxu0 %v22624_v9 }
 0x618   : > { %19721 = vmatpush3.bf16.msra.mxu0 %v21538_v4  ;;  %18004 = vmatprep.mubr.f32.mxu0 %v22632_v45 }
 0x619   : > { %19723 = vmatprep.subr.bf16.mxu0 %v21551_v15 }
 0x61b   : > { %18005 = vmatmul.mubr.f32.gmra.mrb[28].mxu0 %v22658_v57 }
 0x61c   : > { %19725 = vmatpush3.bf16.msra.mxu0 %v21551_v15  ;;  %18007 = vmatprep.mubr.f32.mxu0 %v22674_v25 }
 0x61d   : > { %19727 = vmatprep.subr.bf16.mxu0 %v21561_v29 }
 0x61f   : > { %18008 = vmatmul.mubr.f32.gmra.mrb[30].mxu0 %v22692_v5 }
 0x620   : > { %19729 = vmatpush3.bf16.msra.mxu0 %v21561_v29  ;;  %18042 = vmatprep.mubr.f32.mxu0 %v22574_v1  ;;  %v23723_v1 = vand.u32 4294901760, %v22651_v35 }
 0x621   : > { %19731 = vmatprep.subr.bf16.mxu0 %v21572_v20 }
 0x622   : > { %v22759_v31 = vpop.f32.mrb[16].mxu0 }
 0x623   : > { %v22763_v41 = vpop.f32.mrb[17].mxu0 }
 0x624   : > { %19733 = vmatpush3.bf16.msra.mxu0 %v21572_v20 }
 0x625   : > { %19735 = vmatprep.subr.bf16.mxu0 %v21582_v24 }
 0x628   : > { %19737 = vmatpush3.bf16.msra.mxu0 %v21582_v24 }
 0x629   : > { %19739 = vmatprep.subr.bf16.mxu0 %v21590_v36 }
 0x62c   : > { %19741 = vmatpush3.bf16.msra.mxu0 %v21590_v36 }
 0x62d   : > { %19743 = vmatprep.subr.bf16.mxu0 %v21598_v47 }
 0x630   : > { %19745 = vmatpush3.bf16.msra.mxu0 %v21598_v47 }
 0x631   : > { %19747 = vmatprep.subr.bf16.mxu0 %v21238_v12 }
 0x633   : > { %18043 = vmatmul.mubr.f32.vlgmr.msra.gmra.mrb[24].mxu0 %v22619_v27 }
 0x634   : > { %19749 = vmatpush3.bf16.msra.mxu0 %v21238_v12  ;;  %18045 = vmatprep.mubr.f32.mxu0 %v22622_v52  ;;  %v23728_v52 = vld [vmem:[#allocation24_spill] sm:$0xff] }
 0x635   : > { %19751 = vmatprep.subr.bf16.mxu0 %v21246_v18 }
 0x637   : > { %18046 = vmatmul.mubr.f32.gmra.mrb[26].mxu0 %v22651_v35  ;;  %v23727_v35 = vand.u32 4294901760, %v22708_v46 }
 0x638   : > { %19753 = vmatpush3.bf16.msra.mxu0 %v21246_v18  ;;  %18048 = vmatprep.mubr.f32.mxu0 %v22672_v49  ;;  %v23729_v49 = vld [vmem:[#allocation25_spill] sm:$0xff] }
 0x639   : > { %19755 = vmatprep.subr.bf16.mxu0 %v21275_v34 }
 0x63b   : > { %18049 = vmatmul.mubr.f32.gmra.mrb[28].mxu0 %v22690_v8 }
 0x63c   : > { %19757 = vmatpush3.bf16.msra.mxu0 %v21275_v34  ;;  %18051 = vmatprep.mubr.f32.mxu0 %v22700_v40  ;;  %v23731_v40 = vld [vmem:[#allocation27_spill] sm:$0xff] }
 0x63d   : > { %19759 = vmatprep.subr.bf16.mxu0 %v21304_v60 }
 0x63f   : > { %18052 = vmatmul.mubr.f32.gmra.mrb[30].mxu0 %v22708_v46 }
 0x640   : > { %19761 = vmatpush3.bf16.msra.mxu0 %v21304_v60  ;;  %18086 = vmatprep.mubr.f32.mxu0 %v23716_v2  ;;  %v23720_v2 = vand.u32 4294901760, %v22619_v27  ;;  %v23726_v27 = vld [vmem:[#allocation23_spill] sm:$0xff] }
 0x641   : > { %19763 = vmatprep.subr.bf16.mxu0 %v21325_v11 }
 0x644   : > { %19765 = vmatpush3.bf16.msra.mxu0 %v21325_v11 }
 0x645   : > { %19767 = vmatprep.subr.bf16.mxu0 %v21361_v50 }
 0x648   : > { %19769 = vmatpush3.bf16.msra.mxu0 %v21361_v50 }
 0x649   : > { %19771 = vmatprep.subr.bf16.mxu0 %v21376_v0 }
 0x64c   : > { %19773 = vmatpush3.bf16.msra.mxu0 %v21376_v0 }
 0x64d   : > { %19775 = vmatprep.subr.bf16.mxu0 %v21396_v44 }
 0x64e   : > { %v22798_v38 = vpop.f32.mrb[18].mxu0 }
 0x64f   : > { %23717 = vst [vmem:[#allocation64_spill] sm:$0xff] %v22798_v38  ;;  %v22802_v37 = vpop.f32.mrb[19].mxu0 }
 0x650   : > { %23718 = vst [vmem:[#allocation65_spill] sm:$0xff] %v22802_v37  ;;  %19777 = vmatpush3.bf16.msra.mxu0 %v21396_v44 }
 0x651   : > { %19779 = vmatprep.subr.bf16.mxu0 %v23719_v22 }
 0x653   : > { %18087 = vmatmul.mubr.f32.vlgmr.msra.gmra.mrb[24].mxu0 %v23720_v2 }
 0x654   : > { %19781 = vmatpush3.bf16.msra.mxu0 %v23719_v22  ;;  %18089 = vmatprep.mubr.f32.mxu0 %v23721_v42  ;;  %v20753_v42 = vld [vmem:[%s21216_s20 + $0x18] sm:$0xff] }
 0x655   : > { %19783 = vmatprep.subr.bf16.mxu0 %v23722_v14 }
 0x657   : > { %18090 = vmatmul.mubr.f32.gmra.mrb[26].mxu0 %v23723_v1  ;;  %v20750_v1 = vld [vmem:[%s21216_s20] sm:$0xff] }
 0x658   : > { %19785 = vmatpush3.bf16.msra.mxu0 %v23722_v14  ;;  %18092 = vmatprep.mubr.f32.mxu0 %v23724_v17  ;;  %v12147_v17 = vmul.f32 %v20750_v1, %v22555_v59  ;;  %v20752_v1 = vld [vmem:[%s21216_s20 + $0x10] sm:$0xff] }
 0x659   : > { %19787 = vmatprep.subr.bf16.mxu0 %v23725_v58 }
 0x65a   : > { %v22870_v2 = vand.u32 4294901760, %v12147_v17 }
 0x65b   : > { %18093 = vmatmul.mubr.f32.gmra.mrb[28].mxu0 %v9330_v28  ;;  %v23730_v28 = vld [vmem:[#allocation26_spill] sm:$0xff] }
 0x65c   : > { %19789 = vmatpush3.bf16.msra.mxu0 %v23725_v58  ;;  %18095 = vmatprep.mubr.f32.mxu0 %v9340_v21 }
 0x65d   : > { %19791 = vmatprep.subr.bf16.mxu0 %v23726_v27 }
 0x65f   : > { %18096 = vmatmul.mubr.f32.gmra.mrb[30].mxu0 %v23727_v35  ;;  %v20751_v35 = vld [vmem:[%s21216_s20 + $0x8] sm:$0xff] }
 0x660   : > { %19793 = vmatpush3.bf16.msra.mxu0 %v23726_v27  ;;  %18130 = vmatprep.mubr.f32.mxu0 %v22568_v3 }
 0x661   : > { %19795 = vmatprep.subr.bf16.mxu0 %v23728_v52 }
 0x664   : > { %19797 = vmatpush3.bf16.msra.mxu0 %v23728_v52 }
 0x665   : > { %19799 = vmatprep.subr.bf16.mxu0 %v23729_v49 }
 0x668   : > { %19801 = vmatpush3.bf16.msra.mxu0 %v23729_v49 }
 0x669   : > { %19803 = vmatprep.subr.bf16.mxu0 %v23730_v28 }
 0x66c   : > { %19805 = vmatpush3.bf16.msra.mxu0 %v23730_v28 }
 0x66d   : > { %19807 = vmatprep.subr.bf16.mxu0 %v23731_v40 }
 0x670   : > { %19809 = vmatpush3.bf16.msra.mxu0 %v23731_v40 }
 0x671   : > { %19811 = vmatprep.subr.bf16.mxu0 %v21238_v12 }
 0x673   : > { %18131 = vmatmul.mubr.f32.vlgmr.msra.gmra.mrb[24].mxu0 %v22602_v16 }
 0x674   : > { %19813 = vmatpush3.bf16.msra.mxu0 %v21238_v12  ;;  %18133 = vmatprep.mubr.f32.mxu0 %v22604_v23 }
 0x675   : > { %19815 = vmatprep.subr.bf16.mxu0 %v21246_v18 }
 0x677   : > { %18134 = vmatmul.mubr.f32.gmra.mrb[26].mxu0 %v22624_v9 }
 0x678   : > { %19817 = vmatpush3.bf16.msra.mxu0 %v21246_v18  ;;  %18136 = vmatprep.mubr.f32.mxu0 %v22632_v45 }
 0x679   : > { %19819 = vmatprep.subr.bf16.mxu0 %v21275_v34 }
 0x67a   : > { %v22847_v46 = vpop.f32.mrb[20].mxu0 }
 0x67b   : > { %23732 = vst [vmem:[#allocation20_spill] sm:$0xff] %v22847_v46  ;;  %v22851_v8 = vpop.f32.mrb[21].mxu0  ;;  %18137 = vmatmul.mubr.f32.gmra.mrb[28].mxu0 %v22658_v57 }
 0x67c   : > { %23733 = vst [vmem:[#allocation21_spill] sm:$0xff] %v22851_v8  ;;  %19821 = vmatpush3.bf16.msra.mxu0 %v21275_v34  ;;  %18139 = vmatprep.mubr.f32.mxu0 %v22674_v25  ;;  %v20757_v8 = vld [vmem:[%s21216_s20 + $0x38] sm:$0xff] }
 0x67d   : > { %19823 = vmatprep.subr.bf16.mxu0 %v21304_v60  ;;  %v12154_v46 = vmul.f32 %v20757_v8, %v23738_v6 }
 0x67f   : > { %18140 = vmatmul.mubr.f32.gmra.mrb[30].mxu0 %v22692_v5 }
 0x680   : > { %19825 = vmatpush3.bf16.msra.mxu0 %v21304_v60  ;;  %18174 = vmatprep.mubr.f32.mxu0 %v22568_v3  ;;  %v22875_v3 = vsub.f32 %v12147_v17, %v22870_v2 }
 0x681   : > { %19827 = vmatprep.subr.bf16.mxu0 %v21325_v11 }
 0x682   : > { %v23581_v59 = vand.u32 4294901760, %v22875_v3 }
 0x684   : > { %19829 = vmatpush3.bf16.msra.mxu0 %v21325_v11 }
 0x685   : > { %19831 = vmatprep.subr.bf16.mxu0 %v21361_v50 }
 0x688   : > { %19833 = vmatpush3.bf16.msra.mxu0 %v21361_v50 }
 0x689   : > { %19835 = vmatprep.subr.bf16.mxu0 %v21376_v0 }
 0x68c   : > { %19837 = vmatpush3.bf16.msra.mxu0 %v21376_v0 }
 0x68d   : > { %19839 = vmatprep.subr.bf16.mxu0 %v21396_v44 }
 0x690   : > { %19841 = vmatpush3.bf16.msra.mxu0 %v21396_v44 }
 0x691   : > { %19939 = vmatprep.subr.bf16.mxu0 %v21238_v12 }
 0x693   : > { %18175 = vmatmul.mubr.f32.vlgmr.msra.gmra.mrb[24].mxu0 %v22602_v16  ;;  %v12239_v16 = vsub.f32 %v22875_v3, %v23581_v59 }
 0x694   : > { %19941 = vmatpush3.bf16.msra.mxu0 %v21238_v12  ;;  %18177 = vmatprep.mubr.f32.mxu0 %v22604_v23  ;;  %v12148_v23 = vmul.f32 %v20751_v35, %v22591_v19  ;;  %v12150_v19 = vmul.f32 %v20753_v42, %v22607_v30 }
 0x695   : > { %19943 = vmatprep.subr.bf16.mxu0 %v21246_v18 }
 0x696   : > { %v22898_v17 = vand.u32 4294901760, %v12148_v23  ;;  %v22912_v35 = vand.u32 4294901760, %v12150_v19 }
 0x697   : > { %18178 = vmatmul.mubr.f32.gmra.mrb[26].mxu0 %v22624_v9  ;;  %v12240_v9 = vand.u32 4294901760, %v12239_v16 }
 0x698   : > { %19945 = vmatpush3.bf16.msra.mxu0 %v21246_v18  ;;  %18180 = vmatprep.mubr.f32.mxu0 %v22632_v45  ;;  %v12149_v45 = vmul.f32 %v20752_v1, %v22596_v7  ;;  %v22910_v7 = vsub.f32 %v12148_v23, %v22898_v17 }
 0x699   : > { %19947 = vmatprep.subr.bf16.mxu0 %v21275_v34 }
 0x69b   : > { %18181 = vmatmul.mubr.f32.gmra.mrb[28].mxu0 %v22658_v57  ;;  %v22904_v57 = vand.u32 4294901760, %v12149_v45 }
 0x69c   : > { %19949 = vmatpush3.bf16.msra.mxu0 %v21275_v34  ;;  %18183 = vmatprep.mubr.f32.mxu0 %v22674_v25  ;;  %v20754_v25 = vld [vmem:[%s21216_s20 + $0x20] sm:$0xff] }
 0x69d   : > { %19951 = vmatprep.subr.bf16.mxu0 %v21304_v60  ;;  %v12151_v16 = vmul.f32 %v20754_v25, %v22613_v10  ;;  %v22918_v30 = vsub.f32 %v12149_v45, %v22904_v57  ;;  %v23734_v10 = vld [vmem:[#allocation56_spill] sm:$0xff] }
 0x69f   : > { %18184 = vmatmul.mubr.f32.gmra.mrb[30].mxu0 %v22692_v5  ;;  %v20755_v5 = vld [vmem:[%s21216_s20 + $0x28] sm:$0xff]  ;;  %v22920_v42 = vand.u32 4294901760, %v12151_v16  ;;  %v23590_v21 = vand.u32 4294901760, %v22918_v30 }
 0x6a0   : > { %19953 = vmatpush3.bf16.msra.mxu0 %v21304_v60  ;;  %18386 = vmatprep.mubr.f32.mxu0 %v12240_v9  ;;  %v12152_v1 = vmul.f32 %v20755_v5, %v22627_v56  ;;  %v20756_v9 = vld [vmem:[%s21216_s20 + $0x30] sm:$0xff]  ;;  %v22933_v5 = vsub.f32 %v12150_v19, %v22912_v35  ;;  %v23740_v19 = vand.u32 4294901760, %v22910_v7 }
 0x6a1   : > { %19955 = vmatprep.subr.bf16.mxu0 %v21325_v11  ;;  %v12153_v25 = vmul.f32 %v20756_v9, %v23734_v10  ;;  %v22944_v32 = vsub.f32 %v12151_v16, %v22920_v42  ;;  %v22956_v10 = vand.u32 4294901760, %v12154_v46  ;;  %v12259_v16 = vsub.f32 %v22918_v30, %v23590_v21 }
 0x6a2   : > { %v22935_v45 = vand.u32 4294901760, %v12152_v1  ;;  %v12249_v59 = vsub.f32 %v22910_v7, %v23740_v19  ;;  %v23592_v6 = vand.u32 4294901760, %v22933_v5 }
 0x6a3   : > { %v22946_v26 = vand.u32 4294901760, %v12153_v25  ;;  %v23593_v9 = vand.u32 4294901760, %v22944_v32  ;;  %v22972_v37 = vsub.f32 %v12154_v46, %v22956_v10  ;;  %v12260_v21 = vand.u32 4294901760, %v12259_v16 }
 0x6a4   : > { %19957 = vmatpush3.bf16.msra.mxu0 %v21325_v11  ;;  %v22954_v8 = vsub.f32 %v12152_v1, %v22935_v45  ;;  %v12250_v19 = vand.u32 4294901760, %v12249_v59  ;;  %v12269_v1 = vsub.f32 %v22933_v5, %v23592_v6 }
 0x6a5   : > { %19959 = vmatprep.subr.bf16.mxu0 %v21361_v50  ;;  %v12308_v46 = vand.u32 4294901760, %v22972_v37 }
 0x6a6   : > { %v22925_v23 = vpop.f32.mrb[22].mxu0  ;;  %v12270_v59 = vand.u32 4294901760, %v12269_v1 }
 0x6a7   : > { %23735 = vst [vmem:[#allocation22_spill] sm:$0xff] %v22925_v23  ;;  %v22930_v56 = vpop.f32.mrb[23].mxu0  ;;  %v12288_v23 = vand.u32 4294901760, %v22954_v8 }
 0x6a8   : > { %23737 = vst [vmem:[#allocation23_spill] sm:$0xff] %v22930_v56  ;;  %19961 = vmatpush3.bf16.msra.mxu0 %v21361_v50  ;;  %v22964_v56 = vsub.f32 %v12153_v25, %v22946_v26  ;;  %v12279_v25 = vsub.f32 %v22944_v32, %v23593_v9 }
 0x6a9   : > { %19963 = vmatprep.subr.bf16.mxu0 %v21376_v0  ;;  %v12289_v6 = vsub.f32 %v22954_v8, %v12288_v23 }
 0x6aa   : > { %v12298_v13 = vand.u32 4294901760, %v22964_v56  ;;  %v12280_v16 = vand.u32 4294901760, %v12279_v25 }
 0x6ab   : > { %v12290_v38 = vand.u32 4294901760, %v12289_v6 }
 0x6ac   : > { %19965 = vmatpush3.bf16.msra.mxu0 %v21376_v0  ;;  %v12299_v9 = vsub.f32 %v22964_v56, %v12298_v13 }
 0x6ad   : > { %19967 = vmatprep.subr.bf16.mxu0 %v21396_v44 }
 0x6ae   : > { %v12300_v1 = vand.u32 4294901760, %v12299_v9 }
 0x6b0   : > { %19969 = vmatpush3.bf16.msra.mxu0 %v21396_v44 }
 0x6b1   : > { %19971 = vmatprep.subr.bf16.mxu0 %v21291_v48 }
 0x6b3   : > { %18387 = vmatmul.mubr.f32.vlgmr.msra.gmra.mrb[32].mxu0 %v12250_v19  ;;  %v12309_v19 = vsub.f32 %v22972_v37, %v12308_v46 }
 0x6b4   : > { %19973 = vmatpush3.bf16.msra.mxu0 %v21291_v48  ;;  %18389 = vmatprep.mubr.f32.mxu0 %v12260_v21 }
 0x6b5   : > { %19975 = vmatprep.subr.bf16.mxu0 %v21294_v53  ;;  %v12310_v48 = vand.u32 4294901760, %v12309_v19 }
 0x6b7   : > { %18390 = vmatmul.mubr.f32.gmra.mrb[34].mxu0 %v12270_v59 }
 0x6b8   : > { %19977 = vmatpush3.bf16.msra.mxu0 %v21294_v53  ;;  %18392 = vmatprep.mubr.f32.mxu0 %v12280_v16  ;;  %v23741_v53 = vand.u32 4294901760, %v22875_v3 }
 0x6b9   : > { %19979 = vmatprep.subr.bf16.mxu0 %v23647_v51 }
 0x6bb   : > { %18393 = vmatmul.mubr.f32.gmra.mrb[36].mxu0 %v12290_v38 }
 0x6bc   : > { %19981 = vmatpush3.bf16.msra.mxu0 %v23647_v51  ;;  %18395 = vmatprep.mubr.f32.mxu0 %v12300_v1 }
 0x6bd   : > { %19983 = vmatprep.subr.bf16.mxu0 %v23648_v55 }
 0x6bf   : > { %18396 = vmatmul.mubr.f32.gmra.mrb[38].mxu0 %v12310_v48 }
 0x6c0   : > { %19985 = vmatpush3.bf16.msra.mxu0 %v23648_v55  ;;  %18430 = vmatprep.mubr.f32.mxu0 %v22870_v2 }
 0x6c1   : > { %19987 = vmatprep.subr.bf16.mxu0 %v23649_v61 }
 0x6c4   : > { %19989 = vmatpush3.bf16.msra.mxu0 %v23649_v61 }
 0x6c5   : > { %19991 = vmatprep.subr.bf16.mxu0 %v23650_v62 }
 0x6c8   : > { %19993 = vmatpush3.bf16.msra.mxu0 %v23650_v62 }
 0x6c9   : > { %19995 = vmatprep.subr.bf16.mxu0 %v21398_v63 }
 0x6cc   : > { %19997 = vmatpush3.bf16.msra.mxu0 %v21398_v63  ;;  %v23742_v63 = vand.u32 4294901760, %v22910_v7 }
 0x6cd   : > { %19999 = vmatprep.subr.bf16.mxu0 %v21418_v43 }
 0x6d0   : > { %20001 = vmatpush3.bf16.msra.mxu0 %v21418_v43  ;;  %v23743_v43 = vand.u32 4294901760, %v22918_v30 }
 0x6d1   : > { %20003 = vmatprep.subr.bf16.mxu0 %v21515_v54 }
 0x6d3   : > { %18431 = vmatmul.mubr.f32.vlgmr.msra.gmra.mrb[32].mxu0 %v22898_v17 }
 0x6d4   : > { %20005 = vmatpush3.bf16.msra.mxu0 %v21515_v54  ;;  %18433 = vmatprep.mubr.f32.mxu0 %v22904_v57  ;;  %v23744_v54 = vand.u32 4294901760, %v22933_v5 }
 0x6d5   : > { %20007 = vmatprep.subr.bf16.mxu0 %v21538_v4 }
 0x6d7   : > { %18434 = vmatmul.mubr.f32.gmra.mrb[34].mxu0 %v22912_v35 }
 0x6d8   : > { %20009 = vmatpush3.bf16.msra.mxu0 %v21538_v4  ;;  %18436 = vmatprep.mubr.f32.mxu0 %v22920_v42  ;;  %v23745_v4 = vand.u32 4294901760, %v22944_v32 }
 0x6d9   : > { %20011 = vmatprep.subr.bf16.mxu0 %v21551_v15 }
 0x6db   : > { %18437 = vmatmul.mubr.f32.gmra.mrb[36].mxu0 %v22935_v45 }
 0x6dc   : > { %20013 = vmatpush3.bf16.msra.mxu0 %v21551_v15  ;;  %18439 = vmatprep.mubr.f32.mxu0 %v22946_v26 }
 0x6dd   : > { %20015 = vmatprep.subr.bf16.mxu0 %v21561_v29 }
 0x6df   : > { %18440 = vmatmul.mubr.f32.gmra.mrb[38].mxu0 %v22956_v10 }
 0x6e0   : > { %20017 = vmatpush3.bf16.msra.mxu0 %v21561_v29  ;;  %18474 = vmatprep.mubr.f32.mxu0 %v22875_v3 }
 0x6e1   : > { %20019 = vmatprep.subr.bf16.mxu0 %v21572_v20 }
 0x6e4   : > { %20021 = vmatpush3.bf16.msra.mxu0 %v21572_v20 }
 0x6e5   : > { %20023 = vmatprep.subr.bf16.mxu0 %v21582_v24 }
 0x6e8   : > { %20025 = vmatpush3.bf16.msra.mxu0 %v21582_v24 }
 0x6e9   : > { %20027 = vmatprep.subr.bf16.mxu0 %v21590_v36 }
 0x6ec   : > { %20029 = vmatpush3.bf16.msra.mxu0 %v21590_v36 }
 0x6ed   : > { %20031 = vmatprep.subr.bf16.mxu0 %v21598_v47 }
 0x6f0   : > { %20033 = vmatpush3.bf16.msra.mxu0 %v21598_v47 }
 0x6f1   : > { %20035 = vmatprep.subr.bf16.mxu0 %v21238_v12 }
 0x6f3   : > { %18475 = vmatmul.mubr.f32.vlgmr.msra.gmra.mrb[32].mxu0 %v22910_v7 }
 0x6f4   : > { %20037 = vmatpush3.bf16.msra.mxu0 %v21238_v12  ;;  %18477 = vmatprep.mubr.f32.mxu0 %v22918_v30 }
 0x6f5   : > { %20039 = vmatprep.subr.bf16.mxu0 %v21246_v18 }
 0x6f7   : > { %18478 = vmatmul.mubr.f32.gmra.mrb[34].mxu0 %v22933_v5 }
 0x6f8   : > { %20041 = vmatpush3.bf16.msra.mxu0 %v21246_v18  ;;  %18480 = vmatprep.mubr.f32.mxu0 %v22944_v32 }
 0x6f9   : > { %20043 = vmatprep.subr.bf16.mxu0 %v21275_v34 }
 0x6fb   : > { %18481 = vmatmul.mubr.f32.gmra.mrb[36].mxu0 %v22954_v8 }
 0x6fc   : > { %20045 = vmatpush3.bf16.msra.mxu0 %v21275_v34  ;;  %18483 = vmatprep.mubr.f32.mxu0 %v22964_v56 }
 0x6fd   : > { %20047 = vmatprep.subr.bf16.mxu0 %v21304_v60 }
 0x6ff   : > { %18484 = vmatmul.mubr.f32.gmra.mrb[38].mxu0 %v22972_v37 }
 0x700   : > { %20049 = vmatpush3.bf16.msra.mxu0 %v21304_v60  ;;  %18518 = vmatprep.mubr.f32.mxu0 %v23741_v53 }
 0x701   : > { %20051 = vmatprep.subr.bf16.mxu0 %v21325_v11 }
 0x704   : > { %20053 = vmatpush3.bf16.msra.mxu0 %v21325_v11 }
 0x705   : > { %20055 = vmatprep.subr.bf16.mxu0 %v21361_v50 }
 0x708   : > { %20057 = vmatpush3.bf16.msra.mxu0 %v21361_v50 }
 0x709   : > { %20059 = vmatprep.subr.bf16.mxu0 %v21376_v0 }
 0x70c   : > { %20061 = vmatpush3.bf16.msra.mxu0 %v21376_v0 }
 0x70d   : > { %20063 = vmatprep.subr.bf16.mxu0 %v21396_v44 }
 0x710   : > { %20065 = vmatpush3.bf16.msra.mxu0 %v21396_v44 }
 0x711   : > { %20067 = vmatprep.subr.bf16.mxu0 %v23719_v22 }
 0x713   : > { %18519 = vmatmul.mubr.f32.vlgmr.msra.gmra.mrb[32].mxu0 %v23742_v63 }
 0x714   : > { %20069 = vmatpush3.bf16.msra.mxu0 %v23719_v22  ;;  %18521 = vmatprep.mubr.f32.mxu0 %v23743_v43  ;;  %v23748_v43 = vld [vmem:[#allocation32_spill] sm:$0xff] }
 0x715   : > { %20071 = vmatprep.subr.bf16.mxu0 %v23722_v14 }
 0x717   : > { %18522 = vmatmul.mubr.f32.gmra.mrb[34].mxu0 %v23744_v54 }
 0x718   : > { %20073 = vmatpush3.bf16.msra.mxu0 %v23722_v14  ;;  %18524 = vmatprep.mubr.f32.mxu0 %v23745_v4 }
 0x719   : > { %20075 = vmatprep.subr.bf16.mxu0 %v23725_v58 }
 0x71b   : > { %18525 = vmatmul.mubr.f32.gmra.mrb[36].mxu0 %v12288_v23 }
 0x71c   : > { %20077 = vmatpush3.bf16.msra.mxu0 %v23725_v58  ;;  %18527 = vmatprep.mubr.f32.mxu0 %v12298_v13 }
 0x71d   : > { %20079 = vmatprep.subr.bf16.mxu0 %v23726_v27 }
 0x71f   : > { %18528 = vmatmul.mubr.f32.gmra.mrb[38].mxu0 %v12308_v46 }
 0x720   : > { %20081 = vmatpush3.bf16.msra.mxu0 %v23726_v27  ;;  %18562 = vmatprep.mubr.f32.mxu0 %v22870_v2 }
 0x721   : > { %20083 = vmatprep.subr.bf16.mxu0 %v23728_v52 }
 0x724   : > { %20085 = vmatpush3.bf16.msra.mxu0 %v23728_v52  ;;  %v23746_v52 = vld [vmem:[#allocation35_spill] sm:$0xff] }
 0x725   : > { %20087 = vmatprep.subr.bf16.mxu0 %v23729_v49 }
 0x728   : > { %20089 = vmatpush3.bf16.msra.mxu0 %v23729_v49 }
 0x729   : > { %20091 = vmatprep.subr.bf16.mxu0 %v23730_v28 }
 0x72c   : > { %20093 = vmatpush3.bf16.msra.mxu0 %v23730_v28 }
 0x72d   : > { %20095 = vmatprep.subr.bf16.mxu0 %v23731_v40 }
 0x730   : > { %20097 = vmatpush3.bf16.msra.mxu0 %v23731_v40 }
 0x731   : > { %20099 = vmatprep.subr.bf16.mxu0 %v21238_v12 }
 0x733   : > { %18563 = vmatmul.mubr.f32.vlgmr.msra.gmra.mrb[32].mxu0 %v22898_v17 }
 0x734   : > { %20101 = vmatpush3.bf16.msra.mxu0 %v21238_v12  ;;  %18565 = vmatprep.mubr.f32.mxu0 %v22904_v57 }
 0x735   : > { %20103 = vmatprep.subr.bf16.mxu0 %v21246_v18 }
 0x737   : > { %18566 = vmatmul.mubr.f32.gmra.mrb[34].mxu0 %v22912_v35 }
 0x738   : > { %20105 = vmatpush3.bf16.msra.mxu0 %v21246_v18  ;;  %18568 = vmatprep.mubr.f32.mxu0 %v22920_v42 }
 0x739   : > { %20107 = vmatprep.subr.bf16.mxu0 %v21275_v34 }
 0x73b   : > { %18569 = vmatmul.mubr.f32.gmra.mrb[36].mxu0 %v22935_v45 }
 0x73c   : > { %20109 = vmatpush3.bf16.msra.mxu0 %v21275_v34  ;;  %18571 = vmatprep.mubr.f32.mxu0 %v22946_v26 }
 0x73d   : > { %20111 = vmatprep.subr.bf16.mxu0 %v21304_v60 }
 0x73f   : > { %18572 = vmatmul.mubr.f32.gmra.mrb[38].mxu0 %v22956_v10 }
 0x740   : > { %20113 = vmatpush3.bf16.msra.mxu0 %v21304_v60  ;;  %18606 = vmatprep.mubr.f32.mxu0 %v22870_v2  ;;  %v23747_v2 = vld [vmem:[#allocation28_spill] sm:$0xff] }
 0x741   : > { %20115 = vmatprep.subr.bf16.mxu0 %v21325_v11 }
 0x744   : > { %20117 = vmatpush3.bf16.msra.mxu0 %v21325_v11 }
 0x745   : > { %20119 = vmatprep.subr.bf16.mxu0 %v21361_v50 }
 0x748   : > { %20121 = vmatpush3.bf16.msra.mxu0 %v21361_v50 }
 0x749   : > { %20123 = vmatprep.subr.bf16.mxu0 %v21376_v0 }
 0x74c   : > { %20125 = vmatpush3.bf16.msra.mxu0 %v21376_v0 }
 0x74d   : > { %20127 = vmatprep.subr.bf16.mxu0 %v21396_v44 }
 0x750   : > { %20129 = vmatpush3.bf16.msra.mxu0 %v21396_v44 }
 0x753   : > { %18607 = vmatmul.mubr.f32.vlgmr.msra.gmra.mrb[32].mxu0 %v22898_v17 }
 0x754   : > { %18609 = vmatprep.mubr.f32.mxu0 %v22904_v57 }
 0x757   : > { %18610 = vmatmul.mubr.f32.gmra.mrb[34].mxu0 %v22912_v35 }
 0x758   : > { %18612 = vmatprep.mubr.f32.mxu0 %v22920_v42 }
 0x75b   : > { %18613 = vmatmul.mubr.f32.gmra.mrb[36].mxu0 %v22935_v45 }
 0x75c   : > { %18615 = vmatprep.mubr.f32.mxu0 %v22946_v26 }
 0x75f   : > { %18616 = vmatmul.mubr.f32.gmra.mrb[38].mxu0 %v22956_v10 }
 0x766   : > { %v18176_v12 = vpop.f32.mrb[24].mxu0 }
 0x767   : > { %v10143_v18 = vand.u32 4294901760, %v18176_v12  ;;  %v10093_v34 = vpop.f32.mrb[25].mxu0 }
 0x768   : > { %v10140_v60 = vand.u32 4294901760, %v10093_v34 }
 0x769   : > { %v10235_v11 = vsub.f32 %v18176_v12, %v10143_v18 }
 0x76a   : > { %v23117_v50 = vpack.c.bf16 %v10143_v18, %v10140_v60  ;;  %v10228_v0 = vsub.f32 %v10093_v34, %v10140_v60  ;;  %v18179_v44 = vpop.f32.mrb[26].mxu0  ;;  %v23749_v18 = vld [vmem:[#allocation29_spill] sm:$0xff] }
 0x76b   : > { %v10236_v15 = vand.u32 4294901760, %v10235_v11  ;;  %v10645_v29 = vand.u32 4294901760, %v18179_v44  ;;  %v10105_v20 = vpop.f32.mrb[27].mxu0 }
 0x76c   : > { %v10229_v24 = vand.u32 4294901760, %v10228_v0  ;;  %v10642_v36 = vand.u32 4294901760, %v10105_v20  ;;  %19843 = vmatprep.subr.bf16.mxu1 %v23117_v50  ;;  %v19850_v47 = vpack.c.bf16 %v10235_v11, %v10228_v0 }
 0x76d   : > { %v10237_v51 = vsub.f32 %v10235_v11, %v10236_v15  ;;  %v10737_v55 = vsub.f32 %v18179_v44, %v10645_v29  ;;  %19845 = vmatpush3.bf16.msra.mxu1 %v23117_v50 }
 0x76e   : > { %v10230_v61 = vsub.f32 %v10228_v0, %v10229_v24  ;;  %v23121_v62 = vpack.c.bf16 %v10645_v29, %v10642_v36  ;;  %v10730_v13 = vsub.f32 %v10105_v20, %v10642_v36  ;;  %v18182_v32 = vpop.f32.mrb[28].mxu0  ;;  %v19858_v26 = vpack.c.bf16 %v10236_v15, %v10229_v24  ;;  %v23750_v29 = vld [vmem:[#allocation33_spill] sm:$0xff]  ;;  %v23751_v20 = vld [vmem:[#allocation30_spill] sm:$0xff]  ;;  %v23753_v36 = vld [vmem:[#allocation31_spill] sm:$0xff] }
 0x76f   : > { %v10738_v58 = vand.u32 4294901760, %v10737_v55  ;;  %v11147_v14 = vand.u32 4294901760, %v18182_v32  ;;  %v10117_v38 = vpop.f32.mrb[29].mxu0  ;;  %v10238_v37 = vand.u32 4294901760, %v10237_v51  ;;  %v23752_v24 = vld [vmem:[#allocation34_spill] sm:$0xff] }
 0x770   : > { %v10731_v22 = vand.u32 4294901760, %v10730_v13  ;;  %v11144_v27 = vand.u32 4294901760, %v10117_v38  ;;  %18191 = vmatmul.mubr.f32.vlgmr.msra.gmra.mrb[36].mxu1 %v23746_v52  ;;  %v10231_v49 = vand.u32 4294901760, %v10230_v61  ;;  %v23124_v28 = vpack.c.bf16 %v10737_v55, %v10730_v13 }
 0x771   : > { %v10739_v40 = vsub.f32 %v10737_v55, %v10738_v58  ;;  %v11239_v21 = vsub.f32 %v18182_v32, %v11147_v14  ;;  %18197 = vmatprep.mubr.f32.mxu1 %v23747_v2 }
 0x772   : > { %v10732_v3 = vsub.f32 %v10730_v13, %v10731_v22  ;;  %v23127_v17 = vpack.c.bf16 %v11147_v14, %v11144_v27  ;;  %v11232_v57 = vsub.f32 %v10117_v38, %v11144_v27  ;;  %v18185_v7 = vpop.f32.mrb[30].mxu0  ;;  %v19846_v35 = vpack.c.bf16 %v10238_v37, %v10231_v49 }
 0x773   : > { %v11240_v30 = vand.u32 4294901760, %v11239_v21  ;;  %v11649_v42 = vand.u32 4294901760, %v18185_v7  ;;  %v10129_v23 = vpop.f32.mrb[31].mxu0  ;;  %v10740_v56 = vand.u32 4294901760, %v10739_v40  ;;  %v19882_v5 = vpack.c.bf16 %v10738_v58, %v10731_v22 }
 0x774   : > { %v11233_v45 = vand.u32 4294901760, %v11232_v57  ;;  %v11646_v9 = vand.u32 4294901760, %v10129_v23  ;;  %19847 = vmatprep.subr.bf16.mxu1 %v19846_v35  ;;  %v10733_v10 = vand.u32 4294901760, %v10732_v3  ;;  %v23129_v6 = vpack.c.bf16 %v11239_v21, %v11232_v57 }
 0x775   : > { %v11241_v8 = vsub.f32 %v11239_v21, %v11240_v30  ;;  %v11741_v25 = vsub.f32 %v18185_v7, %v11649_v42  ;;  %19849 = vmatpush3.bf16.msra.mxu1 %v19846_v35 }
 0x776   : > { %v11234_v59 = vsub.f32 %v11232_v57, %v11233_v45  ;;  %v23131_v46 = vpack.c.bf16 %v11649_v42, %v11646_v9  ;;  %v11734_v16 = vsub.f32 %v10129_v23, %v11646_v9  ;;  %19851 = vmatprep.subr.bf16.mxu1 %v19850_v47  ;;  %v19870_v19 = vpack.c.bf16 %v10740_v56, %v10733_v10 }
 0x777   : > { %v11742_v1 = vand.u32 4294901760, %v11741_v25  ;;  %v11242_v48 = vand.u32 4294901760, %v11241_v8  ;;  %v23133_v53 = vpack.c.bf16 %v11240_v30, %v11233_v45 }
 0x778   : > { %v11735_v63 = vand.u32 4294901760, %v11734_v16  ;;  %18198 = vmatmul.mubr.f32.vlgmr.msra.gmra.mrb[36].mxu1 %v23748_v43  ;;  %v11235_v54 = vand.u32 4294901760, %v11234_v59  ;;  %v23136_v4 = vpack.c.bf16 %v11741_v25, %v11734_v16 }
 0x779   : > { %v11743_v12 = vsub.f32 %v11741_v25, %v11742_v1  ;;  %19853 = vmatpush3.bf16.msra.mxu1 %v19850_v47  ;;  %18204 = vmatprep.mubr.f32.mxu1 %v23749_v18 }
 0x77a   : > { %v11736_v34 = vsub.f32 %v11734_v16, %v11735_v63  ;;  %19855 = vmatprep.subr.bf16.mxu1 %v23117_v50  ;;  %v19894_v60 = vpack.c.bf16 %v11242_v48, %v11235_v54  ;;  %v23140_v11 = vpack.c.bf16 %v11742_v1, %v11735_v63 }
 0x77b   : > { %v11744_v0 = vand.u32 4294901760, %v11743_v12 }
 0x77c   : > { %v11737_v44 = vand.u32 4294901760, %v11736_v34 }
 0x77e   : > { %v23142_v15 = vpack.c.bf16 %v11744_v0, %v11737_v44 }
 0x780   : > { %18205 = vmatmul.mubr.f32.vlgmr.msra.gmra.mrb[36].mxu1 %v23750_v29 }
 0x781   : > { %19857 = vmatpush3.bf16.msra.mxu1 %v23117_v50  ;;  %18211 = vmatprep.mubr.f32.mxu1 %v23751_v20 }
 0x782   : > { %19859 = vmatprep.subr.bf16.mxu1 %v19858_v26 }
 0x788   : > { %18212 = vmatmul.mubr.f32.vlgmr.msra.gmra.mrb[36].mxu1 %v23752_v24 }
 0x789   : > { %19861 = vmatpush3.bf16.msra.mxu1 %v19858_v26  ;;  %18218 = vmatprep.mubr.f32.mxu1 %v23747_v2 }
 0x78a   : > { %19863 = vmatprep.subr.bf16.mxu1 %v23117_v50 }
 0x790   : > { %18219 = vmatmul.mubr.f32.vlgmr.msra.gmra.mrb[36].mxu1 %v23748_v43 }
 0x791   : > { %19865 = vmatpush3.bf16.msra.mxu1 %v23117_v50  ;;  %18225 = vmatprep.mubr.f32.mxu1 %v23747_v2 }
 0x792   : > { %19867 = vmatprep.subr.bf16.mxu1 %v23121_v62 }
 0x798   : > { %18226 = vmatmul.mubr.f32.vlgmr.msra.gmra.mrb[36].mxu1 %v23748_v43 }
 0x799   : > { %19869 = vmatpush3.bf16.msra.mxu1 %v23121_v62  ;;  %18232 = vmatprep.mubr.f32.mxu1 %v23753_v36 }
 0x79a   : > { %19871 = vmatprep.subr.bf16.mxu1 %v19870_v19 }
 0x79c   : > { %18233 = vmatmul.mubr.f32.vlgmr.msra.gmra.mrb[38].mxu1 %v23746_v52 }
 0x79d   : > { %19873 = vmatpush3.bf16.msra.mxu1 %v19870_v19  ;;  %18239 = vmatprep.mubr.f32.mxu1 %v23747_v2 }
 0x79e   : > { %19875 = vmatprep.subr.bf16.mxu1 %v23124_v28 }
 0x7a4   : > { %18240 = vmatmul.mubr.f32.vlgmr.msra.gmra.mrb[38].mxu1 %v23748_v43 }
 0x7a5   : > { %19877 = vmatpush3.bf16.msra.mxu1 %v23124_v28  ;;  %18246 = vmatprep.mubr.f32.mxu1 %v23749_v18 }
 0x7a6   : > { %19879 = vmatprep.subr.bf16.mxu1 %v23121_v62 }
 0x7ac   : > { %18247 = vmatmul.mubr.f32.vlgmr.msra.gmra.mrb[38].mxu1 %v23750_v29 }
 0x7ad   : > { %19881 = vmatpush3.bf16.msra.mxu1 %v23121_v62  ;;  %18253 = vmatprep.mubr.f32.mxu1 %v23751_v20 }
 0x7ae   : > { %19883 = vmatprep.subr.bf16.mxu1 %v19882_v5 }
 0x7b4   : > { %18254 = vmatmul.mubr.f32.vlgmr.msra.gmra.mrb[38].mxu1 %v23752_v24 }
 0x7b5   : > { %19885 = vmatpush3.bf16.msra.mxu1 %v19882_v5  ;;  %18260 = vmatprep.mubr.f32.mxu1 %v23747_v2 }
 0x7b6   : > { %19887 = vmatprep.subr.bf16.mxu1 %v23121_v62 }
 0x7bc   : > { %18261 = vmatmul.mubr.f32.vlgmr.msra.gmra.mrb[38].mxu1 %v23748_v43 }
 0x7bd   : > { %19889 = vmatpush3.bf16.msra.mxu1 %v23121_v62  ;;  %18267 = vmatprep.mubr.f32.mxu1 %v23747_v2 }
 0x7be   : > { %19891 = vmatprep.subr.bf16.mxu1 %v23127_v17 }
 0x7c4   : > { %18268 = vmatmul.mubr.f32.vlgmr.msra.gmra.mrb[38].mxu1 %v23748_v43 }
 0x7c5   : > { %19893 = vmatpush3.bf16.msra.mxu1 %v23127_v17  ;;  %18274 = vmatprep.mubr.f32.mxu1 %v23753_v36 }
 0x7c6   : > { %19895 = vmatprep.subr.bf16.mxu1 %v19894_v60 }
 0x7c8   : > { %18275 = vmatmul.mubr.f32.vlgmr.msra.gmra.mrb[40].mxu1 %v23746_v52 }
 0x7c9   : > { %19897 = vmatpush3.bf16.msra.mxu1 %v19894_v60  ;;  %18281 = vmatprep.mubr.f32.mxu1 %v23747_v2 }
 0x7ca   : > { %19899 = vmatprep.subr.bf16.mxu1 %v23129_v6 }
 0x7d0   : > { %18282 = vmatmul.mubr.f32.vlgmr.msra.gmra.mrb[40].mxu1 %v23748_v43 }
 0x7d1   : > { %19901 = vmatpush3.bf16.msra.mxu1 %v23129_v6  ;;  %18288 = vmatprep.mubr.f32.mxu1 %v23749_v18 }
 0x7d2   : > { %19903 = vmatprep.subr.bf16.mxu1 %v23127_v17 }
 0x7d8   : > { %18289 = vmatmul.mubr.f32.vlgmr.msra.gmra.mrb[40].mxu1 %v23750_v29 }
 0x7d9   : > { %19905 = vmatpush3.bf16.msra.mxu1 %v23127_v17  ;;  %18295 = vmatprep.mubr.f32.mxu1 %v23751_v20 }
 0x7da   : > { %19907 = vmatprep.subr.bf16.mxu1 %v23133_v53 }
 0x7e0   : > { %18296 = vmatmul.mubr.f32.vlgmr.msra.gmra.mrb[40].mxu1 %v23752_v24 }
 0x7e1   : > { %19909 = vmatpush3.bf16.msra.mxu1 %v23133_v53  ;;  %18302 = vmatprep.mubr.f32.mxu1 %v23747_v2 }
 0x7e2   : > { %19911 = vmatprep.subr.bf16.mxu1 %v23127_v17 }
 0x7e8   : > { %18303 = vmatmul.mubr.f32.vlgmr.msra.gmra.mrb[40].mxu1 %v23748_v43 }
 0x7e9   : > { %19913 = vmatpush3.bf16.msra.mxu1 %v23127_v17  ;;  %18309 = vmatprep.mubr.f32.mxu1 %v23747_v2 }
 0x7ea   : > { %19915 = vmatprep.subr.bf16.mxu1 %v23131_v46 }
 0x7f0   : > { %18310 = vmatmul.mubr.f32.vlgmr.msra.gmra.mrb[40].mxu1 %v23748_v43 }
 0x7f1   : > { %19917 = vmatpush3.bf16.msra.mxu1 %v23131_v46  ;;  %18316 = vmatprep.mubr.f32.mxu1 %v23753_v36 }
 0x7f2   : > { %19919 = vmatprep.subr.bf16.mxu1 %v23142_v15 }
 0x7f4   : > { %18317 = vmatmul.mubr.f32.vlgmr.msra.gmra.mrb[42].mxu1 %v23746_v52 }
 0x7f5   : > { %19921 = vmatpush3.bf16.msra.mxu1 %v23142_v15  ;;  %18323 = vmatprep.mubr.f32.mxu1 %v23747_v2 }
 0x7f6   : > { %19923 = vmatprep.subr.bf16.mxu1 %v23136_v4 }
 0x7fc   : > { %18324 = vmatmul.mubr.f32.vlgmr.msra.gmra.mrb[42].mxu1 %v23748_v43 }
 0x7fd   : > { %19925 = vmatpush3.bf16.msra.mxu1 %v23136_v4  ;;  %18330 = vmatprep.mubr.f32.mxu1 %v23749_v18 }
 0x7fe   : > { %19927 = vmatprep.subr.bf16.mxu1 %v23131_v46 }
 0x804   : > { %18331 = vmatmul.mubr.f32.vlgmr.msra.gmra.mrb[42].mxu1 %v23750_v29 }
 0x805   : > { %19929 = vmatpush3.bf16.msra.mxu1 %v23131_v46  ;;  %18337 = vmatprep.mubr.f32.mxu1 %v23751_v20 }
 0x806   : > { %19931 = vmatprep.subr.bf16.mxu1 %v23140_v11 }
 0x80c   : > { %18338 = vmatmul.mubr.f32.vlgmr.msra.gmra.mrb[42].mxu1 %v23752_v24 }
 0x80d   : > { %19933 = vmatpush3.bf16.msra.mxu1 %v23140_v11  ;;  %18344 = vmatprep.mubr.f32.mxu1 %v23747_v2 }
 0x80e   : > { %19935 = vmatprep.subr.bf16.mxu1 %v23131_v46 }
 0x814   : > { %18345 = vmatmul.mubr.f32.vlgmr.msra.gmra.mrb[42].mxu1 %v23748_v43 }
 0x815   : > { %19937 = vmatpush3.bf16.msra.mxu1 %v23131_v46  ;;  %18351 = vmatprep.mubr.f32.mxu1 %v23747_v2 }
 0x81c   : > { %18352 = vmatmul.mubr.f32.vlgmr.msra.gmra.mrb[42].mxu1 %v23748_v43 }
 0x81d   : > { %18622 = vmatprep.mubr.f32.mxu1 %v23753_v36 }
 0x826   : > { %v18608_v50 = vpop.f32.mrb[32].mxu0 }
 0x827   : > { %v13101_v47 = vand.u32 4294901760, %v18608_v50  ;;  %v13051_v51 = vpop.f32.mrb[33].mxu0 }
 0x828   : > { %v13098_v55 = vand.u32 4294901760, %v13051_v51 }
 0x829   : > { %v13193_v61 = vsub.f32 %v18608_v50, %v13101_v47 }
 0x82a   : > { %v23221_v62 = vpack.c.bf16 %v13101_v47, %v13098_v55  ;;  %v13186_v13 = vsub.f32 %v13051_v51, %v13098_v55  ;;  %v18611_v32 = vpop.f32.mrb[34].mxu0 }
 0x82b   : > { %v13194_v26 = vand.u32 4294901760, %v13193_v61  ;;  %v13603_v58 = vand.u32 4294901760, %v18611_v32  ;;  %v13063_v14 = vpop.f32.mrb[35].mxu0 }
 0x82c   : > { %v13187_v38 = vand.u32 4294901760, %v13186_v13  ;;  %v13600_v37 = vand.u32 4294901760, %v13063_v14  ;;  %20131 = vmatprep.subr.bf16.mxu1 %v23221_v62  ;;  %v20138_v22 = vpack.c.bf16 %v13193_v61, %v13186_v13 }
 0x82d   : > { %v13195_v27 = vsub.f32 %v13193_v61, %v13194_v26  ;;  %v13695_v49 = vsub.f32 %v18611_v32, %v13603_v58  ;;  %20133 = vmatpush3.bf16.msra.mxu1 %v23221_v62 }
 0x82e   : > { %v13188_v28 = vsub.f32 %v13186_v13, %v13187_v38  ;;  %v23225_v40 = vpack.c.bf16 %v13603_v58, %v13600_v37  ;;  %v13688_v21 = vsub.f32 %v13063_v14, %v13600_v37  ;;  %v18614_v3 = vpop.f32.mrb[36].mxu0  ;;  %v20146_v17 = vpack.c.bf16 %v13194_v26, %v13187_v38 }
 0x82f   : > { %v13696_v57 = vand.u32 4294901760, %v13695_v49  ;;  %v14105_v7 = vand.u32 4294901760, %v18614_v3  ;;  %v13075_v35 = vpop.f32.mrb[37].mxu0  ;;  %v13196_v30 = vand.u32 4294901760, %v13195_v27 }
 0x830   : > { %v13689_v42 = vand.u32 4294901760, %v13688_v21  ;;  %v14102_v23 = vand.u32 4294901760, %v13075_v35  ;;  %18623 = vmatmul.mubr.f32.vlgmr.msra.gmra.mrb[44].mxu1 %v23746_v52  ;;  %v13189_v56 = vand.u32 4294901760, %v13188_v28  ;;  %v23228_v5 = vpack.c.bf16 %v13695_v49, %v13688_v21  ;;  %v23755_v28 = vld [vmem:[#allocation17_spill] sm:$0xff] }
 0x831   : > { %v13697_v45 = vsub.f32 %v13695_v49, %v13696_v57  ;;  %v14197_v9 = vsub.f32 %v18614_v3, %v14105_v7  ;;  %18629 = vmatprep.mubr.f32.mxu1 %v23747_v2  ;;  %v23756_v3 = vsub.f32 %v22759_v31, %v22437_v39 }
 0x832   : > { %v13690_v10 = vsub.f32 %v13688_v21, %v13689_v42  ;;  %v23231_v6 = vpack.c.bf16 %v14105_v7, %v14102_v23  ;;  %v14190_v8 = vsub.f32 %v13075_v35, %v14102_v23  ;;  %v18617_v25 = vpop.f32.mrb[38].mxu0  ;;  %v20134_v59 = vpack.c.bf16 %v13196_v30, %v13189_v56  ;;  %v23758_v35 = vld [vmem:[#allocation42_spill] sm:$0xff]  ;;  %v23759_v23 = vld [vmem:[#allocation43_spill] sm:$0xff] }
 0x833   : > { %v14198_v46 = vand.u32 4294901760, %v14197_v9  ;;  %v14607_v16 = vand.u32 4294901760, %v18617_v25  ;;  %v13087_v19 = vpop.f32.mrb[39].mxu0  ;;  %v13698_v1 = vand.u32 4294901760, %v13697_v45  ;;  %v23233_v48 = vpack.c.bf16 %v13696_v57, %v13689_v42 }
 0x834   : > { %v14191_v53 = vand.u32 4294901760, %v14190_v8  ;;  %v14604_v63 = vand.u32 4294901760, %v13087_v19  ;;  %20135 = vmatprep.subr.bf16.mxu1 %v20134_v59  ;;  %v13691_v54 = vand.u32 4294901760, %v13690_v10  ;;  %v23235_v4 = vpack.c.bf16 %v14197_v9, %v14190_v8 }
 0x835   : > { %v14199_v12 = vsub.f32 %v14197_v9, %v14198_v46  ;;  %v14699_v34 = vsub.f32 %v18617_v25, %v14607_v16  ;;  %20137 = vmatpush3.bf16.msra.mxu1 %v20134_v59  ;;  %v23757_v57 = vsub.f32 %v22763_v41, %v22447_v33  ;;  %v15202_v30 = vadd.f32 0.0001, %v23758_v35  ;;  %v23760_v33 = vld [vmem:[#allocation44_spill] sm:$0xff]  ;;  %v23763_v25 = vld [vmem:[#allocation18_spill] sm:$0xff] }
 0x836   : > { %v14192_v60 = vsub.f32 %v14190_v8, %v14191_v53  ;;  %v23237_v11 = vpack.c.bf16 %v14607_v16, %v14604_v63  ;;  %v14692_v0 = vsub.f32 %v13087_v19, %v14604_v63  ;;  %20139 = vmatprep.subr.bf16.mxu1 %v20138_v22  ;;  %v20158_v44 = vpack.c.bf16 %v13698_v1, %v13691_v54  ;;  %v23762_v8 = vld [vmem:[#allocation64_spill] sm:$0xff]  ;;  %v23765_v16 = vld [vmem:[#allocation65_spill] sm:$0xff]  ;;  %v23766_v19 = vld [vmem:[#allocation19_spill] sm:$0xff] }
 0x837   : > { %v14700_v15 = vand.u32 4294901760, %v14699_v34  ;;  %v14200_v50 = vand.u32 4294901760, %v14199_v12  ;;  %v23239_v47 = vpack.c.bf16 %v14198_v46, %v14191_v53  ;;  %v15201_v56 = vadd.f32 0.0001, %v23759_v23  ;;  %v23768_v53 = vld [vmem:[#allocation48_spill] sm:$0xff] }
 0x838   : > { %v14693_v51 = vand.u32 4294901760, %v14692_v0  ;;  %18630 = vmatmul.mubr.f32.vlgmr.msra.gmra.mrb[44].mxu1 %v23748_v43  ;;  %v14193_v55 = vand.u32 4294901760, %v14192_v60  ;;  %v23242_v61 = vpack.c.bf16 %v14699_v34, %v14692_v0  ;;  %v23764_v59 = vsub.f32 %v23762_v8, %v23763_v25 }
 0x839   : > { %v14701_v13 = vsub.f32 %v14699_v34, %v14700_v15  ;;  %20141 = vmatpush3.bf16.msra.mxu1 %v20138_v22  ;;  %18636 = vmatprep.mubr.f32.mxu1 %v23749_v18  ;;  %v23754_v22 = vld [vmem:[#allocation16_spill] sm:$0xff]  ;;  %v23767_v1 = vsub.f32 %v23765_v16, %v23766_v19  ;;  %v15204_v63 = vadd.f32 0.0001, %v23768_v53 }
 0x83a   : > { %v14694_v32 = vsub.f32 %v14692_v0, %v14693_v51  ;;  %20143 = vmatprep.subr.bf16.mxu1 %v23221_v62  ;;  %v20182_v26 = vpack.c.bf16 %v14200_v50, %v14193_v55  ;;  %v23246_v58 = vpack.c.bf16 %v14700_v15, %v14693_v51  ;;  %v23773_v51 = vld [vmem:[#allocation36_spill] sm:$0xff] }
 0x83b   : > { %v14702_v14 = vand.u32 4294901760, %v14701_v13  ;;  %v23776_v13 = vld [vmem:[#allocation37_spill] sm:$0xff] }
 0x83c   : > { %v14695_v38 = vand.u32 4294901760, %v14694_v32 }
 0x83e   : > { %v23248_v37 = vpack.c.bf16 %v14702_v14, %v14695_v38  ;;  %v23778_v14 = vld [vmem:[#allocation54_spill] sm:$0xff] }
 0x83f   : > { %v15206_v38 = vadd.f32 0.0001, %v23778_v14 }
 0x840   : > { %18637 = vmatmul.mubr.f32.vlgmr.msra.gmra.mrb[44].mxu1 %v23750_v29 }
 0x841   : > { %20145 = vmatpush3.bf16.msra.mxu1 %v23221_v62  ;;  %18643 = vmatprep.mubr.f32.mxu1 %v23751_v20 }
 0x842   : > { %20147 = vmatprep.subr.bf16.mxu1 %v20146_v17 }
 0x848   : > { %18644 = vmatmul.mubr.f32.vlgmr.msra.gmra.mrb[44].mxu1 %v23752_v24 }
 0x849   : > { %20149 = vmatpush3.bf16.msra.mxu1 %v20146_v17  ;;  %18650 = vmatprep.mubr.f32.mxu1 %v23747_v2 }
 0x84a   : > { %20151 = vmatprep.subr.bf16.mxu1 %v23221_v62 }
 0x850   : > { %18651 = vmatmul.mubr.f32.vlgmr.msra.gmra.mrb[44].mxu1 %v23748_v43 }
 0x851   : > { %20153 = vmatpush3.bf16.msra.mxu1 %v23221_v62  ;;  %18657 = vmatprep.mubr.f32.mxu1 %v23747_v2 }
 0x852   : > { %20155 = vmatprep.subr.bf16.mxu1 %v23225_v40 }
 0x858   : > { %18658 = vmatmul.mubr.f32.vlgmr.msra.gmra.mrb[44].mxu1 %v23748_v43 }
 0x859   : > { %20157 = vmatpush3.bf16.msra.mxu1 %v23225_v40  ;;  %18664 = vmatprep.mubr.f32.mxu1 %v23753_v36 }
 0x85a   : > { %20159 = vmatprep.subr.bf16.mxu1 %v20158_v44 }
 0x85c   : > { %18665 = vmatmul.mubr.f32.vlgmr.msra.gmra.mrb[46].mxu1 %v23746_v52 }
 0x85d   : > { %20161 = vmatpush3.bf16.msra.mxu1 %v20158_v44  ;;  %18671 = vmatprep.mubr.f32.mxu1 %v23747_v2 }
 0x85e   : > { %20163 = vmatprep.subr.bf16.mxu1 %v23228_v5 }
 0x864   : > { %18672 = vmatmul.mubr.f32.vlgmr.msra.gmra.mrb[46].mxu1 %v23748_v43 }
 0x865   : > { %20165 = vmatpush3.bf16.msra.mxu1 %v23228_v5  ;;  %18678 = vmatprep.mubr.f32.mxu1 %v23749_v18 }
 0x866   : > { %20167 = vmatprep.subr.bf16.mxu1 %v23225_v40 }
 0x86b   : > { %v18227_v62 = vpop.f32.mrb[36].mxu1 }
 0x86c   : > { %v15138_v27 = vsub.f32 %v18227_v62, %v23754_v22  ;;  %v10631_v49 = vpop.f32.mrb[37].mxu1  ;;  %18679 = vmatmul.mubr.f32.vlgmr.msra.gmra.mrb[46].mxu1 %v23750_v29 }
 0x86d   : > { %v15137_v21 = vsub.f32 %v10631_v49, %v23755_v28  ;;  %20169 = vmatpush3.bf16.msra.mxu1 %v23225_v40  ;;  %18685 = vmatprep.mubr.f32.mxu1 %v23751_v20  ;;  %v23780_v28 = vld [vmem:[#allocation57_spill] sm:$0xff] }
 0x86e   : > { %v15210_v17 = vadd.f32 %v15138_v27, %v23756_v3  ;;  %20171 = vmatprep.subr.bf16.mxu1 %v23233_v48 }
 0x86f   : > { %v15209_v7 = vadd.f32 %v15137_v21, %v23757_v57  ;;  %v23782_v57 = vld [vmem:[#allocation22_spill] sm:$0xff] }
 0x870   : > { %v15218_v42 = vadd.f32 0.0009, %v15210_v17  ;;  %v23781_v17 = vld [vmem:[#allocation60_spill] sm:$0xff] }
 0x871   : > { %v15217_v5 = vadd.f32 0.0009, %v15209_v7 }
 0x872   : > { %v23284_v45 = vmul.f32 %v15218_v42, %v15202_v30  ;;  %v23785_v30 = vld [vmem:[#allocation23_spill] sm:$0xff] }
 0x873   : > { %v23286_v9 = vmul.f32 %v15217_v5, %v15201_v56  ;;  %v23786_v42 = vld [vmem:[#allocation39_spill] sm:$0xff]  ;;  %v23788_v5 = vld [vmem:[#allocation62_spill] sm:$0xff] }
 0x874   : > { %18686 = vmatmul.mubr.f32.vlgmr.msra.gmra.mrb[46].mxu1 %v23752_v24  ;;  %v23787_v23 = vsub.f32 %v23785_v30, %v23786_v42  ;;  %20718 = vrcp.f32 %v23284_v45 }
 0x875   : > { %20173 = vmatpush3.bf16.msra.mxu1 %v23233_v48  ;;  %18692 = vmatprep.mubr.f32.mxu1 %v23747_v2  ;;  %20720 = vrcp.f32 %v23286_v9 }
 0x876   : > { %20175 = vmatprep.subr.bf16.mxu1 %v23225_v40 }
 0x87c   : > { %18693 = vmatmul.mubr.f32.vlgmr.msra.gmra.mrb[46].mxu1 %v23748_v43 }
 0x87d   : > { %20177 = vmatpush3.bf16.msra.mxu1 %v23225_v40  ;;  %18699 = vmatprep.mubr.f32.mxu1 %v23747_v2  ;;  %v23761_v40 = vld [vmem:[#allocation46_spill] sm:$0xff] }
 0x87e   : > { %20179 = vmatprep.subr.bf16.mxu1 %v23231_v6 }
 0x884   : > { %18700 = vmatmul.mubr.f32.vlgmr.msra.gmra.mrb[46].mxu1 %v23748_v43 }
 0x885   : > { %20181 = vmatpush3.bf16.msra.mxu1 %v23231_v6  ;;  %18706 = vmatprep.mubr.f32.mxu1 %v23753_v36 }
 0x886   : > { %20183 = vmatprep.subr.bf16.mxu1 %v20182_v26 }
 0x888   : > { %18707 = vmatmul.mubr.f32.vlgmr.msra.gmra.mrb[48].mxu1 %v23746_v52 }
 0x889   : > { %20185 = vmatpush3.bf16.msra.mxu1 %v20182_v26  ;;  %18713 = vmatprep.mubr.f32.mxu1 %v23747_v2 }
 0x88a   : > { %20187 = vmatprep.subr.bf16.mxu1 %v23235_v4 }
 0x890   : > { %18714 = vmatmul.mubr.f32.vlgmr.msra.gmra.mrb[48].mxu1 %v23748_v43 }
 0x891   : > { %20189 = vmatpush3.bf16.msra.mxu1 %v23235_v4  ;;  %18720 = vmatprep.mubr.f32.mxu1 %v23749_v18  ;;  %v23769_v4 = vld [vmem:[#allocation49_spill] sm:$0xff] }
 0x892   : > { %20191 = vmatprep.subr.bf16.mxu1 %v23231_v6  ;;  %v15203_v12 = vadd.f32 0.0001, %v23769_v4 }
 0x897   : > { %v18269_v39 = vpop.f32.mrb[38].mxu1 }
 0x898   : > { %v15140_v31 = vsub.f32 %v18269_v39, %v23760_v33  ;;  %v11133_v41 = vpop.f32.mrb[39].mxu1  ;;  %18721 = vmatmul.mubr.f32.vlgmr.msra.gmra.mrb[48].mxu1 %v23750_v29 }
 0x899   : > { %v15139_v10 = vsub.f32 %v11133_v41, %v23761_v40  ;;  %20193 = vmatpush3.bf16.msra.mxu1 %v23231_v6  ;;  %18727 = vmatprep.mubr.f32.mxu1 %v23751_v20 }
 0x89a   : > { %v15212_v46 = vadd.f32 %v15140_v31, %v23764_v59  ;;  %20195 = vmatprep.subr.bf16.mxu1 %v23239_v47 }
 0x89b   : > { %v15211_v48 = vadd.f32 %v15139_v10, %v23767_v1  ;;  %v23790_v10 = vld [vmem:[#allocation40_spill] sm:$0xff] }
 0x89c   : > { %v15220_v54 = vadd.f32 0.0009, %v15212_v46  ;;  %v15154_v8 = vmul.f32 2.0, %v23790_v10  ;;  %v23791_v46 = vld [vmem:[#allocation41_spill] sm:$0xff] }
 0x89d   : > { %v15219_v34 = vadd.f32 0.0009, %v15211_v48  ;;  %v15153_v16 = vmul.f32 2.0, %v23791_v46 }
 0x89e   : > { %v23320_v60 = vmul.f32 %v15220_v54, %v15204_v63  ;;  %v15162_v53 = vadd.f32 0.0001, %v15154_v8 }
 0x89f   : > { %v23322_v0 = vmul.f32 %v15219_v34, %v15203_v12  ;;  %v15161_v54 = vadd.f32 0.0001, %v15153_v16  ;;  %v20719_v12 = vpop.eup %20718 }
 0x8a0   : > { %18728 = vmatmul.mubr.f32.vlgmr.msra.gmra.mrb[48].mxu1 %v23752_v24  ;;  %v20721_v34 = vpop.eup %20720  ;;  %20722 = vrcp.f32 %v23320_v60 }
 0x8a1   : > { %20197 = vmatpush3.bf16.msra.mxu1 %v23239_v47  ;;  %18734 = vmatprep.mubr.f32.mxu1 %v23747_v2  ;;  %v23772_v47 = vld [vmem:[#allocation20_spill] sm:$0xff]  ;;  %20724 = vrcp.f32 %v23322_v0 }
 0x8a2   : > { %20199 = vmatprep.subr.bf16.mxu1 %v23231_v6  ;;  %v23774_v55 = vsub.f32 %v23772_v47, %v23773_v51 }
 0x8a8   : > { %18735 = vmatmul.mubr.f32.vlgmr.msra.gmra.mrb[48].mxu1 %v23748_v43 }
 0x8a9   : > { %20201 = vmatpush3.bf16.msra.mxu1 %v23231_v6  ;;  %18741 = vmatprep.mubr.f32.mxu1 %v23747_v2 }
 0x8aa   : > { %20203 = vmatprep.subr.bf16.mxu1 %v23237_v11  ;;  %v20723_v0 = vpop.eup %20722 }
 0x8b0   : > { %18742 = vmatmul.mubr.f32.vlgmr.msra.gmra.mrb[48].mxu1 %v23748_v43 }
 0x8b1   : > { %20205 = vmatpush3.bf16.msra.mxu1 %v23237_v11  ;;  %18748 = vmatprep.mubr.f32.mxu1 %v23753_v36  ;;  %v23770_v36 = vld [vmem:[#allocation50_spill] sm:$0xff] }
 0x8b2   : > { %20207 = vmatprep.subr.bf16.mxu1 %v23248_v37 }
 0x8b4   : > { %18749 = vmatmul.mubr.f32.vlgmr.msra.gmra.mrb[50].mxu1 %v23746_v52  ;;  %v23771_v52 = vld [vmem:[#allocation52_spill] sm:$0xff] }
 0x8b5   : > { %20209 = vmatpush3.bf16.msra.mxu1 %v23248_v37  ;;  %18755 = vmatprep.mubr.f32.mxu1 %v23747_v2 }
 0x8b6   : > { %20211 = vmatprep.subr.bf16.mxu1 %v23242_v61 }
 0x8bc   : > { %18756 = vmatmul.mubr.f32.vlgmr.msra.gmra.mrb[50].mxu1 %v23748_v43 }
 0x8bd   : > { %20213 = vmatpush3.bf16.msra.mxu1 %v23242_v61  ;;  %18762 = vmatprep.mubr.f32.mxu1 %v23749_v18  ;;  %v23775_v18 = vld [vmem:[#allocation21_spill] sm:$0xff] }
 0x8be   : > { %20215 = vmatprep.subr.bf16.mxu1 %v23237_v11  ;;  %v23777_v32 = vsub.f32 %v23775_v18, %v23776_v13 }
 0x8c3   : > { %v18311_v6 = vpop.f32.mrb[40].mxu1 }
 0x8c4   : > { %v15142_v44 = vsub.f32 %v18311_v6, %v23770_v36  ;;  %v11635_v15 = vpop.f32.mrb[41].mxu1  ;;  %18763 = vmatmul.mubr.f32.vlgmr.msra.gmra.mrb[50].mxu1 %v23750_v29  ;;  %v23779_v29 = vld [vmem:[#allocation55_spill] sm:$0xff] }
 0x8c5   : > { %v15141_v50 = vsub.f32 %v11635_v15, %v23771_v52  ;;  %20217 = vmatpush3.bf16.msra.mxu1 %v23237_v11  ;;  %18769 = vmatprep.mubr.f32.mxu1 %v23751_v20  ;;  %v15205_v62 = vadd.f32 0.0001, %v23779_v29 }
 0x8c6   : > { %v15214_v61 = vadd.f32 %v15142_v44, %v23774_v55  ;;  %20219 = vmatprep.subr.bf16.mxu1 %v23246_v58 }
 0x8c7   : > { %v15213_v26 = vadd.f32 %v15141_v50, %v23777_v32  ;;  %v23792_v50 = vld [vmem:[#allocation45_spill] sm:$0xff] }
 0x8c8   : > { %v15222_v37 = vadd.f32 0.0009, %v15214_v61  ;;  %v15156_v47 = vmul.f32 2.0, %v23792_v50  ;;  %v23793_v61 = vld [vmem:[#allocation47_spill] sm:$0xff] }
 0x8c9   : > { %v15221_v22 = vadd.f32 0.0009, %v15213_v26  ;;  %v15155_v18 = vmul.f32 2.0, %v23793_v61 }
 0x8ca   : > { %v23358_v27 = vmul.f32 %v15222_v37, %v15206_v38  ;;  %v15164_v14 = vadd.f32 0.0001, %v15156_v47 }
 0x8cb   : > { %v23360_v49 = vmul.f32 %v15221_v22, %v15205_v62  ;;  %v15163_v37 = vadd.f32 0.0001, %v15155_v18  ;;  %v20725_v22 = vpop.eup %20724 }
 0x8cc   : > { %18770 = vmatmul.mubr.f32.vlgmr.msra.gmra.mrb[50].mxu1 %v23752_v24  ;;  %20726 = vrcp.f32 %v23358_v27 }
 0x8cd   : > { %20221 = vmatpush3.bf16.msra.mxu1 %v23246_v58  ;;  %18776 = vmatprep.mubr.f32.mxu1 %v23747_v2  ;;  %v23783_v58 = vld [vmem:[#allocation38_spill] sm:$0xff]  ;;  %20728 = vrcp.f32 %v23360_v49 }
 0x8ce   : > { %20223 = vmatprep.subr.bf16.mxu1 %v23237_v11  ;;  %v23784_v7 = vsub.f32 %v23782_v57, %v23783_v58 }
 0x8d4   : > { %18777 = vmatmul.mubr.f32.vlgmr.msra.gmra.mrb[50].mxu1 %v23748_v43 }
 0x8d5   : > { %20225 = vmatpush3.bf16.msra.mxu1 %v23237_v11  ;;  %18783 = vmatprep.mubr.f32.mxu1 %v23747_v2  ;;  %v15208_v11 = vadd.f32 0.0001, %v23788_v5  ;;  %v23789_v2 = vld [vmem:[#allocation63_spill] sm:$0xff] }
 0x8d6   : > { %v15207_v33 = vadd.f32 0.0001, %v23789_v2  ;;  %v20727_v49 = vpop.eup %20726 }
 0x8dc   : > { %18784 = vmatmul.mubr.f32.vlgmr.msra.gmra.mrb[50].mxu1 %v23748_v43 }
 0x8ef   : > { %v18353_v20 = vpop.f32.mrb[42].mxu1 }
 0x8f0   : > { %v15144_v21 = vsub.f32 %v18353_v20, %v23780_v28  ;;  %v12137_v3 = vpop.f32.mrb[43].mxu1 }
 0x8f1   : > { %v15143_v24 = vsub.f32 %v12137_v3, %v23781_v17 }
 0x8f2   : > { %v15216_v35 = vadd.f32 %v15144_v21, %v23784_v7 }
 0x8f3   : > { %v15215_v56 = vadd.f32 %v15143_v24, %v23787_v23  ;;  %v23794_v24 = vld [vmem:[#allocation51_spill] sm:$0xff] }
 0x8f4   : > { %v15224_v39 = vadd.f32 0.0009, %v15216_v35  ;;  %v15158_v57 = vmul.f32 2.0, %v23794_v24  ;;  %v23795_v35 = vld [vmem:[#allocation53_spill] sm:$0xff] }
 0x8f5   : > { %v15223_v43 = vadd.f32 0.0009, %v15215_v56  ;;  %v15157_v30 = vmul.f32 2.0, %v23795_v35 }
 0x8f6   : > { %v23380_v31 = vmul.f32 %v15224_v39, %v15208_v11  ;;  %v15166_v5 = vadd.f32 0.0001, %v15158_v57 }
 0x8f7   : > { %v23382_v41 = vmul.f32 %v15223_v43, %v15207_v33  ;;  %v15165_v39 = vadd.f32 0.0001, %v15157_v30  ;;  %v20729_v43 = vpop.eup %20728 }
 0x8f8   : > { %20730 = vrcp.f32 %v23380_v31 }
 0x8f9   : > { %20732 = vrcp.f32 %v23382_v41 }
 0x92b   : > { %v18659_v40 = vpop.f32.mrb[44].mxu1 }
 0x92c   : > { %v15146_v25 = vsub.f32 %v18659_v40, %v23790_v10  ;;  %v13589_v59 = vpop.f32.mrb[45].mxu1 }
 0x92d   : > { %v15145_v19 = vsub.f32 %v13589_v59, %v23791_v46  ;;  %v23796_v46 = vld [vmem:[#allocation58_spill] sm:$0xff] }
 0x92e   : > { %v15170_v1 = vmul.f32 2.0, %v15146_v25  ;;  %v15160_v16 = vmul.f32 2.0, %v23796_v46 }
 0x92f   : > { %v15169_v48 = vmul.f32 2.0, %v15145_v19 }
 0x930   : > { %v15178_v63 = vadd.f32 0.0009, %v15170_v1 }
 0x931   : > { %v15177_v4 = vadd.f32 0.0009, %v15169_v48  ;;  %v23797_v48 = vld [vmem:[#allocation61_spill] sm:$0xff] }
 0x932   : > { %v15186_v45 = vmul.f32 %v15178_v63, %v15162_v53  ;;  %v15159_v53 = vmul.f32 2.0, %v23797_v48 }
 0x933   : > { %v15185_v9 = vmul.f32 %v15177_v4, %v15161_v54 }
 0x934   : > { %v15236_v6 = vmul.f32 %v20719_v12, %v15186_v45  ;;  %v15168_v45 = vadd.f32 0.0001, %v15160_v16  ;;  %v15167_v31 = vadd.f32 0.0001, %v15159_v53 }
 0x935   : > { %v15234_v36 = vmul.f32 %v20721_v34, %v15185_v9  ;;  %v20731_v34 = vpop.eup %20730 }
 0x936   : > { %v15250_v44 = vsub.f32 1.0, %v15236_v6 }
 0x937   : > { %v15249_v15 = vsub.f32 1.0, %v15234_v36  ;;  %v20733_v36 = vpop.eup %20732 }
 0x938   : > { %15258 = vst [vmem:[%s23391_s21 + $0x8] sm:$0xff] %v15250_v44 }
 0x939   : > { %15257 = vst [vmem:[%s23391_s21] sm:$0xff] %v15249_v15 }
 0x957   : > { %v18701_v52 = vpop.f32.mrb[46].mxu1 }
 0x958   : > { %v15148_v51 = vsub.f32 %v18701_v52, %v23792_v50  ;;  %v14091_v55 = vpop.f32.mrb[47].mxu1 }
 0x959   : > { %v15147_v13 = vsub.f32 %v14091_v55, %v23793_v61 }
 0x95a   : > { %v15172_v32 = vmul.f32 2.0, %v15148_v51 }
 0x95b   : > { %v15171_v26 = vmul.f32 2.0, %v15147_v13 }
 0x95c   : > { %v15180_v38 = vadd.f32 0.0009, %v15172_v32 }
 0x95d   : > { %v15179_v60 = vadd.f32 0.0009, %v15171_v26 }
 0x95e   : > { %v15188_v29 = vmul.f32 %v15180_v38, %v15164_v14 }
 0x95f   : > { %v15187_v62 = vmul.f32 %v15179_v60, %v15163_v37 }
 0x960   : > { %v15240_v20 = vmul.f32 %v20723_v0, %v15188_v29 }
 0x961   : > { %v15238_v28 = vmul.f32 %v20725_v22, %v15187_v62 }
 0x962   : > { %v15252_v21 = vsub.f32 1.0, %v15240_v20 }
 0x963   : > { %v15251_v3 = vsub.f32 1.0, %v15238_v28 }
 0x964   : > { %15260 = vst [vmem:[%s23391_s21 + $0x18] sm:$0xff] %v15252_v21 }
 0x965   : > { %15259 = vst [vmem:[%s23391_s21 + $0x10] sm:$0xff] %v15251_v3 }
 0x983   : > { %v18743_v17 = vpop.f32.mrb[48].mxu1 }
 0x984   : > { %v15150_v58 = vsub.f32 %v18743_v17, %v23794_v24  ;;  %v14593_v7 = vpop.f32.mrb[49].mxu1 }
 0x985   : > { %v15149_v42 = vsub.f32 %v14593_v7, %v23795_v35 }
 0x986   : > { %v15174_v23 = vmul.f32 2.0, %v15150_v58 }
 0x987   : > { %v15173_v56 = vmul.f32 2.0, %v15149_v42 }
 0x988   : > { %v15182_v11 = vadd.f32 0.0009, %v15174_v23 }
 0x989   : > { %v15181_v27 = vadd.f32 0.0009, %v15173_v56 }
 0x98a   : > { %v15190_v2 = vmul.f32 %v15182_v11, %v15166_v5 }
 0x98b   : > { %v15189_v33 = vmul.f32 %v15181_v27, %v15165_v39 }
 0x98c   : > { %v15244_v40 = vmul.f32 %v20727_v49, %v15190_v2 }
 0x98d   : > { %v15242_v10 = vmul.f32 %v20729_v43, %v15189_v33 }
 0x98e   : > { %v15254_v8 = vsub.f32 1.0, %v15244_v40 }
 0x98f   : > { %v15253_v25 = vsub.f32 1.0, %v15242_v10 }
 0x990   : > { %15262 = vst [vmem:[%s23391_s21 + $0x28] sm:$0xff] %v15254_v8 }
 0x991   : > { %15261 = vst [vmem:[%s23391_s21 + $0x20] sm:$0xff] %v15253_v25 }
 0x9af   : > { %v18785_v59 = vpop.f32.mrb[50].mxu1 }
 0x9b0   : > { %v15152_v19 = vsub.f32 %v18785_v59, %v23796_v46  ;;  %v15095_v1 = vpop.f32.mrb[51].mxu1 }
 0x9b1   : > { %v15151_v63 = vsub.f32 %v15095_v1, %v23797_v48 }
 0x9b2   : > { %v15176_v54 = vmul.f32 2.0, %v15152_v19 }
 0x9b3   : > { %v15175_v4 = vmul.f32 2.0, %v15151_v63 }
 0x9b4   : > { %v15184_v12 = vadd.f32 0.0009, %v15176_v54 }
 0x9b5   : > { %v15183_v41 = vadd.f32 0.0009, %v15175_v4 }
 0x9b6   : > { %v15192_v9 = vmul.f32 %v15184_v12, %v15168_v45 }
 0x9b7   : > { %v15191_v6 = vmul.f32 %v15183_v41, %v15167_v31 }
 0x9b8   : > { %v15248_v44 = vmul.f32 %v20731_v34, %v15192_v9 }
 0x9b9   : > { %v15246_v15 = vmul.f32 %v20733_v36, %v15191_v6 }
 0x9ba   : > { %v15256_v52 = vsub.f32 1.0, %v15248_v44 }
 0x9bb   : > { %v15255_v50 = vsub.f32 1.0, %v15246_v15 }
 0x9bc   : > { %15264 = vst [vmem:[%s23391_s21 + $0x38] sm:$0xff] %v15256_v52 }
 0x9bd   : > { %15263 = vst [vmem:[%s23391_s21 + $0x30] sm:$0xff] %v15255_v50 }
 0x9be   : > { %20887 = shalt.err (!%p20884_p7)
}
 0x9bf   : > { %s20888_s0 = scalar_lea.hbm %s23422_s12, 1024  ;;  %s20892_s20 = scalar_lea.hbm %s23474_s4, 2048 }
 0x9c0   : > { %p20889_p9 = scmp.ne.s32.totalorder %s23422_s12, %s20888_s0  ;;  %p20893_p11 = scmp.lt.u32.totalorder %s23422_s12, %s23474_s4 }
 0x9c1   : > { %p20894_p2 = scmp.lt.u32.totalorder %s20892_s20, %s20888_s0  ;;  %p20896_p1 = scmp.lt.u32.totalorder %s20888_s0, %s23422_s12 }
 0x9c2   : > { %p20890_p0 = pnand %p20889_p9, %p23798_p13 }
 0x9c3   : > { %p20895_p12 = por %p20894_p2, %p20893_p11 }
 0x9c4   : > { %p20891_p8 = pneg %p20890_p0 }
 0x9c5   : > { %p20897_p6 = por %p20896_p1, %p20895_p12 }
 0x9c7   : > { %p20898_p10 = pnand %p20897_p6, %p20891_p8 }
 0x9c9   : > { %20901 = shalt.err (!%p20898_p10)
}
 0x9ca   : > { %s20961_s27 = smov 128   ;;  %s20962_s21 = smov 8  }
 0x9cb   : > { %20654 = dma.vmem_to_hbm [thread:$0]  (%p23798_p13), %s23424_s5, 1024, %s23422_s12, %s15266_s24, %s20961_s27, %s20961_s27, %s20962_s21  }
 0x9cc PF: > { %s15295_s10 = sand.u32 1, %s20940_s15   ;;  %p23799_p4 = scmp.ne.s32.totalorder %s23597_s22, 0 }
 0x9cd   : > { %p23800_p5 = scmp.ge.s32.totalorder %s20952_s18, 2  ;;  %s15296_s8 = scalar_lea.sflag [#allocation4], %s15295_s10 }
 0x9cf   : > { %p20671_p3 = pnand %p23800_p5, %p23799_p4 }
 0x9d1   : > { %20935 = dma.done.wait (!%p20671_p3), %s15296_s8, 1024  }
 0x9d2   : > { %20937 = vsyncadd (!%p20671_p3), %s15296_s8, 4294966272  ;;  %p21_p7 = scmp.ge.s32.totalorder %s21104_s26, 4   ;;  %s23801_s15 = smov %s20944_s16 }
 0x9d3   : > { %s23802_s16 = smov %s20948_s17  ;;  %s23803_s17 = smov %s21120_s14 }
 0x9d4   : > { %s23804_s18 = smov %s21104_s26  ;;  %23 = sbr.rel (!%p21_p7) target bundleno = 10 (0xa), region = 102 }
 0x9db   :  { %15301 = vsyncpa [#allocation3], 1 }
 0x9dc   :  { %15303 = vsyncpa [#allocation3 + $0x1], 1 }
 0x9dd   :  { %15304 = vsyncpa [#allocation6], 1 }
 0x9de   :  { %15306 = vsyncpa [#allocation6 + $0x1], 1 }
 0x9df   :  { %15307 = vsyncpa [#allocation9], 1 }
 0x9e0   :  { %15308 = vsyncpa [#allocation4], 1 }
 0x9e1   :  { %15310 = vsyncpa [#allocation4 + $0x1], 1 }

</bundles_post_ra>
